<compile_context>
chip_gen: v7x
topology: tpu7x:2x2x1
jax: 0.10.0
libtpu: 0.0.40
codegen_flags: <defaults>
</compile_context>

<pallas_src>
import functools

import numpy as np
import jax
import jax.numpy as jnp
from jax.experimental import pallas as pl
from jax.experimental.pallas import tpu as pltpu


_LANE = 128  # lane width == channel padding unit


def _round_up(v, m):
    return (v + m - 1) // m * m


# --------------------------------------------------------------------------
# Static layer geometry (all Python ints, resolved at trace time)
# --------------------------------------------------------------------------
def _layer_dims(cfgs, l_in0):
    dims, L = [], l_in0
    for cfg in cfgs:
        K, s, p = cfg["K"], cfg["stride"], cfg["padding"]
        pre = K - 1 - p                      # spatial pad of the upsampled input
        assert pre >= 0                      # (correlation form of ConvTranspose)
        L_up = (L - 1) * s + 1               # zero-inserted length
        L_pad = L_up + 2 * pre
        L_out = (L - 1) * s + K - 2 * p      # PyTorch ConvTranspose1d formula
        assert L_out == L_pad - K + 1
        dims.append(dict(L_in=L, L_pad=L_pad, L_out=L_out, pre=pre, stride=s))
        L = L_out
    return dims


# --------------------------------------------------------------------------
# Fused Pallas kernel: whole ConvT -> BN -> ReLU chain in one invocation
# --------------------------------------------------------------------------
def _generator_fused_kernel(*refs, cfgs, dims, B, n_layers, c_pad, eps):
    x_ref = refs[0]
    w_refs = refs[1:1 + n_layers]                      # [K, c_pad, c_pad] bf16
    g_refs = refs[1 + n_layers:1 + 2 * n_layers]       # [1, c_pad] f32
    b_refs = refs[1 + 2 * n_layers:1 + 3 * n_layers]   # [1, c_pad] f32
    o_ref = refs[1 + 3 * n_layers]                     # [B, L_out_final, c_pad]
    bufs = refs[2 + 3 * n_layers:]                     # per-layer padded inputs

    # ---- seed layer 0: zero its padded input buffer and place x ----
    d0 = dims[0]
    bufs[0][...] = jnp.zeros_like(bufs[0])
    for b in range(B):
        if d0["stride"] == 1:
            bufs[0][b, d0["pre"]:d0["pre"] + d0["L_in"], :] = x_ref[b, :, :]
        else:
            for t in range(d0["L_in"]):
                r = d0["pre"] + t * d0["stride"]
                bufs[0][b, r:r + 1, :] = x_ref[b, t:t + 1, :]

    # ---- layer chain, fully unrolled at trace time ----
    for l in range(n_layers):
        cfg, d = cfgs[l], dims[l]
        K, mode = cfg["K"], cfg["mode"]
        L_out = d["L_out"]
        buf_in = bufs[l]

        # per-tap weight matrices (already flipped/padded/bf16 at pack time)
        wtaps = [w_refs[l][k] for k in range(K)]

        # per-batch per-tap MXU accumulation (bf16 operands, f32 accumulate)
        ys = []
        for b in range(B):
            acc = jnp.zeros((L_out, c_pad), jnp.float32)
            for k in range(K):
                xs = buf_in[b, k:k + L_out, :].astype(jnp.bfloat16)
                acc = acc + jnp.dot(xs, wtaps[k],
                                    preferred_element_type=jnp.float32)
            ys.append(acc)

        # BatchNorm (training-mode stats over batch*length) or conv bias
        if mode in ("bn", "bn_relu"):
            inv_n = 1.0 / float(B * L_out)
            s1 = ys[0].sum(axis=0, keepdims=True)
            for b in range(1, B):
                s1 = s1 + ys[b].sum(axis=0, keepdims=True)
            mean = s1 * inv_n
            s2 = jnp.square(ys[0] - mean).sum(axis=0, keepdims=True)
            for b in range(1, B):
                s2 = s2 + jnp.square(ys[b] - mean).sum(axis=0, keepdims=True)
            var = s2 * inv_n
            scale = jax.lax.rsqrt(var + eps) * g_refs[l][...]
            shift = b_refs[l][...] - mean * scale
        else:  # "bias": final layer, plain conv-bias add (gamma unused)
            scale = None
            shift = b_refs[l][...]

        # prepare the next layer's padded / zero-inserted input buffer
        if l + 1 < n_layers:
            d_next = dims[l + 1]
            nxt = bufs[l + 1]
            nxt[...] = jnp.zeros_like(nxt)

        for b in range(B):
            yb = ys[b] * scale + shift if scale is not None else ys[b] + shift
            if mode == "bn_relu":
                yb = jnp.maximum(yb, 0.0)
            if l + 1 < n_layers:
                if d_next["stride"] == 1:
                    nxt[b, d_next["pre"]:d_next["pre"] + L_out, :] = yb
                else:
                    # zero-insertion scatter for stride>1 (static row stores)
                    for t in range(L_out):
                        r = d_next["pre"] + t * d_next["stride"]
                        nxt[b, r:r + 1, :] = yb[t:t + 1, :]
            else:
                o_ref[b, :, :] = yb


def _full_spec(shape):
    n = len(shape)
    if n == 2:
        return pl.BlockSpec(shape, lambda i: (0, 0))
    if n == 3:
        return pl.BlockSpec(shape, lambda i: (0, 0, 0))
    raise ValueError(f"unsupported rank for full spec: {shape}")


def generator_forward_pallas(x, cfgs, packed, n_channels, m=None, eps=1e-5):
    """x: [B, latent, 1, L_in] (NCHW, matching the PyTorch module)."""
    B, latent, _, l_in0 = x.shape
    n_layers = len(cfgs)
    dims = _layer_dims(cfgs, l_in0)
    c_pad = packed[0]["w"].shape[-1]
    L_out_final = dims[-1]["L_out"]

    # one-time boundary layout: NCHW latent -> channels-last, lane-padded
    h = jnp.transpose(x[:, :, 0, :], (0, 2, 1))                   # [B, L_in, latent]
    h = jnp.pad(h, ((0, 0), (0, 0), (0, c_pad - latent))).astype(jnp.float32)

    ws = [p["w"] for p in packed]
    gs = [p["gamma"] for p in packed]
    bs = [p["beta"] for p in packed]

    flops = sum(2 * B * d["L_out"] * c_pad * c_pad * cfg["K"]
                for cfg, d in zip(cfgs, dims))
    bytes_accessed = int(h.size * 4
                         + sum(w.size * 2 for w in ws)
                         + sum(g.size * 4 + bb.size * 4 for g, bb in zip(gs, bs))
                         + B * L_out_final * c_pad * 4)
    cost = pl.CostEstimate(flops=int(flops),
                           transcendentals=int(c_pad * n_layers),
                           bytes_accessed=bytes_accessed)

    kernel = functools.partial(
        _generator_fused_kernel, cfgs=tuple(cfgs), dims=tuple(dims),
        B=B, n_layers=n_layers, c_pad=c_pad, eps=eps)

    o = pl.pallas_call(
        kernel,
        grid=(1,),
        in_specs=([_full_spec(h.shape)]
                  + [_full_spec(w.shape) for w in ws]
                  + [_full_spec(g.shape) for g in gs]
                  + [_full_spec(bb.shape) for bb in bs]),
        out_specs=_full_spec((B, L_out_final, c_pad)),
        out_shape=jax.ShapeDtypeStruct((B, L_out_final, c_pad), jnp.float32),
        scratch_shapes=[pltpu.VMEM((B, d["L_pad"], c_pad), jnp.float32)
                        for d in dims],
        compiler_params=pltpu.CompilerParams(
            dimension_semantics=("arbitrary",),
            vmem_limit_bytes=32 * 1024 * 1024),
        cost_estimate=cost,
    )(h, *ws, *gs, *bs)

    out = jnp.transpose(o[:, :, :n_channels], (0, 2, 1))[:, :, None, :]
    if m is not None:
        out = out * m            # optional mask (plain-JAX glue, tiny)
    return out


# --------------------------------------------------------------------------
# Module configuration, parameters and one-time kernel packing
# --------------------------------------------------------------------------
def make_generator_config(window_size, hidden_multiplier, latent_size,
                          n_channels, max_filters, kernel_multiplier):
    n_layers = int(np.log2(window_size))
    cfgs, shapes = [], []
    filters = min(max_filters, hidden_multiplier * 2 ** (n_layers - 2))
    cfgs.append(dict(K=4, stride=1, padding=0, mode="bn"))        # ConvT + BN (no ReLU)
    shapes.append((latent_size, filters, 4))
    prev = filters
    for i in reversed(range(1, n_layers - 1)):
        f = min(max_filters, hidden_multiplier * 2 ** (i - 1))
        cfgs.append(dict(K=4 * kernel_multiplier, stride=2,
                         padding=1 + (kernel_multiplier - 1) * 2,
                         mode="bn_relu"))                          # ConvT + BN + ReLU
        shapes.append((prev, f, 4 * kernel_multiplier))
        prev = f
    cfgs.append(dict(K=3, stride=1, padding=1, mode="bias"))       # final ConvT (bias)
    shapes.append((prev, n_channels, 3))
    return cfgs, shapes


def make_generator_params(key, cfgs, shapes):
    """Raw parameters in PyTorch layout: w [C_in, C_out, K], gamma/beta [C_out]."""
    params = []
    keys = jax.random.split(key, 3 * len(shapes))
    for li, (cfg, (cin, cout, K)) in enumerate(zip(cfgs, shapes)):
        kw, kg, kb = keys[3 * li], keys[3 * li + 1], keys[3 * li + 2]
        w = 0.1 * jax.random.normal(kw, (cin, cout, K), jnp.float32)
        if cfg["mode"] == "bias":
            gamma = jnp.ones((cout,), jnp.float32)                       # unused
            beta = 0.1 * jax.random.normal(kb, (cout,), jnp.float32)     # conv bias
        else:
            gamma = 1.0 + 0.1 * jax.random.normal(kg, (cout,), jnp.float32)
            beta = 0.1 * jax.random.normal(kb, (cout,), jnp.float32)
        params.append(dict(w=w, gamma=gamma, beta=beta))
    return params


def pack_generator_params(cfgs, params):
    """One-time re-layout for the fused kernel (hoisted out of the forward):
    kernel-tap flip, transpose to [K, C_in, C_out], zero-pad channels to the
    lane width, and cast the matmul weights to bf16."""
    max_c = max(max(p["w"].shape[0], p["w"].shape[1]) for p in params)
    c_pad = _round_up(max(max_c, _LANE), _LANE)
    packed = []
    for cfg, p in zip(cfgs, params):
        w = p["w"]
        c_in, c_out, K = w.shape
        # correlation form: tap k multiplies x_up_pad[lo + k] by w[:, :, K-1-k]
        wt = jnp.transpose(w[:, :, ::-1], (2, 0, 1))               # [K, C_in, C_out]
        wt = jnp.pad(wt, ((0, 0), (0, c_pad - c_in), (0, c_pad - c_out)))
        g = jnp.pad(p["gamma"], (0, c_pad - c_out)).reshape(1, c_pad)
        b = jnp.pad(p["beta"], (0, c_pad - c_out)).reshape(1, c_pad)
        packed.append(dict(w=wt.astype(jnp.bfloat16),
                           gamma=g.astype(jnp.float32),
                           beta=b.astype(jnp.float32)))
    return packed


# --------------------------------------------------------------------------
# Independent f32 reference with PyTorch ConvTranspose1d / BatchNorm semantics
# --------------------------------------------------------------------------
def _conv_transpose1d_ref(x, w, stride, padding, bias=None):
    """Direct scatter-add definition of PyTorch ConvTranspose1d."""
    B, c_in, L = x.shape
    _, c_out, K = w.shape
    L_full = (L - 1) * stride + K
    out = jnp.zeros((B, c_out, L_full), jnp.float32)
    for li in range(L):
        contrib = jnp.einsum('bc,cok->bok', x[:, :, li], w)
        out = out.at[:, :, li * stride: li * stride + K].add(contrib)
    if padding > 0:
        out = out[:, :, padding:L_full - padding]
    if bias is not None:
        out = out + bias[None, :, None]
    return out


def generator_forward_reference(x, cfgs, params, m=None, eps=1e-5):
    h = x[:, :, 0, :].astype(jnp.float32)
    for cfg, p in zip(cfgs, params):
        bias = p["beta"] if cfg["mode"] == "bias" else None
        h = _conv_transpose1d_ref(h, p["w"], cfg["stride"], cfg["padding"], bias)
        if cfg["mode"] in ("bn", "bn_relu"):
            mean = h.mean(axis=(0, 2), keepdims=True)
            var = jnp.square(h - mean).mean(axis=(0, 2), keepdims=True)
            h = ((h - mean) * jax.lax.rsqrt(var + eps)
                 * p["gamma"][None, :, None] + p["beta"][None, :, None])
            if cfg["mode"] == "bn_relu":
                h = jnp.maximum(h, 0.0)
    out = h[:, :, None, :]
    if m is not None:
        out = out * m
    return out


# --------------------------------------------------------------------------
if __name__ == "__main__":
    # Config consistent with the module's shape logic:
    #   n_layers = log2(window_size) = 4; latent length 1 -> 4 -> 8 -> 16 -> 16.
    window_size, hidden_multiplier, latent_size = 16, 8, 8
    n_channels, max_filters, kernel_multiplier = 4, 32, 1
    B, L_in = 2, 1

    key = jax.random.PRNGKey(0)
    k_param, k_x = jax.random.split(key)
    cfgs, shapes = make_generator_config(window_size, hidden_multiplier,
                                         latent_size, n_channels, max_filters,
                                         kernel_multiplier)
    params = make_generator_params(k_param, cfgs, shapes)
    packed = pack_generator_params(cfgs, params)     # one-time weight re-layout
    x = jax.random.normal(k_x, (B, latent_size, 1, L_in), jnp.float32)

    fwd = jax.jit(lambda x_, packed_: generator_forward_pallas(
        x_, cfgs, packed_, n_channels))
    out = jax.block_until_ready(fwd(x, packed))

    ref = generator_forward_reference(x, cfgs, params)
    assert out.shape == (B, n_channels, 1, window_size), out.shape
    # Tolerance covers bf16 matmul operands (accumulation / BN / ReLU are f32)
    # compared against a pure-f32 PyTorch-semantics reference; a real lowering
    # bug (wrong flip / pad / stride) would produce O(1) errors.
    np.testing.assert_allclose(np.asarray(out), np.asarray(ref),
                               rtol=3e-2, atol=3e-2)
    print("KERNEL_OK")
</pallas_src>

<mosaic_0001>
module attributes {stable_mosaic.version = 11 : i64} {
  func.func @_generator_fused_kernel(%arg0: i32, %arg1: memref<2x1x128xf32, #tpu.memory_space<vmem>>, %arg2: memref<4x128x128xbf16, #tpu.memory_space<vmem>>, %arg3: memref<4x128x128xbf16, #tpu.memory_space<vmem>>, %arg4: memref<4x128x128xbf16, #tpu.memory_space<vmem>>, %arg5: memref<3x128x128xbf16, #tpu.memory_space<vmem>>, %arg6: memref<1x128xf32, #tpu.memory_space<vmem>>, %arg7: memref<1x128xf32, #tpu.memory_space<vmem>>, %arg8: memref<1x128xf32, #tpu.memory_space<vmem>>, %arg9: memref<1x128xf32, #tpu.memory_space<vmem>>, %arg10: memref<1x128xf32, #tpu.memory_space<vmem>>, %arg11: memref<1x128xf32, #tpu.memory_space<vmem>>, %arg12: memref<1x128xf32, #tpu.memory_space<vmem>>, %arg13: memref<1x128xf32, #tpu.memory_space<vmem>>, %arg14: memref<2x16x128xf32, #tpu.memory_space<vmem>>, %arg15: memref<2x7x128xf32, #tpu.memory_space<vmem>>, %arg16: memref<2x11x128xf32, #tpu.memory_space<vmem>>, %arg17: memref<2x19x128xf32, #tpu.memory_space<vmem>>, %arg18: memref<2x18x128xf32, #tpu.memory_space<vmem>>) attributes {dimension_semantics = [#tpu.dimension_semantics<arbitrary>], iteration_bounds = array<i64: 1>, scalar_prefetch = 0 : i64, scratch_operands = 4 : i64, tpu.core_type = #tpu.core_type<tc>, window_params = [{pipeline_mode = #tpu.pipeline_mode<synchronous>, transform_indices = @transform_0, window_bounds = array<i64: 2, 1, 128>}, {pipeline_mode = #tpu.pipeline_mode<synchronous>, transform_indices = @transform_1, window_bounds = array<i64: 4, 128, 128>}, {pipeline_mode = #tpu.pipeline_mode<synchronous>, transform_indices = @transform_2, window_bounds = array<i64: 4, 128, 128>}, {pipeline_mode = #tpu.pipeline_mode<synchronous>, transform_indices = @transform_3, window_bounds = array<i64: 4, 128, 128>}, {pipeline_mode = #tpu.pipeline_mode<synchronous>, transform_indices = @transform_4, window_bounds = array<i64: 3, 128, 128>}, {pipeline_mode = #tpu.pipeline_mode<synchronous>, transform_indices = @transform_5, window_bounds = array<i64: 1, 128>}, {pipeline_mode = #tpu.pipeline_mode<synchronous>, transform_indices = @transform_6, window_bounds = array<i64: 1, 128>}, {pipeline_mode = #tpu.pipeline_mode<synchronous>, transform_indices = @transform_7, window_bounds = array<i64: 1, 128>}, {pipeline_mode = #tpu.pipeline_mode<synchronous>, transform_indices = @transform_8, window_bounds = array<i64: 1, 128>}, {pipeline_mode = #tpu.pipeline_mode<synchronous>, transform_indices = @transform_9, window_bounds = array<i64: 1, 128>}, {pipeline_mode = #tpu.pipeline_mode<synchronous>, transform_indices = @transform_10, window_bounds = array<i64: 1, 128>}, {pipeline_mode = #tpu.pipeline_mode<synchronous>, transform_indices = @transform_11, window_bounds = array<i64: 1, 128>}, {pipeline_mode = #tpu.pipeline_mode<synchronous>, transform_indices = @transform_12, window_bounds = array<i64: 1, 128>}, {pipeline_mode = #tpu.pipeline_mode<synchronous>, transform_indices = @transform_13, window_bounds = array<i64: 2, 16, 128>}]} {
    %cst = arith.constant 0.000000e+00 : f32
    %0 = vector.broadcast %cst : f32 to vector<2x7x128xf32>
    %c0 = arith.constant 0 : index
    %c0_0 = arith.constant 0 : index
    %c0_1 = arith.constant 0 : index
    %1 = vector.load %arg15[%c0, %c0_0, %c0_1] : memref<2x7x128xf32, #tpu.memory_space<vmem>>, vector<2x7x128xf32>
    tpu.vector_store %arg15[%c0, %c0_0, %c0_1], %0 {strides = array<i32>} : memref<2x7x128xf32, #tpu.memory_space<vmem>>, vector<2x7x128xf32>,
    %c0_2 = arith.constant 0 : index
    %c0_3 = arith.constant 0 : index
    %c0_4 = arith.constant 0 : index
    %2 = vector.load %arg1[%c0_2, %c0_3, %c0_4] : memref<2x1x128xf32, #tpu.memory_space<vmem>>, vector<1x1x128xf32>
    %3 = vector.shape_cast %2 : vector<1x1x128xf32> to vector<1x128xf32>
    %c0_5 = arith.constant 0 : index
    %c3 = arith.constant 3 : index
    %c0_6 = arith.constant 0 : index
    %4 = vector.load %arg15[%c0_5, %c3, %c0_6] : memref<2x7x128xf32, #tpu.memory_space<vmem>>, vector<1x1x128xf32>
    %5 = vector.shape_cast %4 : vector<1x1x128xf32> to vector<1x128xf32>
    %6 = vector.shape_cast %3 : vector<1x128xf32> to vector<1x1x128xf32>
    tpu.vector_store %arg15[%c0_5, %c3, %c0_6], %6 {strides = array<i32>} : memref<2x7x128xf32, #tpu.memory_space<vmem>>, vector<1x1x128xf32>,
    %c1 = arith.constant 1 : index
    %c0_7 = arith.constant 0 : index
    %c0_8 = arith.constant 0 : index
    %7 = vector.load %arg1[%c1, %c0_7, %c0_8] : memref<2x1x128xf32, #tpu.memory_space<vmem>>, vector<1x1x128xf32>
    %8 = vector.shape_cast %7 : vector<1x1x128xf32> to vector<1x128xf32>
    %c1_9 = arith.constant 1 : index
    %c3_10 = arith.constant 3 : index
    %c0_11 = arith.constant 0 : index
    %9 = vector.load %arg15[%c1_9, %c3_10, %c0_11] : memref<2x7x128xf32, #tpu.memory_space<vmem>>, vector<1x1x128xf32>
    %10 = vector.shape_cast %9 : vector<1x1x128xf32> to vector<1x128xf32>
    %11 = vector.shape_cast %8 : vector<1x128xf32> to vector<1x1x128xf32>
    tpu.vector_store %arg15[%c1_9, %c3_10, %c0_11], %11 {strides = array<i32>} : memref<2x7x128xf32, #tpu.memory_space<vmem>>, vector<1x1x128xf32>,
    %c0_12 = arith.constant 0 : index
    %c0_13 = arith.constant 0 : index
    %c0_14 = arith.constant 0 : index
    %12 = vector.load %arg2[%c0_12, %c0_13, %c0_14] : memref<4x128x128xbf16, #tpu.memory_space<vmem>>, vector<1x128x128xbf16>
    %13 = vector.shape_cast %12 : vector<1x128x128xbf16> to vector<128x128xbf16>
    %c1_15 = arith.constant 1 : index
    %c0_16 = arith.constant 0 : index
    %c0_17 = arith.constant 0 : index
    %14 = vector.load %arg2[%c1_15, %c0_16, %c0_17] : memref<4x128x128xbf16, #tpu.memory_space<vmem>>, vector<1x128x128xbf16>
    %15 = vector.shape_cast %14 : vector<1x128x128xbf16> to vector<128x128xbf16>
    %c2 = arith.constant 2 : index
    %c0_18 = arith.constant 0 : index
    %c0_19 = arith.constant 0 : index
    %16 = vector.load %arg2[%c2, %c0_18, %c0_19] : memref<4x128x128xbf16, #tpu.memory_space<vmem>>, vector<1x128x128xbf16>
    %17 = vector.shape_cast %16 : vector<1x128x128xbf16> to vector<128x128xbf16>
    %c3_20 = arith.constant 3 : index
    %c0_21 = arith.constant 0 : index
    %c0_22 = arith.constant 0 : index
    %18 = vector.load %arg2[%c3_20, %c0_21, %c0_22] : memref<4x128x128xbf16, #tpu.memory_space<vmem>>, vector<1x128x128xbf16>
    %19 = vector.shape_cast %18 : vector<1x128x128xbf16> to vector<128x128xbf16>
    %cst_23 = arith.constant 0.000000e+00 : f32
    %20 = vector.broadcast %cst_23 : f32 to vector<4x128xf32>
    %c0_24 = arith.constant 0 : index
    %c0_25 = arith.constant 0 : index
    %c0_26 = arith.constant 0 : index
    %21 = vector.load %arg15[%c0_24, %c0_25, %c0_26] : memref<2x7x128xf32, #tpu.memory_space<vmem>>, vector<1x4x128xf32>
    %22 = vector.shape_cast %21 : vector<1x4x128xf32> to vector<4x128xf32>
    %23 = arith.truncf %22 : vector<4x128xf32> to vector<4x128xbf16>
    %cst_27 = arith.constant dense<0.000000e+00> : vector<4x128xf32>
    %24 = tpu.matmul %23, %13, %cst_27 {dimension_numbers = #tpu.dot_dimension_numbers<[1], [0], [0], [1], [0, 0, 1, 1], [], []>} : vector<4x128xbf16>, vector<128x128xbf16>, vector<4x128xf32> -> vector<4x128xf32>
    %25 = arith.addf %20, %24 : vector<4x128xf32>
    %c0_28 = arith.constant 0 : index
    %c1_29 = arith.constant 1 : index
    %c0_30 = arith.constant 0 : index
    %26 = vector.load %arg15[%c0_28, %c1_29, %c0_30] : memref<2x7x128xf32, #tpu.memory_space<vmem>>, vector<1x4x128xf32>
    %27 = vector.shape_cast %26 : vector<1x4x128xf32> to vector<4x128xf32>
    %28 = arith.truncf %27 : vector<4x128xf32> to vector<4x128xbf16>
    %cst_31 = arith.constant dense<0.000000e+00> : vector<4x128xf32>
    %29 = tpu.matmul %28, %15, %cst_31 {dimension_numbers = #tpu.dot_dimension_numbers<[1], [0], [0], [1], [0, 0, 1, 1], [], []>} : vector<4x128xbf16>, vector<128x128xbf16>, vector<4x128xf32> -> vector<4x128xf32>
    %30 = arith.addf %25, %29 : vector<4x128xf32>
    %c0_32 = arith.constant 0 : index
    %c2_33 = arith.constant 2 : index
    %c0_34 = arith.constant 0 : index
    %31 = vector.load %arg15[%c0_32, %c2_33, %c0_34] : memref<2x7x128xf32, #tpu.memory_space<vmem>>, vector<1x4x128xf32>
    %32 = vector.shape_cast %31 : vector<1x4x128xf32> to vector<4x128xf32>
    %33 = arith.truncf %32 : vector<4x128xf32> to vector<4x128xbf16>
    %cst_35 = arith.constant dense<0.000000e+00> : vector<4x128xf32>
    %34 = tpu.matmul %33, %17, %cst_35 {dimension_numbers = #tpu.dot_dimension_numbers<[1], [0], [0], [1], [0, 0, 1, 1], [], []>} : vector<4x128xbf16>, vector<128x128xbf16>, vector<4x128xf32> -> vector<4x128xf32>
    %35 = arith.addf %30, %34 : vector<4x128xf32>
    %c0_36 = arith.constant 0 : index
    %c3_37 = arith.constant 3 : index
    %c0_38 = arith.constant 0 : index
    %36 = vector.load %arg15[%c0_36, %c3_37, %c0_38] : memref<2x7x128xf32, #tpu.memory_space<vmem>>, vector<1x4x128xf32>
    %37 = vector.shape_cast %36 : vector<1x4x128xf32> to vector<4x128xf32>
    %38 = arith.truncf %37 : vector<4x128xf32> to vector<4x128xbf16>
    %cst_39 = arith.constant dense<0.000000e+00> : vector<4x128xf32>
    %39 = tpu.matmul %38, %19, %cst_39 {dimension_numbers = #tpu.dot_dimension_numbers<[1], [0], [0], [1], [0, 0, 1, 1], [], []>} : vector<4x128xbf16>, vector<128x128xbf16>, vector<4x128xf32> -> vector<4x128xf32>
    %40 = arith.addf %35, %39 : vector<4x128xf32>
    %cst_40 = arith.constant 0.000000e+00 : f32
    %41 = vector.broadcast %cst_40 : f32 to vector<4x128xf32>
    %c1_41 = arith.constant 1 : index
    %c0_42 = arith.constant 0 : index
    %c0_43 = arith.constant 0 : index
    %42 = vector.load %arg15[%c1_41, %c0_42, %c0_43] : memref<2x7x128xf32, #tpu.memory_space<vmem>>, vector<1x4x128xf32>
    %43 = vector.shape_cast %42 : vector<1x4x128xf32> to vector<4x128xf32>
    %44 = arith.truncf %43 : vector<4x128xf32> to vector<4x128xbf16>
    %cst_44 = arith.constant dense<0.000000e+00> : vector<4x128xf32>
    %45 = tpu.matmul %44, %13, %cst_44 {dimension_numbers = #tpu.dot_dimension_numbers<[1], [0], [0], [1], [0, 0, 1, 1], [], []>} : vector<4x128xbf16>, vector<128x128xbf16>, vector<4x128xf32> -> vector<4x128xf32>
    %46 = arith.addf %41, %45 : vector<4x128xf32>
    %c1_45 = arith.constant 1 : index
    %c1_46 = arith.constant 1 : index
    %c0_47 = arith.constant 0 : index
    %47 = vector.load %arg15[%c1_45, %c1_46, %c0_47] : memref<2x7x128xf32, #tpu.memory_space<vmem>>, vector<1x4x128xf32>
    %48 = vector.shape_cast %47 : vector<1x4x128xf32> to vector<4x128xf32>
    %49 = arith.truncf %48 : vector<4x128xf32> to vector<4x128xbf16>
    %cst_48 = arith.constant dense<0.000000e+00> : vector<4x128xf32>
    %50 = tpu.matmul %49, %15, %cst_48 {dimension_numbers = #tpu.dot_dimension_numbers<[1], [0], [0], [1], [0, 0, 1, 1], [], []>} : vector<4x128xbf16>, vector<128x128xbf16>, vector<4x128xf32> -> vector<4x128xf32>
    %51 = arith.addf %46, %50 : vector<4x128xf32>
    %c1_49 = arith.constant 1 : index
    %c2_50 = arith.constant 2 : index
    %c0_51 = arith.constant 0 : index
    %52 = vector.load %arg15[%c1_49, %c2_50, %c0_51] : memref<2x7x128xf32, #tpu.memory_space<vmem>>, vector<1x4x128xf32>
    %53 = vector.shape_cast %52 : vector<1x4x128xf32> to vector<4x128xf32>
    %54 = arith.truncf %53 : vector<4x128xf32> to vector<4x128xbf16>
    %cst_52 = arith.constant dense<0.000000e+00> : vector<4x128xf32>
    %55 = tpu.matmul %54, %17, %cst_52 {dimension_numbers = #tpu.dot_dimension_numbers<[1], [0], [0], [1], [0, 0, 1, 1], [], []>} : vector<4x128xbf16>, vector<128x128xbf16>, vector<4x128xf32> -> vector<4x128xf32>
    %56 = arith.addf %51, %55 : vector<4x128xf32>
    %c1_53 = arith.constant 1 : index
    %c3_54 = arith.constant 3 : index
    %c0_55 = arith.constant 0 : index
    %57 = vector.load %arg15[%c1_53, %c3_54, %c0_55] : memref<2x7x128xf32, #tpu.memory_space<vmem>>, vector<1x4x128xf32>
    %58 = vector.shape_cast %57 : vector<1x4x128xf32> to vector<4x128xf32>
    %59 = arith.truncf %58 : vector<4x128xf32> to vector<4x128xbf16>
    %cst_56 = arith.constant dense<0.000000e+00> : vector<4x128xf32>
    %60 = tpu.matmul %59, %19, %cst_56 {dimension_numbers = #tpu.dot_dimension_numbers<[1], [0], [0], [1], [0, 0, 1, 1], [], []>} : vector<4x128xbf16>, vector<128x128xbf16>, vector<4x128xf32> -> vector<4x128xf32>
    %61 = arith.addf %56, %60 : vector<4x128xf32>
    %cst_57 = arith.constant dense<0.000000e+00> : vector<128xf32>
    %62 = vector.multi_reduction <add>, %40, %cst_57 [0] : vector<4x128xf32> to vector<128xf32>
    %63 = vector.shape_cast %62 : vector<128xf32> to vector<1x128xf32>
    %cst_58 = arith.constant dense<0.000000e+00> : vector<128xf32>
    %64 = vector.multi_reduction <add>, %61, %cst_58 [0] : vector<4x128xf32> to vector<128xf32>
    %65 = vector.shape_cast %64 : vector<128xf32> to vector<1x128xf32>
    %66 = arith.addf %63, %65 : vector<1x128xf32>
    %cst_59 = arith.constant 1.250000e-01 : f32
    %67 = vector.broadcast %cst_59 : f32 to vector<1x128xf32>
    %68 = arith.mulf %66, %67 : vector<1x128xf32>
    %69 = vector.broadcast %68 : vector<1x128xf32> to vector<4x128xf32>
    %70 = arith.subf %40, %69 : vector<4x128xf32>
    %71 = arith.mulf %70, %70 : vector<4x128xf32>
    %cst_60 = arith.constant dense<0.000000e+00> : vector<128xf32>
    %72 = vector.multi_reduction <add>, %71, %cst_60 [0] : vector<4x128xf32> to vector<128xf32>
    %73 = vector.shape_cast %72 : vector<128xf32> to vector<1x128xf32>
    %74 = vector.broadcast %68 : vector<1x128xf32> to vector<4x128xf32>
    %75 = arith.subf %61, %74 : vector<4x128xf32>
    %76 = arith.mulf %75, %75 : vector<4x128xf32>
    %cst_61 = arith.constant dense<0.000000e+00> : vector<128xf32>
    %77 = vector.multi_reduction <add>, %76, %cst_61 [0] : vector<4x128xf32> to vector<128xf32>
    %78 = vector.shape_cast %77 : vector<128xf32> to vector<1x128xf32>
    %79 = arith.addf %73, %78 : vector<1x128xf32>
    %cst_62 = arith.constant 1.250000e-01 : f32
    %80 = vector.broadcast %cst_62 : f32 to vector<1x128xf32>
    %81 = arith.mulf %79, %80 : vector<1x128xf32>
    %cst_63 = arith.constant 9.99999974E-6 : f32
    %82 = vector.broadcast %cst_63 : f32 to vector<1x128xf32>
    %83 = arith.addf %81, %82 : vector<1x128xf32>
    %84 = math.rsqrt %83 : vector<1x128xf32>
    %c0_64 = arith.constant 0 : index
    %c0_65 = arith.constant 0 : index
    %85 = vector.load %arg6[%c0_64, %c0_65] : memref<1x128xf32, #tpu.memory_space<vmem>>, vector<1x128xf32>
    %86 = arith.mulf %84, %85 : vector<1x128xf32>
    %c0_66 = arith.constant 0 : index
    %c0_67 = arith.constant 0 : index
    %87 = vector.load %arg10[%c0_66, %c0_67] : memref<1x128xf32, #tpu.memory_space<vmem>>, vector<1x128xf32>
    %88 = arith.mulf %68, %86 : vector<1x128xf32>
    %89 = arith.subf %87, %88 : vector<1x128xf32>
    %cst_68 = arith.constant 0.000000e+00 : f32
    %90 = vector.broadcast %cst_68 : f32 to vector<2x11x128xf32>
    %c0_69 = arith.constant 0 : index
    %c0_70 = arith.constant 0 : index
    %c0_71 = arith.constant 0 : index
    %91 = vector.load %arg16[%c0_69, %c0_70, %c0_71] : memref<2x11x128xf32, #tpu.memory_space<vmem>>, vector<2x11x128xf32>
    tpu.vector_store %arg16[%c0_69, %c0_70, %c0_71], %90 {strides = array<i32>} : memref<2x11x128xf32, #tpu.memory_space<vmem>>, vector<2x11x128xf32>,
    %92 = vector.broadcast %86 : vector<1x128xf32> to vector<4x128xf32>
    %93 = arith.mulf %40, %92 : vector<4x128xf32>
    %94 = vector.broadcast %89 : vector<1x128xf32> to vector<4x128xf32>
    %95 = arith.addf %93, %94 : vector<4x128xf32>
    %96 = vector.extract_strided_slice %95 {offsets = [0, 0], sizes = [1, 128], strides = [1, 1]} : vector<4x128xf32> to vector<1x128xf32>
    %c0_72 = arith.constant 0 : index
    %c2_73 = arith.constant 2 : index
    %c0_74 = arith.constant 0 : index
    %97 = vector.load %arg16[%c0_72, %c2_73, %c0_74] : memref<2x11x128xf32, #tpu.memory_space<vmem>>, vector<1x1x128xf32>
    %98 = vector.shape_cast %97 : vector<1x1x128xf32> to vector<1x128xf32>
    %99 = vector.shape_cast %96 : vector<1x128xf32> to vector<1x1x128xf32>
    tpu.vector_store %arg16[%c0_72, %c2_73, %c0_74], %99 {strides = array<i32>} : memref<2x11x128xf32, #tpu.memory_space<vmem>>, vector<1x1x128xf32>,
    %100 = vector.extract_strided_slice %95 {offsets = [1, 0], sizes = [1, 128], strides = [1, 1]} : vector<4x128xf32> to vector<1x128xf32>
    %c0_75 = arith.constant 0 : index
    %c4 = arith.constant 4 : index
    %c0_76 = arith.constant 0 : index
    %101 = vector.load %arg16[%c0_75, %c4, %c0_76] : memref<2x11x128xf32, #tpu.memory_space<vmem>>, vector<1x1x128xf32>
    %102 = vector.shape_cast %101 : vector<1x1x128xf32> to vector<1x128xf32>
    %103 = vector.shape_cast %100 : vector<1x128xf32> to vector<1x1x128xf32>
    tpu.vector_store %arg16[%c0_75, %c4, %c0_76], %103 {strides = array<i32>} : memref<2x11x128xf32, #tpu.memory_space<vmem>>, vector<1x1x128xf32>,
    %104 = vector.extract_strided_slice %95 {offsets = [2, 0], sizes = [1, 128], strides = [1, 1]} : vector<4x128xf32> to vector<1x128xf32>
    %c0_77 = arith.constant 0 : index
    %c6 = arith.constant 6 : index
    %c0_78 = arith.constant 0 : index
    %105 = vector.load %arg16[%c0_77, %c6, %c0_78] : memref<2x11x128xf32, #tpu.memory_space<vmem>>, vector<1x1x128xf32>
    %106 = vector.shape_cast %105 : vector<1x1x128xf32> to vector<1x128xf32>
    %107 = vector.shape_cast %104 : vector<1x128xf32> to vector<1x1x128xf32>
    tpu.vector_store %arg16[%c0_77, %c6, %c0_78], %107 {strides = array<i32>} : memref<2x11x128xf32, #tpu.memory_space<vmem>>, vector<1x1x128xf32>,
    %108 = vector.extract_strided_slice %95 {offsets = [3, 0], sizes = [1, 128], strides = [1, 1]} : vector<4x128xf32> to vector<1x128xf32>
    %c0_79 = arith.constant 0 : index
    %c8 = arith.constant 8 : index
    %c0_80 = arith.constant 0 : index
    %109 = vector.load %arg16[%c0_79, %c8, %c0_80] : memref<2x11x128xf32, #tpu.memory_space<vmem>>, vector<1x1x128xf32>
    %110 = vector.shape_cast %109 : vector<1x1x128xf32> to vector<1x128xf32>
    %111 = vector.shape_cast %108 : vector<1x128xf32> to vector<1x1x128xf32>
    tpu.vector_store %arg16[%c0_79, %c8, %c0_80], %111 {strides = array<i32>} : memref<2x11x128xf32, #tpu.memory_space<vmem>>, vector<1x1x128xf32>,
    %112 = vector.broadcast %86 : vector<1x128xf32> to vector<4x128xf32>
    %113 = arith.mulf %61, %112 : vector<4x128xf32>
    %114 = vector.broadcast %89 : vector<1x128xf32> to vector<4x128xf32>
    %115 = arith.addf %113, %114 : vector<4x128xf32>
    %116 = vector.extract_strided_slice %115 {offsets = [0, 0], sizes = [1, 128], strides = [1, 1]} : vector<4x128xf32> to vector<1x128xf32>
    %c1_81 = arith.constant 1 : index
    %c2_82 = arith.constant 2 : index
    %c0_83 = arith.constant 0 : index
    %117 = vector.load %arg16[%c1_81, %c2_82, %c0_83] : memref<2x11x128xf32, #tpu.memory_space<vmem>>, vector<1x1x128xf32>
    %118 = vector.shape_cast %117 : vector<1x1x128xf32> to vector<1x128xf32>
    %119 = vector.shape_cast %116 : vector<1x128xf32> to vector<1x1x128xf32>
    tpu.vector_store %arg16[%c1_81, %c2_82, %c0_83], %119 {strides = array<i32>} : memref<2x11x128xf32, #tpu.memory_space<vmem>>, vector<1x1x128xf32>,
    %120 = vector.extract_strided_slice %115 {offsets = [1, 0], sizes = [1, 128], strides = [1, 1]} : vector<4x128xf32> to vector<1x128xf32>
    %c1_84 = arith.constant 1 : index
    %c4_85 = arith.constant 4 : index
    %c0_86 = arith.constant 0 : index
    %121 = vector.load %arg16[%c1_84, %c4_85, %c0_86] : memref<2x11x128xf32, #tpu.memory_space<vmem>>, vector<1x1x128xf32>
    %122 = vector.shape_cast %121 : vector<1x1x128xf32> to vector<1x128xf32>
    %123 = vector.shape_cast %120 : vector<1x128xf32> to vector<1x1x128xf32>
    tpu.vector_store %arg16[%c1_84, %c4_85, %c0_86], %123 {strides = array<i32>} : memref<2x11x128xf32, #tpu.memory_space<vmem>>, vector<1x1x128xf32>,
    %124 = vector.extract_strided_slice %115 {offsets = [2, 0], sizes = [1, 128], strides = [1, 1]} : vector<4x128xf32> to vector<1x128xf32>
    %c1_87 = arith.constant 1 : index
    %c6_88 = arith.constant 6 : index
    %c0_89 = arith.constant 0 : index
    %125 = vector.load %arg16[%c1_87, %c6_88, %c0_89] : memref<2x11x128xf32, #tpu.memory_space<vmem>>, vector<1x1x128xf32>
    %126 = vector.shape_cast %125 : vector<1x1x128xf32> to vector<1x128xf32>
    %127 = vector.shape_cast %124 : vector<1x128xf32> to vector<1x1x128xf32>
    tpu.vector_store %arg16[%c1_87, %c6_88, %c0_89], %127 {strides = array<i32>} : memref<2x11x128xf32, #tpu.memory_space<vmem>>, vector<1x1x128xf32>,
    %128 = vector.extract_strided_slice %115 {offsets = [3, 0], sizes = [1, 128], strides = [1, 1]} : vector<4x128xf32> to vector<1x128xf32>
    %c1_90 = arith.constant 1 : index
    %c8_91 = arith.constant 8 : index
    %c0_92 = arith.constant 0 : index
    %129 = vector.load %arg16[%c1_90, %c8_91, %c0_92] : memref<2x11x128xf32, #tpu.memory_space<vmem>>, vector<1x1x128xf32>
    %130 = vector.shape_cast %129 : vector<1x1x128xf32> to vector<1x128xf32>
    %131 = vector.shape_cast %128 : vector<1x128xf32> to vector<1x1x128xf32>
    tpu.vector_store %arg16[%c1_90, %c8_91, %c0_92], %131 {strides = array<i32>} : memref<2x11x128xf32, #tpu.memory_space<vmem>>, vector<1x1x128xf32>,
    %c0_93 = arith.constant 0 : index
    %c0_94 = arith.constant 0 : index
    %c0_95 = arith.constant 0 : index
    %132 = vector.load %arg3[%c0_93, %c0_94, %c0_95] : memref<4x128x128xbf16, #tpu.memory_space<vmem>>, vector<1x128x128xbf16>
    %133 = vector.shape_cast %132 : vector<1x128x128xbf16> to vector<128x128xbf16>
    %c1_96 = arith.constant 1 : index
    %c0_97 = arith.constant 0 : index
    %c0_98 = arith.constant 0 : index
    %134 = vector.load %arg3[%c1_96, %c0_97, %c0_98] : memref<4x128x128xbf16, #tpu.memory_space<vmem>>, vector<1x128x128xbf16>
    %135 = vector.shape_cast %134 : vector<1x128x128xbf16> to vector<128x128xbf16>
    %c2_99 = arith.constant 2 : index
    %c0_100 = arith.constant 0 : index
    %c0_101 = arith.constant 0 : index
    %136 = vector.load %arg3[%c2_99, %c0_100, %c0_101] : memref<4x128x128xbf16, #tpu.memory_space<vmem>>, vector<1x128x128xbf16>
    %137 = vector.shape_cast %136 : vector<1x128x128xbf16> to vector<128x128xbf16>
    %c3_102 = arith.constant 3 : index
    %c0_103 = arith.constant 0 : index
    %c0_104 = arith.constant 0 : index
    %138 = vector.load %arg3[%c3_102, %c0_103, %c0_104] : memref<4x128x128xbf16, #tpu.memory_space<vmem>>, vector<1x128x128xbf16>
    %139 = vector.shape_cast %138 : vector<1x128x128xbf16> to vector<128x128xbf16>
    %cst_105 = arith.constant 0.000000e+00 : f32
    %140 = vector.broadcast %cst_105 : f32 to vector<8x128xf32>
    %c0_106 = arith.constant 0 : index
    %c0_107 = arith.constant 0 : index
    %c0_108 = arith.constant 0 : index
    %141 = vector.load %arg16[%c0_106, %c0_107, %c0_108] : memref<2x11x128xf32, #tpu.memory_space<vmem>>, vector<1x8x128xf32>
    %142 = vector.shape_cast %141 : vector<1x8x128xf32> to vector<8x128xf32>
    %143 = arith.truncf %142 : vector<8x128xf32> to vector<8x128xbf16>
    %cst_109 = arith.constant dense<0.000000e+00> : vector<8x128xf32>
    %144 = tpu.matmul %143, %133, %cst_109 {dimension_numbers = #tpu.dot_dimension_numbers<[1], [0], [0], [1], [0, 0, 1, 1], [], []>} : vector<8x128xbf16>, vector<128x128xbf16>, vector<8x128xf32> -> vector<8x128xf32>
    %145 = arith.addf %140, %144 : vector<8x128xf32>
    %c0_110 = arith.constant 0 : index
    %c1_111 = arith.constant 1 : index
    %c0_112 = arith.constant 0 : index
    %146 = vector.load %arg16[%c0_110, %c1_111, %c0_112] : memref<2x11x128xf32, #tpu.memory_space<vmem>>, vector<1x8x128xf32>
    %147 = vector.shape_cast %146 : vector<1x8x128xf32> to vector<8x128xf32>
    %148 = arith.truncf %147 : vector<8x128xf32> to vector<8x128xbf16>
    %cst_113 = arith.constant dense<0.000000e+00> : vector<8x128xf32>
    %149 = tpu.matmul %148, %135, %cst_113 {dimension_numbers = #tpu.dot_dimension_numbers<[1], [0], [0], [1], [0, 0, 1, 1], [], []>} : vector<8x128xbf16>, vector<128x128xbf16>, vector<8x128xf32> -> vector<8x128xf32>
    %150 = arith.addf %145, %149 : vector<8x128xf32>
    %c0_114 = arith.constant 0 : index
    %c2_115 = arith.constant 2 : index
    %c0_116 = arith.constant 0 : index
    %151 = vector.load %arg16[%c0_114, %c2_115, %c0_116] : memref<2x11x128xf32, #tpu.memory_space<vmem>>, vector<1x8x128xf32>
    %152 = vector.shape_cast %151 : vector<1x8x128xf32> to vector<8x128xf32>
    %153 = arith.truncf %152 : vector<8x128xf32> to vector<8x128xbf16>
    %cst_117 = arith.constant dense<0.000000e+00> : vector<8x128xf32>
    %154 = tpu.matmul %153, %137, %cst_117 {dimension_numbers = #tpu.dot_dimension_numbers<[1], [0], [0], [1], [0, 0, 1, 1], [], []>} : vector<8x128xbf16>, vector<128x128xbf16>, vector<8x128xf32> -> vector<8x128xf32>
    %155 = arith.addf %150, %154 : vector<8x128xf32>
    %c0_118 = arith.constant 0 : index
    %c3_119 = arith.constant 3 : index
    %c0_120 = arith.constant 0 : index
    %156 = vector.load %arg16[%c0_118, %c3_119, %c0_120] : memref<2x11x128xf32, #tpu.memory_space<vmem>>, vector<1x8x128xf32>
    %157 = vector.shape_cast %156 : vector<1x8x128xf32> to vector<8x128xf32>
    %158 = arith.truncf %157 : vector<8x128xf32> to vector<8x128xbf16>
    %cst_121 = arith.constant dense<0.000000e+00> : vector<8x128xf32>
    %159 = tpu.matmul %158, %139, %cst_121 {dimension_numbers = #tpu.dot_dimension_numbers<[1], [0], [0], [1], [0, 0, 1, 1], [], []>} : vector<8x128xbf16>, vector<128x128xbf16>, vector<8x128xf32> -> vector<8x128xf32>
    %160 = arith.addf %155, %159 : vector<8x128xf32>
    %cst_122 = arith.constant 0.000000e+00 : f32
    %161 = vector.broadcast %cst_122 : f32 to vector<8x128xf32>
    %c1_123 = arith.constant 1 : index
    %c0_124 = arith.constant 0 : index
    %c0_125 = arith.constant 0 : index
    %162 = vector.load %arg16[%c1_123, %c0_124, %c0_125] : memref<2x11x128xf32, #tpu.memory_space<vmem>>, vector<1x8x128xf32>
    %163 = vector.shape_cast %162 : vector<1x8x128xf32> to vector<8x128xf32>
    %164 = arith.truncf %163 : vector<8x128xf32> to vector<8x128xbf16>
    %cst_126 = arith.constant dense<0.000000e+00> : vector<8x128xf32>
    %165 = tpu.matmul %164, %133, %cst_126 {dimension_numbers = #tpu.dot_dimension_numbers<[1], [0], [0], [1], [0, 0, 1, 1], [], []>} : vector<8x128xbf16>, vector<128x128xbf16>, vector<8x128xf32> -> vector<8x128xf32>
    %166 = arith.addf %161, %165 : vector<8x128xf32>
    %c1_127 = arith.constant 1 : index
    %c1_128 = arith.constant 1 : index
    %c0_129 = arith.constant 0 : index
    %167 = vector.load %arg16[%c1_127, %c1_128, %c0_129] : memref<2x11x128xf32, #tpu.memory_space<vmem>>, vector<1x8x128xf32>
    %168 = vector.shape_cast %167 : vector<1x8x128xf32> to vector<8x128xf32>
    %169 = arith.truncf %168 : vector<8x128xf32> to vector<8x128xbf16>
    %cst_130 = arith.constant dense<0.000000e+00> : vector<8x128xf32>
    %170 = tpu.matmul %169, %135, %cst_130 {dimension_numbers = #tpu.dot_dimension_numbers<[1], [0], [0], [1], [0, 0, 1, 1], [], []>} : vector<8x128xbf16>, vector<128x128xbf16>, vector<8x128xf32> -> vector<8x128xf32>
    %171 = arith.addf %166, %170 : vector<8x128xf32>
    %c1_131 = arith.constant 1 : index
    %c2_132 = arith.constant 2 : index
    %c0_133 = arith.constant 0 : index
    %172 = vector.load %arg16[%c1_131, %c2_132, %c0_133] : memref<2x11x128xf32, #tpu.memory_space<vmem>>, vector<1x8x128xf32>
    %173 = vector.shape_cast %172 : vector<1x8x128xf32> to vector<8x128xf32>
    %174 = arith.truncf %173 : vector<8x128xf32> to vector<8x128xbf16>
    %cst_134 = arith.constant dense<0.000000e+00> : vector<8x128xf32>
    %175 = tpu.matmul %174, %137, %cst_134 {dimension_numbers = #tpu.dot_dimension_numbers<[1], [0], [0], [1], [0, 0, 1, 1], [], []>} : vector<8x128xbf16>, vector<128x128xbf16>, vector<8x128xf32> -> vector<8x128xf32>
    %176 = arith.addf %171, %175 : vector<8x128xf32>
    %c1_135 = arith.constant 1 : index
    %c3_136 = arith.constant 3 : index
    %c0_137 = arith.constant 0 : index
    %177 = vector.load %arg16[%c1_135, %c3_136, %c0_137] : memref<2x11x128xf32, #tpu.memory_space<vmem>>, vector<1x8x128xf32>
    %178 = vector.shape_cast %177 : vector<1x8x128xf32> to vector<8x128xf32>
    %179 = arith.truncf %178 : vector<8x128xf32> to vector<8x128xbf16>
    %cst_138 = arith.constant dense<0.000000e+00> : vector<8x128xf32>
    %180 = tpu.matmul %179, %139, %cst_138 {dimension_numbers = #tpu.dot_dimension_numbers<[1], [0], [0], [1], [0, 0, 1, 1], [], []>} : vector<8x128xbf16>, vector<128x128xbf16>, vector<8x128xf32> -> vector<8x128xf32>
    %181 = arith.addf %176, %180 : vector<8x128xf32>
    %cst_139 = arith.constant dense<0.000000e+00> : vector<128xf32>
    %182 = vector.multi_reduction <add>, %160, %cst_139 [0] : vector<8x128xf32> to vector<128xf32>
    %183 = vector.shape_cast %182 : vector<128xf32> to vector<1x128xf32>
    %cst_140 = arith.constant dense<0.000000e+00> : vector<128xf32>
    %184 = vector.multi_reduction <add>, %181, %cst_140 [0] : vector<8x128xf32> to vector<128xf32>
    %185 = vector.shape_cast %184 : vector<128xf32> to vector<1x128xf32>
    %186 = arith.addf %183, %185 : vector<1x128xf32>
    %cst_141 = arith.constant 6.250000e-02 : f32
    %187 = vector.broadcast %cst_141 : f32 to vector<1x128xf32>
    %188 = arith.mulf %186, %187 : vector<1x128xf32>
    %189 = vector.broadcast %188 : vector<1x128xf32> to vector<8x128xf32>
    %190 = arith.subf %160, %189 : vector<8x128xf32>
    %191 = arith.mulf %190, %190 : vector<8x128xf32>
    %cst_142 = arith.constant dense<0.000000e+00> : vector<128xf32>
    %192 = vector.multi_reduction <add>, %191, %cst_142 [0] : vector<8x128xf32> to vector<128xf32>
    %193 = vector.shape_cast %192 : vector<128xf32> to vector<1x128xf32>
    %194 = vector.broadcast %188 : vector<1x128xf32> to vector<8x128xf32>
    %195 = arith.subf %181, %194 : vector<8x128xf32>
    %196 = arith.mulf %195, %195 : vector<8x128xf32>
    %cst_143 = arith.constant dense<0.000000e+00> : vector<128xf32>
    %197 = vector.multi_reduction <add>, %196, %cst_143 [0] : vector<8x128xf32> to vector<128xf32>
    %198 = vector.shape_cast %197 : vector<128xf32> to vector<1x128xf32>
    %199 = arith.addf %193, %198 : vector<1x128xf32>
    %cst_144 = arith.constant 6.250000e-02 : f32
    %200 = vector.broadcast %cst_144 : f32 to vector<1x128xf32>
    %201 = arith.mulf %199, %200 : vector<1x128xf32>
    %cst_145 = arith.constant 9.99999974E-6 : f32
    %202 = vector.broadcast %cst_145 : f32 to vector<1x128xf32>
    %203 = arith.addf %201, %202 : vector<1x128xf32>
    %204 = math.rsqrt %203 : vector<1x128xf32>
    %c0_146 = arith.constant 0 : index
    %c0_147 = arith.constant 0 : index
    %205 = vector.load %arg7[%c0_146, %c0_147] : memref<1x128xf32, #tpu.memory_space<vmem>>, vector<1x128xf32>
    %206 = arith.mulf %204, %205 : vector<1x128xf32>
    %c0_148 = arith.constant 0 : index
    %c0_149 = arith.constant 0 : index
    %207 = vector.load %arg11[%c0_148, %c0_149] : memref<1x128xf32, #tpu.memory_space<vmem>>, vector<1x128xf32>
    %208 = arith.mulf %188, %206 : vector<1x128xf32>
    %209 = arith.subf %207, %208 : vector<1x128xf32>
    %cst_150 = arith.constant 0.000000e+00 : f32
    %210 = vector.broadcast %cst_150 : f32 to vector<2x19x128xf32>
    %c0_151 = arith.constant 0 : index
    %c0_152 = arith.constant 0 : index
    %c0_153 = arith.constant 0 : index
    %211 = vector.load %arg17[%c0_151, %c0_152, %c0_153] : memref<2x19x128xf32, #tpu.memory_space<vmem>>, vector<2x19x128xf32>
    tpu.vector_store %arg17[%c0_151, %c0_152, %c0_153], %210 {strides = array<i32>} : memref<2x19x128xf32, #tpu.memory_space<vmem>>, vector<2x19x128xf32>,
    %212 = vector.broadcast %206 : vector<1x128xf32> to vector<8x128xf32>
    %213 = arith.mulf %160, %212 : vector<8x128xf32>
    %214 = vector.broadcast %209 : vector<1x128xf32> to vector<8x128xf32>
    %215 = arith.addf %213, %214 : vector<8x128xf32>
    %cst_154 = arith.constant 0.000000e+00 : f32
    %216 = vector.broadcast %cst_154 : f32 to vector<8x128xf32>
    %217 = arith.maximumf %215, %216 : vector<8x128xf32>
    %218 = vector.extract_strided_slice %217 {offsets = [0, 0], sizes = [1, 128], strides = [1, 1]} : vector<8x128xf32> to vector<1x128xf32>
    %c0_155 = arith.constant 0 : index
    %c2_156 = arith.constant 2 : index
    %c0_157 = arith.constant 0 : index
    %219 = vector.load %arg17[%c0_155, %c2_156, %c0_157] : memref<2x19x128xf32, #tpu.memory_space<vmem>>, vector<1x1x128xf32>
    %220 = vector.shape_cast %219 : vector<1x1x128xf32> to vector<1x128xf32>
    %221 = vector.shape_cast %218 : vector<1x128xf32> to vector<1x1x128xf32>
    tpu.vector_store %arg17[%c0_155, %c2_156, %c0_157], %221 {strides = array<i32>} : memref<2x19x128xf32, #tpu.memory_space<vmem>>, vector<1x1x128xf32>,
    %222 = vector.extract_strided_slice %217 {offsets = [1, 0], sizes = [1, 128], strides = [1, 1]} : vector<8x128xf32> to vector<1x128xf32>
    %c0_158 = arith.constant 0 : index
    %c4_159 = arith.constant 4 : index
    %c0_160 = arith.constant 0 : index
    %223 = vector.load %arg17[%c0_158, %c4_159, %c0_160] : memref<2x19x128xf32, #tpu.memory_space<vmem>>, vector<1x1x128xf32>
    %224 = vector.shape_cast %223 : vector<1x1x128xf32> to vector<1x128xf32>
    %225 = vector.shape_cast %222 : vector<1x128xf32> to vector<1x1x128xf32>
    tpu.vector_store %arg17[%c0_158, %c4_159, %c0_160], %225 {strides = array<i32>} : memref<2x19x128xf32, #tpu.memory_space<vmem>>, vector<1x1x128xf32>,
    %226 = vector.extract_strided_slice %217 {offsets = [2, 0], sizes = [1, 128], strides = [1, 1]} : vector<8x128xf32> to vector<1x128xf32>
    %c0_161 = arith.constant 0 : index
    %c6_162 = arith.constant 6 : index
    %c0_163 = arith.constant 0 : index
    %227 = vector.load %arg17[%c0_161, %c6_162, %c0_163] : memref<2x19x128xf32, #tpu.memory_space<vmem>>, vector<1x1x128xf32>
    %228 = vector.shape_cast %227 : vector<1x1x128xf32> to vector<1x128xf32>
    %229 = vector.shape_cast %226 : vector<1x128xf32> to vector<1x1x128xf32>
    tpu.vector_store %arg17[%c0_161, %c6_162, %c0_163], %229 {strides = array<i32>} : memref<2x19x128xf32, #tpu.memory_space<vmem>>, vector<1x1x128xf32>,
    %230 = vector.extract_strided_slice %217 {offsets = [3, 0], sizes = [1, 128], strides = [1, 1]} : vector<8x128xf32> to vector<1x128xf32>
    %c0_164 = arith.constant 0 : index
    %c8_165 = arith.constant 8 : index
    %c0_166 = arith.constant 0 : index
    %231 = vector.load %arg17[%c0_164, %c8_165, %c0_166] : memref<2x19x128xf32, #tpu.memory_space<vmem>>, vector<1x1x128xf32>
    %232 = vector.shape_cast %231 : vector<1x1x128xf32> to vector<1x128xf32>
    %233 = vector.shape_cast %230 : vector<1x128xf32> to vector<1x1x128xf32>
    tpu.vector_store %arg17[%c0_164, %c8_165, %c0_166], %233 {strides = array<i32>} : memref<2x19x128xf32, #tpu.memory_space<vmem>>, vector<1x1x128xf32>,
    %234 = vector.extract_strided_slice %217 {offsets = [4, 0], sizes = [1, 128], strides = [1, 1]} : vector<8x128xf32> to vector<1x128xf32>
    %c0_167 = arith.constant 0 : index
    %c10 = arith.constant 10 : index
    %c0_168 = arith.constant 0 : index
    %235 = vector.load %arg17[%c0_167, %c10, %c0_168] : memref<2x19x128xf32, #tpu.memory_space<vmem>>, vector<1x1x128xf32>
    %236 = vector.shape_cast %235 : vector<1x1x128xf32> to vector<1x128xf32>
    %237 = vector.shape_cast %234 : vector<1x128xf32> to vector<1x1x128xf32>
    tpu.vector_store %arg17[%c0_167, %c10, %c0_168], %237 {strides = array<i32>} : memref<2x19x128xf32, #tpu.memory_space<vmem>>, vector<1x1x128xf32>,
    %238 = vector.extract_strided_slice %217 {offsets = [5, 0], sizes = [1, 128], strides = [1, 1]} : vector<8x128xf32> to vector<1x128xf32>
    %c0_169 = arith.constant 0 : index
    %c12 = arith.constant 12 : index
    %c0_170 = arith.constant 0 : index
    %239 = vector.load %arg17[%c0_169, %c12, %c0_170] : memref<2x19x128xf32, #tpu.memory_space<vmem>>, vector<1x1x128xf32>
    %240 = vector.shape_cast %239 : vector<1x1x128xf32> to vector<1x128xf32>
    %241 = vector.shape_cast %238 : vector<1x128xf32> to vector<1x1x128xf32>
    tpu.vector_store %arg17[%c0_169, %c12, %c0_170], %241 {strides = array<i32>} : memref<2x19x128xf32, #tpu.memory_space<vmem>>, vector<1x1x128xf32>,
    %242 = vector.extract_strided_slice %217 {offsets = [6, 0], sizes = [1, 128], strides = [1, 1]} : vector<8x128xf32> to vector<1x128xf32>
    %c0_171 = arith.constant 0 : index
    %c14 = arith.constant 14 : index
    %c0_172 = arith.constant 0 : index
    %243 = vector.load %arg17[%c0_171, %c14, %c0_172] : memref<2x19x128xf32, #tpu.memory_space<vmem>>, vector<1x1x128xf32>
    %244 = vector.shape_cast %243 : vector<1x1x128xf32> to vector<1x128xf32>
    %245 = vector.shape_cast %242 : vector<1x128xf32> to vector<1x1x128xf32>
    tpu.vector_store %arg17[%c0_171, %c14, %c0_172], %245 {strides = array<i32>} : memref<2x19x128xf32, #tpu.memory_space<vmem>>, vector<1x1x128xf32>,
    %246 = vector.extract_strided_slice %217 {offsets = [7, 0], sizes = [1, 128], strides = [1, 1]} : vector<8x128xf32> to vector<1x128xf32>
    %c0_173 = arith.constant 0 : index
    %c16 = arith.constant 16 : index
    %c0_174 = arith.constant 0 : index
    %247 = vector.load %arg17[%c0_173, %c16, %c0_174] : memref<2x19x128xf32, #tpu.memory_space<vmem>>, vector<1x1x128xf32>
    %248 = vector.shape_cast %247 : vector<1x1x128xf32> to vector<1x128xf32>
    %249 = vector.shape_cast %246 : vector<1x128xf32> to vector<1x1x128xf32>
    tpu.vector_store %arg17[%c0_173, %c16, %c0_174], %249 {strides = array<i32>} : memref<2x19x128xf32, #tpu.memory_space<vmem>>, vector<1x1x128xf32>,
    %250 = vector.broadcast %206 : vector<1x128xf32> to vector<8x128xf32>
    %251 = arith.mulf %181, %250 : vector<8x128xf32>
    %252 = vector.broadcast %209 : vector<1x128xf32> to vector<8x128xf32>
    %253 = arith.addf %251, %252 : vector<8x128xf32>
    %cst_175 = arith.constant 0.000000e+00 : f32
    %254 = vector.broadcast %cst_175 : f32 to vector<8x128xf32>
    %255 = arith.maximumf %253, %254 : vector<8x128xf32>
    %256 = vector.extract_strided_slice %255 {offsets = [0, 0], sizes = [1, 128], strides = [1, 1]} : vector<8x128xf32> to vector<1x128xf32>
    %c1_176 = arith.constant 1 : index
    %c2_177 = arith.constant 2 : index
    %c0_178 = arith.constant 0 : index
    %257 = vector.load %arg17[%c1_176, %c2_177, %c0_178] : memref<2x19x128xf32, #tpu.memory_space<vmem>>, vector<1x1x128xf32>
    %258 = vector.shape_cast %257 : vector<1x1x128xf32> to vector<1x128xf32>
    %259 = vector.shape_cast %256 : vector<1x128xf32> to vector<1x1x128xf32>
    tpu.vector_store %arg17[%c1_176, %c2_177, %c0_178], %259 {strides = array<i32>} : memref<2x19x128xf32, #tpu.memory_space<vmem>>, vector<1x1x128xf32>,
    %260 = vector.extract_strided_slice %255 {offsets = [1, 0], sizes = [1, 128], strides = [1, 1]} : vector<8x128xf32> to vector<1x128xf32>
    %c1_179 = arith.constant 1 : index
    %c4_180 = arith.constant 4 : index
    %c0_181 = arith.constant 0 : index
    %261 = vector.load %arg17[%c1_179, %c4_180, %c0_181] : memref<2x19x128xf32, #tpu.memory_space<vmem>>, vector<1x1x128xf32>
    %262 = vector.shape_cast %261 : vector<1x1x128xf32> to vector<1x128xf32>
    %263 = vector.shape_cast %260 : vector<1x128xf32> to vector<1x1x128xf32>
    tpu.vector_store %arg17[%c1_179, %c4_180, %c0_181], %263 {strides = array<i32>} : memref<2x19x128xf32, #tpu.memory_space<vmem>>, vector<1x1x128xf32>,
    %264 = vector.extract_strided_slice %255 {offsets = [2, 0], sizes = [1, 128], strides = [1, 1]} : vector<8x128xf32> to vector<1x128xf32>
    %c1_182 = arith.constant 1 : index
    %c6_183 = arith.constant 6 : index
    %c0_184 = arith.constant 0 : index
    %265 = vector.load %arg17[%c1_182, %c6_183, %c0_184] : memref<2x19x128xf32, #tpu.memory_space<vmem>>, vector<1x1x128xf32>
    %266 = vector.shape_cast %265 : vector<1x1x128xf32> to vector<1x128xf32>
    %267 = vector.shape_cast %264 : vector<1x128xf32> to vector<1x1x128xf32>
    tpu.vector_store %arg17[%c1_182, %c6_183, %c0_184], %267 {strides = array<i32>} : memref<2x19x128xf32, #tpu.memory_space<vmem>>, vector<1x1x128xf32>,
    %268 = vector.extract_strided_slice %255 {offsets = [3, 0], sizes = [1, 128], strides = [1, 1]} : vector<8x128xf32> to vector<1x128xf32>
    %c1_185 = arith.constant 1 : index
    %c8_186 = arith.constant 8 : index
    %c0_187 = arith.constant 0 : index
    %269 = vector.load %arg17[%c1_185, %c8_186, %c0_187] : memref<2x19x128xf32, #tpu.memory_space<vmem>>, vector<1x1x128xf32>
    %270 = vector.shape_cast %269 : vector<1x1x128xf32> to vector<1x128xf32>
    %271 = vector.shape_cast %268 : vector<1x128xf32> to vector<1x1x128xf32>
    tpu.vector_store %arg17[%c1_185, %c8_186, %c0_187], %271 {strides = array<i32>} : memref<2x19x128xf32, #tpu.memory_space<vmem>>, vector<1x1x128xf32>,
    %272 = vector.extract_strided_slice %255 {offsets = [4, 0], sizes = [1, 128], strides = [1, 1]} : vector<8x128xf32> to vector<1x128xf32>
    %c1_188 = arith.constant 1 : index
    %c10_189 = arith.constant 10 : index
    %c0_190 = arith.constant 0 : index
    %273 = vector.load %arg17[%c1_188, %c10_189, %c0_190] : memref<2x19x128xf32, #tpu.memory_space<vmem>>, vector<1x1x128xf32>
    %274 = vector.shape_cast %273 : vector<1x1x128xf32> to vector<1x128xf32>
    %275 = vector.shape_cast %272 : vector<1x128xf32> to vector<1x1x128xf32>
    tpu.vector_store %arg17[%c1_188, %c10_189, %c0_190], %275 {strides = array<i32>} : memref<2x19x128xf32, #tpu.memory_space<vmem>>, vector<1x1x128xf32>,
    %276 = vector.extract_strided_slice %255 {offsets = [5, 0], sizes = [1, 128], strides = [1, 1]} : vector<8x128xf32> to vector<1x128xf32>
    %c1_191 = arith.constant 1 : index
    %c12_192 = arith.constant 12 : index
    %c0_193 = arith.constant 0 : index
    %277 = vector.load %arg17[%c1_191, %c12_192, %c0_193] : memref<2x19x128xf32, #tpu.memory_space<vmem>>, vector<1x1x128xf32>
    %278 = vector.shape_cast %277 : vector<1x1x128xf32> to vector<1x128xf32>
    %279 = vector.shape_cast %276 : vector<1x128xf32> to vector<1x1x128xf32>
    tpu.vector_store %arg17[%c1_191, %c12_192, %c0_193], %279 {strides = array<i32>} : memref<2x19x128xf32, #tpu.memory_space<vmem>>, vector<1x1x128xf32>,
    %280 = vector.extract_strided_slice %255 {offsets = [6, 0], sizes = [1, 128], strides = [1, 1]} : vector<8x128xf32> to vector<1x128xf32>
    %c1_194 = arith.constant 1 : index
    %c14_195 = arith.constant 14 : index
    %c0_196 = arith.constant 0 : index
    %281 = vector.load %arg17[%c1_194, %c14_195, %c0_196] : memref<2x19x128xf32, #tpu.memory_space<vmem>>, vector<1x1x128xf32>
    %282 = vector.shape_cast %281 : vector<1x1x128xf32> to vector<1x128xf32>
    %283 = vector.shape_cast %280 : vector<1x128xf32> to vector<1x1x128xf32>
    tpu.vector_store %arg17[%c1_194, %c14_195, %c0_196], %283 {strides = array<i32>} : memref<2x19x128xf32, #tpu.memory_space<vmem>>, vector<1x1x128xf32>,
    %284 = vector.extract_strided_slice %255 {offsets = [7, 0], sizes = [1, 128], strides = [1, 1]} : vector<8x128xf32> to vector<1x128xf32>
    %c1_197 = arith.constant 1 : index
    %c16_198 = arith.constant 16 : index
    %c0_199 = arith.constant 0 : index
    %285 = vector.load %arg17[%c1_197, %c16_198, %c0_199] : memref<2x19x128xf32, #tpu.memory_space<vmem>>, vector<1x1x128xf32>
    %286 = vector.shape_cast %285 : vector<1x1x128xf32> to vector<1x128xf32>
    %287 = vector.shape_cast %284 : vector<1x128xf32> to vector<1x1x128xf32>
    tpu.vector_store %arg17[%c1_197, %c16_198, %c0_199], %287 {strides = array<i32>} : memref<2x19x128xf32, #tpu.memory_space<vmem>>, vector<1x1x128xf32>,
    %c0_200 = arith.constant 0 : index
    %c0_201 = arith.constant 0 : index
    %c0_202 = arith.constant 0 : index
    %288 = vector.load %arg4[%c0_200, %c0_201, %c0_202] : memref<4x128x128xbf16, #tpu.memory_space<vmem>>, vector<1x128x128xbf16>
    %289 = vector.shape_cast %288 : vector<1x128x128xbf16> to vector<128x128xbf16>
    %c1_203 = arith.constant 1 : index
    %c0_204 = arith.constant 0 : index
    %c0_205 = arith.constant 0 : index
    %290 = vector.load %arg4[%c1_203, %c0_204, %c0_205] : memref<4x128x128xbf16, #tpu.memory_space<vmem>>, vector<1x128x128xbf16>
    %291 = vector.shape_cast %290 : vector<1x128x128xbf16> to vector<128x128xbf16>
    %c2_206 = arith.constant 2 : index
    %c0_207 = arith.constant 0 : index
    %c0_208 = arith.constant 0 : index
    %292 = vector.load %arg4[%c2_206, %c0_207, %c0_208] : memref<4x128x128xbf16, #tpu.memory_space<vmem>>, vector<1x128x128xbf16>
    %293 = vector.shape_cast %292 : vector<1x128x128xbf16> to vector<128x128xbf16>
    %c3_209 = arith.constant 3 : index
    %c0_210 = arith.constant 0 : index
    %c0_211 = arith.constant 0 : index
    %294 = vector.load %arg4[%c3_209, %c0_210, %c0_211] : memref<4x128x128xbf16, #tpu.memory_space<vmem>>, vector<1x128x128xbf16>
    %295 = vector.shape_cast %294 : vector<1x128x128xbf16> to vector<128x128xbf16>
    %cst_212 = arith.constant 0.000000e+00 : f32
    %296 = vector.broadcast %cst_212 : f32 to vector<16x128xf32>
    %c0_213 = arith.constant 0 : index
    %c0_214 = arith.constant 0 : index
    %c0_215 = arith.constant 0 : index
    %297 = vector.load %arg17[%c0_213, %c0_214, %c0_215] : memref<2x19x128xf32, #tpu.memory_space<vmem>>, vector<1x16x128xf32>
    %298 = vector.shape_cast %297 : vector<1x16x128xf32> to vector<16x128xf32>
    %299 = arith.truncf %298 : vector<16x128xf32> to vector<16x128xbf16>
    %cst_216 = arith.constant dense<0.000000e+00> : vector<16x128xf32>
    %300 = tpu.matmul %299, %289, %cst_216 {dimension_numbers = #tpu.dot_dimension_numbers<[1], [0], [0], [1], [0, 0, 1, 1], [], []>} : vector<16x128xbf16>, vector<128x128xbf16>, vector<16x128xf32> -> vector<16x128xf32>
    %301 = arith.addf %296, %300 : vector<16x128xf32>
    %c0_217 = arith.constant 0 : index
    %c1_218 = arith.constant 1 : index
    %c0_219 = arith.constant 0 : index
    %302 = vector.load %arg17[%c0_217, %c1_218, %c0_219] : memref<2x19x128xf32, #tpu.memory_space<vmem>>, vector<1x16x128xf32>
    %303 = vector.shape_cast %302 : vector<1x16x128xf32> to vector<16x128xf32>
    %304 = arith.truncf %303 : vector<16x128xf32> to vector<16x128xbf16>
    %cst_220 = arith.constant dense<0.000000e+00> : vector<16x128xf32>
    %305 = tpu.matmul %304, %291, %cst_220 {dimension_numbers = #tpu.dot_dimension_numbers<[1], [0], [0], [1], [0, 0, 1, 1], [], []>} : vector<16x128xbf16>, vector<128x128xbf16>, vector<16x128xf32> -> vector<16x128xf32>
    %306 = arith.addf %301, %305 : vector<16x128xf32>
    %c0_221 = arith.constant 0 : index
    %c2_222 = arith.constant 2 : index
    %c0_223 = arith.constant 0 : index
    %307 = vector.load %arg17[%c0_221, %c2_222, %c0_223] : memref<2x19x128xf32, #tpu.memory_space<vmem>>, vector<1x16x128xf32>
    %308 = vector.shape_cast %307 : vector<1x16x128xf32> to vector<16x128xf32>
    %309 = arith.truncf %308 : vector<16x128xf32> to vector<16x128xbf16>
    %cst_224 = arith.constant dense<0.000000e+00> : vector<16x128xf32>
    %310 = tpu.matmul %309, %293, %cst_224 {dimension_numbers = #tpu.dot_dimension_numbers<[1], [0], [0], [1], [0, 0, 1, 1], [], []>} : vector<16x128xbf16>, vector<128x128xbf16>, vector<16x128xf32> -> vector<16x128xf32>
    %311 = arith.addf %306, %310 : vector<16x128xf32>
    %c0_225 = arith.constant 0 : index
    %c3_226 = arith.constant 3 : index
    %c0_227 = arith.constant 0 : index
    %312 = vector.load %arg17[%c0_225, %c3_226, %c0_227] : memref<2x19x128xf32, #tpu.memory_space<vmem>>, vector<1x16x128xf32>
    %313 = vector.shape_cast %312 : vector<1x16x128xf32> to vector<16x128xf32>
    %314 = arith.truncf %313 : vector<16x128xf32> to vector<16x128xbf16>
    %cst_228 = arith.constant dense<0.000000e+00> : vector<16x128xf32>
    %315 = tpu.matmul %314, %295, %cst_228 {dimension_numbers = #tpu.dot_dimension_numbers<[1], [0], [0], [1], [0, 0, 1, 1], [], []>} : vector<16x128xbf16>, vector<128x128xbf16>, vector<16x128xf32> -> vector<16x128xf32>
    %316 = arith.addf %311, %315 : vector<16x128xf32>
    %cst_229 = arith.constant 0.000000e+00 : f32
    %317 = vector.broadcast %cst_229 : f32 to vector<16x128xf32>
    %c1_230 = arith.constant 1 : index
    %c0_231 = arith.constant 0 : index
    %c0_232 = arith.constant 0 : index
    %318 = vector.load %arg17[%c1_230, %c0_231, %c0_232] : memref<2x19x128xf32, #tpu.memory_space<vmem>>, vector<1x16x128xf32>
    %319 = vector.shape_cast %318 : vector<1x16x128xf32> to vector<16x128xf32>
    %320 = arith.truncf %319 : vector<16x128xf32> to vector<16x128xbf16>
    %cst_233 = arith.constant dense<0.000000e+00> : vector<16x128xf32>
    %321 = tpu.matmul %320, %289, %cst_233 {dimension_numbers = #tpu.dot_dimension_numbers<[1], [0], [0], [1], [0, 0, 1, 1], [], []>} : vector<16x128xbf16>, vector<128x128xbf16>, vector<16x128xf32> -> vector<16x128xf32>
    %322 = arith.addf %317, %321 : vector<16x128xf32>
    %c1_234 = arith.constant 1 : index
    %c1_235 = arith.constant 1 : index
    %c0_236 = arith.constant 0 : index
    %323 = vector.load %arg17[%c1_234, %c1_235, %c0_236] : memref<2x19x128xf32, #tpu.memory_space<vmem>>, vector<1x16x128xf32>
    %324 = vector.shape_cast %323 : vector<1x16x128xf32> to vector<16x128xf32>
    %325 = arith.truncf %324 : vector<16x128xf32> to vector<16x128xbf16>
    %cst_237 = arith.constant dense<0.000000e+00> : vector<16x128xf32>
    %326 = tpu.matmul %325, %291, %cst_237 {dimension_numbers = #tpu.dot_dimension_numbers<[1], [0], [0], [1], [0, 0, 1, 1], [], []>} : vector<16x128xbf16>, vector<128x128xbf16>, vector<16x128xf32> -> vector<16x128xf32>
    %327 = arith.addf %322, %326 : vector<16x128xf32>
    %c1_238 = arith.constant 1 : index
    %c2_239 = arith.constant 2 : index
    %c0_240 = arith.constant 0 : index
    %328 = vector.load %arg17[%c1_238, %c2_239, %c0_240] : memref<2x19x128xf32, #tpu.memory_space<vmem>>, vector<1x16x128xf32>
    %329 = vector.shape_cast %328 : vector<1x16x128xf32> to vector<16x128xf32>
    %330 = arith.truncf %329 : vector<16x128xf32> to vector<16x128xbf16>
    %cst_241 = arith.constant dense<0.000000e+00> : vector<16x128xf32>
    %331 = tpu.matmul %330, %293, %cst_241 {dimension_numbers = #tpu.dot_dimension_numbers<[1], [0], [0], [1], [0, 0, 1, 1], [], []>} : vector<16x128xbf16>, vector<128x128xbf16>, vector<16x128xf32> -> vector<16x128xf32>
    %332 = arith.addf %327, %331 : vector<16x128xf32>
    %c1_242 = arith.constant 1 : index
    %c3_243 = arith.constant 3 : index
    %c0_244 = arith.constant 0 : index
    %333 = vector.load %arg17[%c1_242, %c3_243, %c0_244] : memref<2x19x128xf32, #tpu.memory_space<vmem>>, vector<1x16x128xf32>
    %334 = vector.shape_cast %333 : vector<1x16x128xf32> to vector<16x128xf32>
    %335 = arith.truncf %334 : vector<16x128xf32> to vector<16x128xbf16>
    %cst_245 = arith.constant dense<0.000000e+00> : vector<16x128xf32>
    %336 = tpu.matmul %335, %295, %cst_245 {dimension_numbers = #tpu.dot_dimension_numbers<[1], [0], [0], [1], [0, 0, 1, 1], [], []>} : vector<16x128xbf16>, vector<128x128xbf16>, vector<16x128xf32> -> vector<16x128xf32>
    %337 = arith.addf %332, %336 : vector<16x128xf32>
    %cst_246 = arith.constant dense<0.000000e+00> : vector<128xf32>
    %338 = vector.multi_reduction <add>, %316, %cst_246 [0] : vector<16x128xf32> to vector<128xf32>
    %339 = vector.shape_cast %338 : vector<128xf32> to vector<1x128xf32>
    %cst_247 = arith.constant dense<0.000000e+00> : vector<128xf32>
    %340 = vector.multi_reduction <add>, %337, %cst_247 [0] : vector<16x128xf32> to vector<128xf32>
    %341 = vector.shape_cast %340 : vector<128xf32> to vector<1x128xf32>
    %342 = arith.addf %339, %341 : vector<1x128xf32>
    %cst_248 = arith.constant 3.125000e-02 : f32
    %343 = vector.broadcast %cst_248 : f32 to vector<1x128xf32>
    %344 = arith.mulf %342, %343 : vector<1x128xf32>
    %345 = vector.broadcast %344 : vector<1x128xf32> to vector<16x128xf32>
    %346 = arith.subf %316, %345 : vector<16x128xf32>
    %347 = arith.mulf %346, %346 : vector<16x128xf32>
    %cst_249 = arith.constant dense<0.000000e+00> : vector<128xf32>
    %348 = vector.multi_reduction <add>, %347, %cst_249 [0] : vector<16x128xf32> to vector<128xf32>
    %349 = vector.shape_cast %348 : vector<128xf32> to vector<1x128xf32>
    %350 = vector.broadcast %344 : vector<1x128xf32> to vector<16x128xf32>
    %351 = arith.subf %337, %350 : vector<16x128xf32>
    %352 = arith.mulf %351, %351 : vector<16x128xf32>
    %cst_250 = arith.constant dense<0.000000e+00> : vector<128xf32>
    %353 = vector.multi_reduction <add>, %352, %cst_250 [0] : vector<16x128xf32> to vector<128xf32>
    %354 = vector.shape_cast %353 : vector<128xf32> to vector<1x128xf32>
    %355 = arith.addf %349, %354 : vector<1x128xf32>
    %cst_251 = arith.constant 3.125000e-02 : f32
    %356 = vector.broadcast %cst_251 : f32 to vector<1x128xf32>
    %357 = arith.mulf %355, %356 : vector<1x128xf32>
    %cst_252 = arith.constant 9.99999974E-6 : f32
    %358 = vector.broadcast %cst_252 : f32 to vector<1x128xf32>
    %359 = arith.addf %357, %358 : vector<1x128xf32>
    %360 = math.rsqrt %359 : vector<1x128xf32>
    %c0_253 = arith.constant 0 : index
    %c0_254 = arith.constant 0 : index
    %361 = vector.load %arg8[%c0_253, %c0_254] : memref<1x128xf32, #tpu.memory_space<vmem>>, vector<1x128xf32>
    %362 = arith.mulf %360, %361 : vector<1x128xf32>
    %c0_255 = arith.constant 0 : index
    %c0_256 = arith.constant 0 : index
    %363 = vector.load %arg12[%c0_255, %c0_256] : memref<1x128xf32, #tpu.memory_space<vmem>>, vector<1x128xf32>
    %364 = arith.mulf %344, %362 : vector<1x128xf32>
    %365 = arith.subf %363, %364 : vector<1x128xf32>
    %cst_257 = arith.constant 0.000000e+00 : f32
    %366 = vector.broadcast %cst_257 : f32 to vector<2x18x128xf32>
    %c0_258 = arith.constant 0 : index
    %c0_259 = arith.constant 0 : index
    %c0_260 = arith.constant 0 : index
    %367 = vector.load %arg18[%c0_258, %c0_259, %c0_260] : memref<2x18x128xf32, #tpu.memory_space<vmem>>, vector<2x18x128xf32>
    tpu.vector_store %arg18[%c0_258, %c0_259, %c0_260], %366 {strides = array<i32>} : memref<2x18x128xf32, #tpu.memory_space<vmem>>, vector<2x18x128xf32>,
    %368 = vector.broadcast %362 : vector<1x128xf32> to vector<16x128xf32>
    %369 = arith.mulf %316, %368 : vector<16x128xf32>
    %370 = vector.broadcast %365 : vector<1x128xf32> to vector<16x128xf32>
    %371 = arith.addf %369, %370 : vector<16x128xf32>
    %cst_261 = arith.constant 0.000000e+00 : f32
    %372 = vector.broadcast %cst_261 : f32 to vector<16x128xf32>
    %373 = arith.maximumf %371, %372 : vector<16x128xf32>
    %c0_262 = arith.constant 0 : index
    %c1_263 = arith.constant 1 : index
    %c0_264 = arith.constant 0 : index
    %374 = vector.load %arg18[%c0_262, %c1_263, %c0_264] : memref<2x18x128xf32, #tpu.memory_space<vmem>>, vector<1x16x128xf32>
    %375 = vector.shape_cast %374 : vector<1x16x128xf32> to vector<16x128xf32>
    %376 = vector.shape_cast %373 : vector<16x128xf32> to vector<1x16x128xf32>
    tpu.vector_store %arg18[%c0_262, %c1_263, %c0_264], %376 {strides = array<i32>} : memref<2x18x128xf32, #tpu.memory_space<vmem>>, vector<1x16x128xf32>,
    %377 = vector.broadcast %362 : vector<1x128xf32> to vector<16x128xf32>
    %378 = arith.mulf %337, %377 : vector<16x128xf32>
    %379 = vector.broadcast %365 : vector<1x128xf32> to vector<16x128xf32>
    %380 = arith.addf %378, %379 : vector<16x128xf32>
    %cst_265 = arith.constant 0.000000e+00 : f32
    %381 = vector.broadcast %cst_265 : f32 to vector<16x128xf32>
    %382 = arith.maximumf %380, %381 : vector<16x128xf32>
    %c1_266 = arith.constant 1 : index
    %c1_267 = arith.constant 1 : index
    %c0_268 = arith.constant 0 : index
    %383 = vector.load %arg18[%c1_266, %c1_267, %c0_268] : memref<2x18x128xf32, #tpu.memory_space<vmem>>, vector<1x16x128xf32>
    %384 = vector.shape_cast %383 : vector<1x16x128xf32> to vector<16x128xf32>
    %385 = vector.shape_cast %382 : vector<16x128xf32> to vector<1x16x128xf32>
    tpu.vector_store %arg18[%c1_266, %c1_267, %c0_268], %385 {strides = array<i32>} : memref<2x18x128xf32, #tpu.memory_space<vmem>>, vector<1x16x128xf32>,
    %c0_269 = arith.constant 0 : index
    %c0_270 = arith.constant 0 : index
    %c0_271 = arith.constant 0 : index
    %386 = vector.load %arg5[%c0_269, %c0_270, %c0_271] : memref<3x128x128xbf16, #tpu.memory_space<vmem>>, vector<1x128x128xbf16>
    %387 = vector.shape_cast %386 : vector<1x128x128xbf16> to vector<128x128xbf16>
    %c1_272 = arith.constant 1 : index
    %c0_273 = arith.constant 0 : index
    %c0_274 = arith.constant 0 : index
    %388 = vector.load %arg5[%c1_272, %c0_273, %c0_274] : memref<3x128x128xbf16, #tpu.memory_space<vmem>>, vector<1x128x128xbf16>
    %389 = vector.shape_cast %388 : vector<1x128x128xbf16> to vector<128x128xbf16>
    %c2_275 = arith.constant 2 : index
    %c0_276 = arith.constant 0 : index
    %c0_277 = arith.constant 0 : index
    %390 = vector.load %arg5[%c2_275, %c0_276, %c0_277] : memref<3x128x128xbf16, #tpu.memory_space<vmem>>, vector<1x128x128xbf16>
    %391 = vector.shape_cast %390 : vector<1x128x128xbf16> to vector<128x128xbf16>
    %cst_278 = arith.constant 0.000000e+00 : f32
    %392 = vector.broadcast %cst_278 : f32 to vector<16x128xf32>
    %c0_279 = arith.constant 0 : index
    %c0_280 = arith.constant 0 : index
    %c0_281 = arith.constant 0 : index
    %393 = vector.load %arg18[%c0_279, %c0_280, %c0_281] : memref<2x18x128xf32, #tpu.memory_space<vmem>>, vector<1x16x128xf32>
    %394 = vector.shape_cast %393 : vector<1x16x128xf32> to vector<16x128xf32>
    %395 = arith.truncf %394 : vector<16x128xf32> to vector<16x128xbf16>
    %cst_282 = arith.constant dense<0.000000e+00> : vector<16x128xf32>
    %396 = tpu.matmul %395, %387, %cst_282 {dimension_numbers = #tpu.dot_dimension_numbers<[1], [0], [0], [1], [0, 0, 1, 1], [], []>} : vector<16x128xbf16>, vector<128x128xbf16>, vector<16x128xf32> -> vector<16x128xf32>
    %397 = arith.addf %392, %396 : vector<16x128xf32>
    %c0_283 = arith.constant 0 : index
    %c1_284 = arith.constant 1 : index
    %c0_285 = arith.constant 0 : index
    %398 = vector.load %arg18[%c0_283, %c1_284, %c0_285] : memref<2x18x128xf32, #tpu.memory_space<vmem>>, vector<1x16x128xf32>
    %399 = vector.shape_cast %398 : vector<1x16x128xf32> to vector<16x128xf32>
    %400 = arith.truncf %399 : vector<16x128xf32> to vector<16x128xbf16>
    %cst_286 = arith.constant dense<0.000000e+00> : vector<16x128xf32>
    %401 = tpu.matmul %400, %389, %cst_286 {dimension_numbers = #tpu.dot_dimension_numbers<[1], [0], [0], [1], [0, 0, 1, 1], [], []>} : vector<16x128xbf16>, vector<128x128xbf16>, vector<16x128xf32> -> vector<16x128xf32>
    %402 = arith.addf %397, %401 : vector<16x128xf32>
    %c0_287 = arith.constant 0 : index
    %c2_288 = arith.constant 2 : index
    %c0_289 = arith.constant 0 : index
    %403 = vector.load %arg18[%c0_287, %c2_288, %c0_289] : memref<2x18x128xf32, #tpu.memory_space<vmem>>, vector<1x16x128xf32>
    %404 = vector.shape_cast %403 : vector<1x16x128xf32> to vector<16x128xf32>
    %405 = arith.truncf %404 : vector<16x128xf32> to vector<16x128xbf16>
    %cst_290 = arith.constant dense<0.000000e+00> : vector<16x128xf32>
    %406 = tpu.matmul %405, %391, %cst_290 {dimension_numbers = #tpu.dot_dimension_numbers<[1], [0], [0], [1], [0, 0, 1, 1], [], []>} : vector<16x128xbf16>, vector<128x128xbf16>, vector<16x128xf32> -> vector<16x128xf32>
    %407 = arith.addf %402, %406 : vector<16x128xf32>
    %cst_291 = arith.constant 0.000000e+00 : f32
    %408 = vector.broadcast %cst_291 : f32 to vector<16x128xf32>
    %c1_292 = arith.constant 1 : index
    %c0_293 = arith.constant 0 : index
    %c0_294 = arith.constant 0 : index
    %409 = vector.load %arg18[%c1_292, %c0_293, %c0_294] : memref<2x18x128xf32, #tpu.memory_space<vmem>>, vector<1x16x128xf32>
    %410 = vector.shape_cast %409 : vector<1x16x128xf32> to vector<16x128xf32>
    %411 = arith.truncf %410 : vector<16x128xf32> to vector<16x128xbf16>
    %cst_295 = arith.constant dense<0.000000e+00> : vector<16x128xf32>
    %412 = tpu.matmul %411, %387, %cst_295 {dimension_numbers = #tpu.dot_dimension_numbers<[1], [0], [0], [1], [0, 0, 1, 1], [], []>} : vector<16x128xbf16>, vector<128x128xbf16>, vector<16x128xf32> -> vector<16x128xf32>
    %413 = arith.addf %408, %412 : vector<16x128xf32>
    %c1_296 = arith.constant 1 : index
    %c1_297 = arith.constant 1 : index
    %c0_298 = arith.constant 0 : index
    %414 = vector.load %arg18[%c1_296, %c1_297, %c0_298] : memref<2x18x128xf32, #tpu.memory_space<vmem>>, vector<1x16x128xf32>
    %415 = vector.shape_cast %414 : vector<1x16x128xf32> to vector<16x128xf32>
    %416 = arith.truncf %415 : vector<16x128xf32> to vector<16x128xbf16>
    %cst_299 = arith.constant dense<0.000000e+00> : vector<16x128xf32>
    %417 = tpu.matmul %416, %389, %cst_299 {dimension_numbers = #tpu.dot_dimension_numbers<[1], [0], [0], [1], [0, 0, 1, 1], [], []>} : vector<16x128xbf16>, vector<128x128xbf16>, vector<16x128xf32> -> vector<16x128xf32>
    %418 = arith.addf %413, %417 : vector<16x128xf32>
    %c1_300 = arith.constant 1 : index
    %c2_301 = arith.constant 2 : index
    %c0_302 = arith.constant 0 : index
    %419 = vector.load %arg18[%c1_300, %c2_301, %c0_302] : memref<2x18x128xf32, #tpu.memory_space<vmem>>, vector<1x16x128xf32>
    %420 = vector.shape_cast %419 : vector<1x16x128xf32> to vector<16x128xf32>
    %421 = arith.truncf %420 : vector<16x128xf32> to vector<16x128xbf16>
    %cst_303 = arith.constant dense<0.000000e+00> : vector<16x128xf32>
    %422 = tpu.matmul %421, %391, %cst_303 {dimension_numbers = #tpu.dot_dimension_numbers<[1], [0], [0], [1], [0, 0, 1, 1], [], []>} : vector<16x128xbf16>, vector<128x128xbf16>, vector<16x128xf32> -> vector<16x128xf32>
    %423 = arith.addf %418, %422 : vector<16x128xf32>
    %c0_304 = arith.constant 0 : index
    %c0_305 = arith.constant 0 : index
    %424 = vector.load %arg13[%c0_304, %c0_305] : memref<1x128xf32, #tpu.memory_space<vmem>>, vector<1x128xf32>
    %425 = vector.broadcast %424 : vector<1x128xf32> to vector<16x128xf32>
    %426 = arith.addf %407, %425 : vector<16x128xf32>
    %c0_306 = arith.constant 0 : index
    %c0_307 = arith.constant 0 : index
    %c0_308 = arith.constant 0 : index
    %427 = vector.load %arg14[%c0_306, %c0_307, %c0_308] : memref<2x16x128xf32, #tpu.memory_space<vmem>>, vector<1x16x128xf32>
    %428 = vector.shape_cast %427 : vector<1x16x128xf32> to vector<16x128xf32>
    %429 = vector.shape_cast %426 : vector<16x128xf32> to vector<1x16x128xf32>
    tpu.vector_store %arg14[%c0_306, %c0_307, %c0_308], %429 {strides = array<i32>} : memref<2x16x128xf32, #tpu.memory_space<vmem>>, vector<1x16x128xf32>,
    %430 = vector.broadcast %424 : vector<1x128xf32> to vector<16x128xf32>
    %431 = arith.addf %423, %430 : vector<16x128xf32>
    %c1_309 = arith.constant 1 : index
    %c0_310 = arith.constant 0 : index
    %c0_311 = arith.constant 0 : index
    %432 = vector.load %arg14[%c1_309, %c0_310, %c0_311] : memref<2x16x128xf32, #tpu.memory_space<vmem>>, vector<1x16x128xf32>
    %433 = vector.shape_cast %432 : vector<1x16x128xf32> to vector<16x128xf32>
    %434 = vector.shape_cast %431 : vector<16x128xf32> to vector<1x16x128xf32>
    tpu.vector_store %arg14[%c1_309, %c0_310, %c0_311], %434 {strides = array<i32>} : memref<2x16x128xf32, #tpu.memory_space<vmem>>, vector<1x16x128xf32>,
    return
  }
  func.func @transform_0(%arg0: i32) -> (i32, i32, i32) {
    %c0_i32 = arith.constant 0 : i32
    %c0_i32_0 = arith.constant 0 : i32
    %c0_i32_1 = arith.constant 0 : i32
    %c0_i32_2 = arith.constant 0 : i32
    return %c0_i32, %c0_i32_0, %c0_i32_1 : i32, i32, i32
  }
  func.func @transform_1(%arg0: i32) -> (i32, i32, i32) {
    %c0_i32 = arith.constant 0 : i32
    %c0_i32_0 = arith.constant 0 : i32
    %c0_i32_1 = arith.constant 0 : i32
    %c0_i32_2 = arith.constant 0 : i32
    return %c0_i32, %c0_i32_0, %c0_i32_1 : i32, i32, i32
  }
  func.func @transform_2(%arg0: i32) -> (i32, i32, i32) {
    %c0_i32 = arith.constant 0 : i32
    %c0_i32_0 = arith.constant 0 : i32
    %c0_i32_1 = arith.constant 0 : i32
    %c0_i32_2 = arith.constant 0 : i32
    return %c0_i32, %c0_i32_0, %c0_i32_1 : i32, i32, i32
  }
  func.func @transform_3(%arg0: i32) -> (i32, i32, i32) {
    %c0_i32 = arith.constant 0 : i32
    %c0_i32_0 = arith.constant 0 : i32
    %c0_i32_1 = arith.constant 0 : i32
    %c0_i32_2 = arith.constant 0 : i32
    return %c0_i32, %c0_i32_0, %c0_i32_1 : i32, i32, i32
  }
  func.func @transform_4(%arg0: i32) -> (i32, i32, i32) {
    %c0_i32 = arith.constant 0 : i32
    %c0_i32_0 = arith.constant 0 : i32
    %c0_i32_1 = arith.constant 0 : i32
    %c0_i32_2 = arith.constant 0 : i32
    return %c0_i32, %c0_i32_0, %c0_i32_1 : i32, i32, i32
  }
  func.func @transform_5(%arg0: i32) -> (i32, i32) {
    %c0_i32 = arith.constant 0 : i32
    %c0_i32_0 = arith.constant 0 : i32
    %c0_i32_1 = arith.constant 0 : i32
    return %c0_i32, %c0_i32_0 : i32, i32
  }
  func.func @transform_6(%arg0: i32) -> (i32, i32) {
    %c0_i32 = arith.constant 0 : i32
    %c0_i32_0 = arith.constant 0 : i32
    %c0_i32_1 = arith.constant 0 : i32
    return %c0_i32, %c0_i32_0 : i32, i32
  }
  func.func @transform_7(%arg0: i32) -> (i32, i32) {
    %c0_i32 = arith.constant 0 : i32
    %c0_i32_0 = arith.constant 0 : i32
    %c0_i32_1 = arith.constant 0 : i32
    return %c0_i32, %c0_i32_0 : i32, i32
  }
  func.func @transform_8(%arg0: i32) -> (i32, i32) {
    %c0_i32 = arith.constant 0 : i32
    %c0_i32_0 = arith.constant 0 : i32
    %c0_i32_1 = arith.constant 0 : i32
    return %c0_i32, %c0_i32_0 : i32, i32
  }
  func.func @transform_9(%arg0: i32) -> (i32, i32) {
    %c0_i32 = arith.constant 0 : i32
    %c0_i32_0 = arith.constant 0 : i32
    %c0_i32_1 = arith.constant 0 : i32
    return %c0_i32, %c0_i32_0 : i32, i32
  }
  func.func @transform_10(%arg0: i32) -> (i32, i32) {
    %c0_i32 = arith.constant 0 : i32
    %c0_i32_0 = arith.constant 0 : i32
    %c0_i32_1 = arith.constant 0 : i32
    return %c0_i32, %c0_i32_0 : i32, i32
  }
  func.func @transform_11(%arg0: i32) -> (i32, i32) {
    %c0_i32 = arith.constant 0 : i32
    %c0_i32_0 = arith.constant 0 : i32
    %c0_i32_1 = arith.constant 0 : i32
    return %c0_i32, %c0_i32_0 : i32, i32
  }
  func.func @transform_12(%arg0: i32) -> (i32, i32) {
    %c0_i32 = arith.constant 0 : i32
    %c0_i32_0 = arith.constant 0 : i32
    %c0_i32_1 = arith.constant 0 : i32
    return %c0_i32, %c0_i32_0 : i32, i32
  }
  func.func @transform_13(%arg0: i32) -> (i32, i32, i32) {
    %c0_i32 = arith.constant 0 : i32
    %c0_i32_0 = arith.constant 0 : i32
    %c0_i32_1 = arith.constant 0 : i32
    %c0_i32_2 = arith.constant 0 : i32
    return %c0_i32, %c0_i32_0, %c0_i32_1 : i32, i32, i32
  }
}

</mosaic_0001>

<bundles_post_ra>
// kernel: _lambda_.1
= control target key start
LH: loop header
LB: loop body
LE: loop exit
PB: predicated region body
PF: predicated region fallthrough
CT: control target
= control target key end

     0   :  { %18 = vsyncpa [#allocation7], 0  ;;  %s4521_s0 = inlined_call_operand.vmem [shape: f32[2,1,128], index: 0, kind: input, shape index: {}]   ;;  %s4522_s1 = inlined_call_operand.hbm [shape: bf16[4,128,128], index: 1, kind: input, shape index: {}]   ;;  %s4523_s2 = inlined_call_operand.hbm [shape: bf16[4,128,128], index: 2, kind: input, shape index: {}]   ;;  %s4524_s3 = inlined_call_operand.hbm [shape: bf16[4,128,128], index: 3, kind: input, shape index: {}]   ;;  %s4525_s4 = inlined_call_operand.hbm [shape: bf16[3,128,128], index: 4, kind: input, shape index: {}]   ;;  %s4526_s5 = inlined_call_operand.vmem [shape: f32[1,128], index: 5, kind: input, shape index: {}]   ;;  %s4527_s6 = inlined_call_operand.vmem [shape: f32[1,128], index: 6, kind: input, shape index: {}]   ;;  %s4528_s7 = inlined_call_operand.vmem [shape: f32[1,128], index: 7, kind: input, shape index: {}]   ;;  %s4529_s8 = inlined_call_operand.vmem [shape: f32[1,128], index: 8, kind: input, shape index: {}]   ;;  %s4530_s9 = inlined_call_operand.vmem [shape: f32[1,128], index: 9, kind: input, shape index: {}]   ;;  %s4531_s10 = inlined_call_operand.vmem [shape: f32[1,128], index: 10, kind: input, shape index: {}]   ;;  %s4532_s11 = inlined_call_operand.vmem [shape: f32[1,128], index: 11, kind: input, shape index: {}]   ;;  %s4533_s12 = inlined_call_operand.vmem [shape: f32[1,128], index: 12, kind: input, shape index: {}]   ;;  %s4534_s13 = inlined_call_operand.vmem [shape: f32[2,16,128], index: 13, kind: output, shape index: {}]  }
   0x1   :  { %19 = vsyncpa [#allocation9], 0 }
   0x2   :  { %20 = vsyncpa [#allocation12], 0  ;;  %s3934_s25 = smov [#allocation8]   ;;  %s3935_s26 = smov [#allocation6]  }
   0x3   :  { %s40_s8 = sshll.u32 %s3934_s25, 4  ;;  %s28_s27 = sshll.u32 %s3935_s26, 4  ;;  %s41_s8 = int_to_ptr.vmem [resolvable:$true] %s40_s8  ;;  %s4012_s27 = int_to_ptr.vmem [resolvable:$true] %s28_s27 }
   0x4   :  { %s3840_s30 = scalar_lea.hbm %s4523_s2, 4096 }
   0x5   :  { %p3841_p0 = scmp.ne.s32.totalorder %s4523_s2, %s3840_s30  ;;  %p3844_p1 = scmp.lt.u32.totalorder %s3840_s30, %s4523_s2 }
   0x7   :  { %p3846_p2 = pnand %p3844_p1, %p3841_p0 }
   0x9   :  { %3849 = shalt.err (!%p3846_p2)
}
   0xa   :  { %s3850_s18 = scalar_lea.vmem %s41_s8, 4096  ;;  %p3855_p4 = scmp.lt.s32.totalorder %s41_s8, %s41_s8 }
   0xb   :  { %p3851_p3 = scmp.ne.s32.totalorder %s41_s8, %s3850_s18  ;;  %p3856_p5 = scmp.lt.s32.totalorder %s3850_s18, %s3850_s18 }
   0xd   :  { %p3857_p6 = por %p3856_p5, %p3855_p4 }
   0xf   :  { %p3858_p7 = pnand %p3857_p6, %p3851_p3 }
  0x11   :  { %3861 = shalt.err (!%p3858_p7)
}
  0x12   :  { %s3936_s19 = smov 64   ;;  %s3937_s20 = smov 4  }
  0x13   :  { %46 = dma.hbm_to_vmem [thread:$0]  %s4523_s2, 4096, %s41_s8, [#allocation9], %s3936_s19, %s3936_s19, %s3937_s20  }
  0x14   :  { %s3862_s25 = scalar_lea.hbm %s4522_s1, 4096 }
  0x15   :  { %p3863_p8 = scmp.ne.s32.totalorder %s4522_s1, %s3862_s25  ;;  %p3866_p9 = scmp.lt.u32.totalorder %s3862_s25, %s4522_s1 }
  0x17   :  { %p3868_p10 = pnand %p3866_p9, %p3863_p8 }
  0x19   :  { %3871 = shalt.err (!%p3868_p10)
}
  0x1a   :  { %s3872_s14 = scalar_lea.vmem %s4012_s27, 4096  ;;  %p3877_p12 = scmp.lt.s32.totalorder %s4012_s27, %s4012_s27 }
  0x1b   :  { %p3873_p11 = scmp.ne.s32.totalorder %s4012_s27, %s3872_s14  ;;  %p3878_p13 = scmp.lt.s32.totalorder %s3872_s14, %s3872_s14 }
  0x1d   :  { %p3879_p0 = por %p3878_p13, %p3877_p12 }
  0x1f   :  { %p3880_p1 = pnand %p3879_p0, %p3873_p11 }
  0x21   :  { %3883 = shalt.err (!%p3880_p1)
}
  0x22   :  { %34 = dma.hbm_to_vmem [thread:$0]  %s4522_s1, 4096, %s4012_s27, [#allocation7], %s3936_s19, %s3936_s19, %s3937_s20  }
  0x23   :  { %s3938_s15 = smov [#allocation10]   ;;  %s3939_s17 = smov [#allocation11]  }
  0x24   :  { %s52_s16 = sshll.u32 %s3938_s15, 4  ;;  %s64_s18 = sshll.u32 %s3939_s17, 4  ;;  %s53_s16 = int_to_ptr.vmem [resolvable:$true] %s52_s16  ;;  %s4049_s18 = int_to_ptr.vmem [resolvable:$true] %s64_s18 }
  0x25   :  { %s3884_s23 = scalar_lea.hbm %s4524_s3, 4096 }
  0x26   :  { %p3885_p2 = scmp.ne.s32.totalorder %s4524_s3, %s3884_s23  ;;  %p3888_p3 = scmp.lt.u32.totalorder %s3884_s23, %s4524_s3 }
  0x28   :  { %p3890_p4 = pnand %p3888_p3, %p3885_p2 }
  0x2a   :  { %3893 = shalt.err (!%p3890_p4)
}
  0x2b   :  { %s3894_s1 = scalar_lea.vmem %s53_s16, 4096  ;;  %p3899_p6 = scmp.lt.s32.totalorder %s53_s16, %s53_s16 }
  0x2c   :  { %p3895_p5 = scmp.ne.s32.totalorder %s53_s16, %s3894_s1  ;;  %p3900_p7 = scmp.lt.s32.totalorder %s3894_s1, %s3894_s1 }
  0x2e   :  { %p3901_p8 = por %p3900_p7, %p3899_p6 }
  0x30   :  { %p3902_p9 = pnand %p3901_p8, %p3895_p5 }
  0x32   :  { %3905 = shalt.err (!%p3902_p9)
}
  0x33   :  { %58 = dma.hbm_to_vmem [thread:$0]  %s4524_s3, 4096, %s53_s16, [#allocation9], %s3936_s19, %s3936_s19, %s3937_s20  }
  0x34   :  { %s3906_s2 = scalar_lea.hbm %s4525_s4, 3072 }
  0x35   :  { %p3907_p10 = scmp.ne.s32.totalorder %s4525_s4, %s3906_s2  ;;  %p3910_p11 = scmp.lt.u32.totalorder %s3906_s2, %s4525_s4 }
  0x37   :  { %p3912_p12 = pnand %p3910_p11, %p3907_p10 }
  0x39   :  { %3915 = shalt.err (!%p3912_p12)
}
  0x3a   :  { %s3916_s22 = scalar_lea.vmem %s4049_s18, 3072  ;;  %p3921_p0 = scmp.lt.s32.totalorder %s4049_s18, %s4049_s18 }
  0x3b   :  { %p3917_p13 = scmp.ne.s32.totalorder %s4049_s18, %s3916_s22  ;;  %p3922_p1 = scmp.lt.s32.totalorder %s3916_s22, %s3916_s22 }
  0x3d   :  { %p3923_p2 = por %p3922_p1, %p3921_p0 }
  0x3f   :  { %p3924_p3 = pnand %p3923_p2, %p3917_p13 }
  0x41   :  { %3927 = shalt.err (!%p3924_p3)
}
  0x42   :  { %70 = dma.hbm_to_vmem [thread:$0]  %s4525_s4, 3072, %s4049_s18, [#allocation12], %s3936_s19, %s3936_s19, %s3937_s20  }
  0x43   :  { %3928 = dma.done.wait [#allocation7], 4096  }
  0x44   :  { %3929 = vsyncadd [#allocation7], 4294963200 }
  0x45   :  { %3930 = dma.done.wait [#allocation9], 8192  }
  0x46   :  { %3931 = vsyncadd [#allocation9], 4294959104 }
  0x47   :  { %3932 = dma.done.wait [#allocation12], 3072  }
  0x48   :  { %3933 = vsyncadd [#allocation12], 4294964224  ;;  %v3940_v0 = vmov 0.0   ;;  %vm3941_vm0 = vmmov 0   ;;  %v3713_v1 = vld [vmem:[#allocation6 + $0x40] sm:$0xff]   ;;  %v3714_v2 = vld [vmem:[#allocation6 + $0x48] sm:$0xff]  }
  0x49   :  { %3033 = vmatprep.subr.bf16.mxu0 %v3940_v0  ;;  %100 = vst [vmem:[#allocation2] sm:$0x7f] %v3940_v0  ;;  %101 = vst [vmem:[#allocation2 + $0x8] sm:$0x7f] %v3940_v0  ;;  %3113 = vmatprep.subr.bf16.mxu1 %v3940_v0  ;;  %v3715_v3 = vld [vmem:[#allocation6 + $0x50] sm:$0xff]   ;;  %v3716_v6 = vld [vmem:[#allocation6 + $0x58] sm:$0xff]  }
  0x4a   :  { %751 = vst [vmem:[#allocation3] sm:$0xff] %v3940_v0  ;;  %752 = vst [vmem:[#allocation3 + $0x8] sm:$0x7] %v3940_v0  ;;  %3049 = vmatprep.mubr.msk.bf16.mxu0 %vm3941_vm0, %v3940_v0  ;;  %3129 = vmatprep.mubr.msk.bf16.mxu1 %vm3941_vm0, %v3940_v0  ;;  %v102_v4 = vld [vmem:[%s4521_s0] sm:$0x1]  ;;  %v3717_v7 = vld [vmem:[#allocation6 + $0x60] sm:$0xff]  }
  0x4b   :  { %753 = vst [vmem:[#allocation3 + $0x10] sm:$0xff] %v3940_v0  ;;  %754 = vst [vmem:[#allocation3 + $0x18] sm:$0x7] %v3940_v0  ;;  %3034 = vmatpush3.bf16.msra.mxu0 %v3713_v1  ;;  %3114 = vmatpush3.bf16.msra.mxu1 %v3713_v1  ;;  %v2639_v5 = vld [vmem:[%s4521_s0 + $0x1] sm:$0x1]  ;;  %v3718_v8 = vld [vmem:[#allocation6 + $0x68] sm:$0xff]  }
  0x4c   :  { %1416 = vst [vmem:[#allocation4] sm:$0xff] %v3940_v0  ;;  %1417 = vst [vmem:[#allocation4 + $0x8] sm:$0xff] %v3940_v0  ;;  %3035 = vmatprep.subr.bf16.mxu0 %v3940_v0  ;;  %3115 = vmatprep.subr.bf16.mxu1 %v3940_v0  ;;  %v3719_v9 = vld [vmem:[#allocation6 + $0x70] sm:$0xff]   ;;  %v3720_v10 = vld [vmem:[#allocation6 + $0x78] sm:$0xff]   ;;  %vm707_vm1 = vcmask 1043456  }
  0x4d   :  { %1418 = vst [vmem:[#allocation4 + $0x10] sm:$0x7] %v3940_v0  ;;  %1419 = vst [vmem:[#allocation4 + $0x18] sm:$0xff] %v3940_v0  ;;  %v3721_v15 = vld [vmem:[#allocation6] sm:$0xff]   ;;  %v3722_v16 = vld [vmem:[#allocation6 + $0x8] sm:$0xff]  }
  0x4e   :  { %1420 = vst [vmem:[#allocation4 + $0x20] sm:$0xff] %v3940_v0  ;;  %1421 = vst [vmem:[#allocation4 + $0x28] sm:$0x7] %v3940_v0  ;;  %v3723_v17 = vld [vmem:[#allocation6 + $0x10] sm:$0xff]   ;;  %v3724_v18 = vld [vmem:[#allocation6 + $0x18] sm:$0xff]  }
  0x4f   :  { %2121 = vst [vmem:[#allocation5] sm:$0xff] %v3940_v0  ;;  %2122 = vst [vmem:[#allocation5 + $0x8] sm:$0xff] %v3940_v0  ;;  %3036 = vmatpush3.bf16.msra.mxu0 %v3714_v2  ;;  %3116 = vmatpush3.bf16.msra.mxu1 %v3714_v2  ;;  %v3725_v19 = vld [vmem:[#allocation6 + $0x20] sm:$0xff]   ;;  %v3726_v20 = vld [vmem:[#allocation6 + $0x28] sm:$0xff]  }
  0x50   :  { %2123 = vst [vmem:[#allocation5 + $0x10] sm:$0x3] %v3940_v0  ;;  %2124 = vst [vmem:[#allocation5 + $0x18] sm:$0xff] %v3940_v0  ;;  %3037 = vmatprep.subr.bf16.mxu0 %v3940_v0  ;;  %3117 = vmatprep.subr.bf16.mxu1 %v3940_v0  ;;  %v3727_v21 = vld [vmem:[#allocation6 + $0x30] sm:$0xff]   ;;  %v3728_v22 = vld [vmem:[#allocation6 + $0x38] sm:$0xff]  }
  0x51   :  { %2125 = vst [vmem:[#allocation5 + $0x20] sm:$0xff] %v3940_v0  ;;  %2126 = vst [vmem:[#allocation5 + $0x28] sm:$0x3] %v3940_v0  ;;  %v3729_v25 = vld [vmem:[#allocation6 + $0x80] sm:$0xff]   ;;  %v3730_v28 = vld [vmem:[#allocation6 + $0x88] sm:$0xff]  }
  0x52   :  { %103 = vst [vmem:[#allocation2 + $0x3] sm:$0x1] %v102_v4  ;;  %107 = vst [vmem:[#allocation2 + $0xb] sm:$0x1] %v2639_v5  ;;  %v3731_v29 = vld [vmem:[#allocation6 + $0x90] sm:$0xff]   ;;  %v3732_v30 = vld [vmem:[#allocation6 + $0x98] sm:$0xff]  }
  0x53   :  { %3038 = vmatpush3.bf16.msra.mxu0 %v3715_v3  ;;  %3118 = vmatpush3.bf16.msra.mxu1 %v3715_v3  ;;  %v3733_v31 = vld [vmem:[#allocation6 + $0xa0] sm:$0xff]   ;;  %v3734_v32 = vld [vmem:[#allocation6 + $0xa8] sm:$0xff]   ;;  %v3735_v33 = vld [vmem:[#allocation6 + $0xb0] sm:$0xff]  }
  0x54   :  { %3039 = vmatprep.subr.bf16.mxu0 %v3940_v0  ;;  %3119 = vmatprep.subr.bf16.mxu1 %v3940_v0  ;;  %v3736_v34 = vld [vmem:[#allocation6 + $0xb8] sm:$0xff]   ;;  %v3737_v39 = vld [vmem:[#allocation6 + $0xc0] sm:$0xff]   ;;  %v3738_v40 = vld [vmem:[#allocation6 + $0xc8] sm:$0xff]  }
  0x55   :  { %v3739_v41 = vld [vmem:[#allocation6 + $0xd0] sm:$0xff]   ;;  %v3740_v42 = vld [vmem:[#allocation6 + $0xd8] sm:$0xff]   ;;  %v3741_v43 = vld [vmem:[#allocation6 + $0xe0] sm:$0xff]  }
  0x56   :  { %v3742_v44 = vld [vmem:[#allocation6 + $0xe8] sm:$0xff]   ;;  %v3743_v45 = vld [vmem:[#allocation6 + $0xf0] sm:$0xff]   ;;  %v3744_v46 = vld [vmem:[#allocation6 + $0xf8] sm:$0xff]  }
  0x57   :  { %3040 = vmatpush3.bf16.msra.mxu0 %v3716_v6  ;;  %3120 = vmatpush3.bf16.msra.mxu1 %v3716_v6  ;;  %v3745_v51 = vld [vmem:[#allocation8 + $0x40] sm:$0xff]   ;;  %v3746_v52 = vld [vmem:[#allocation8 + $0x48] sm:$0xff]   ;;  %v3747_v53 = vld [vmem:[#allocation8 + $0x50] sm:$0xff]  }
  0x58   :  { %3041 = vmatprep.subr.bf16.mxu0 %v3940_v0  ;;  %3121 = vmatprep.subr.bf16.mxu1 %v3940_v0  ;;  %v3748_v54 = vld [vmem:[#allocation8 + $0x58] sm:$0xff]   ;;  %v3749_v55 = vld [vmem:[#allocation8 + $0x60] sm:$0xff]   ;;  %v3750_v56 = vld [vmem:[#allocation8 + $0x68] sm:$0xff]  }
  0x59   :  { %v177_v11 = vld [vmem:[#allocation2 + $0x1] sm:$0xf]  ;;  %v539_v12 = vld [vmem:[#allocation2 + $0x9] sm:$0xf] }
  0x5a   :  { %v178_v13 = vpack.c.bf16 %v177_v11, %v177_v11  ;;  %v540_v14 = vpack.c.bf16 %v539_v12, %v539_v12  ;;  %v175_v23 = vld [vmem:[#allocation2] sm:$0xf]  ;;  %v537_v24 = vld [vmem:[#allocation2 + $0x8] sm:$0xf] }
  0x5b   :  { %3042 = vmatpush3.bf16.msra.mxu0 %v3717_v7  ;;  %3122 = vmatpush3.bf16.msra.mxu1 %v3717_v7  ;;  %v176_v26 = vpack.c.bf16 %v175_v23, %v175_v23  ;;  %v538_v27 = vpack.c.bf16 %v537_v24, %v537_v24  ;;  %v355_v35 = vld [vmem:[#allocation2 + $0x2] sm:$0xf]  ;;  %v621_v36 = vld [vmem:[#allocation2 + $0xa] sm:$0xf] }
  0x5c   :  { %3043 = vmatprep.subr.bf16.mxu0 %v3940_v0  ;;  %3123 = vmatprep.subr.bf16.mxu1 %v3940_v0  ;;  %v356_v37 = vpack.c.bf16 %v355_v35, %v355_v35  ;;  %v622_v38 = vpack.c.bf16 %v621_v36, %v621_v36  ;;  %v446_v47 = vld [vmem:[#allocation2 + $0x3] sm:$0xf]  ;;  %v664_v48 = vld [vmem:[#allocation2 + $0xb] sm:$0xf] }
  0x5d   :  { %v447_v49 = vpack.c.bf16 %v446_v47, %v446_v47  ;;  %v665_v50 = vpack.c.bf16 %v664_v48, %v664_v48  ;;  %v3751_v57 = vld [vmem:[#allocation8 + $0x70] sm:$0xff]   ;;  %v3752_v58 = vld [vmem:[#allocation8 + $0x78] sm:$0xff]  }
  0x5f   :  { %3044 = vmatpush3.bf16.msra.mxu0 %v3718_v8  ;;  %3124 = vmatpush3.bf16.msra.mxu1 %v3718_v8 }
  0x60   :  { %3045 = vmatprep.subr.bf16.mxu0 %v3940_v0  ;;  %3125 = vmatprep.subr.bf16.mxu1 %v3940_v0 }
  0x63   :  { %3046 = vmatpush3.bf16.msra.mxu0 %v3719_v9  ;;  %3126 = vmatpush3.bf16.msra.mxu1 %v3719_v9 }
  0x64   :  { %3047 = vmatprep.subr.bf16.mxu0 %v3940_v0  ;;  %3127 = vmatprep.subr.bf16.mxu1 %v3940_v0 }
  0x67   :  { %3048 = vmatpush3.bf16.msra.mxu0 %v3720_v10  ;;  %3128 = vmatpush3.bf16.msra.mxu1 %v3720_v10 }
  0x68   :  { %3053 = vmatprep.subr.bf16.mxu0 %v3940_v0  ;;  %3133 = vmatprep.subr.bf16.mxu1 %v3940_v0 }
  0x6a   :  { %3050 = vmatmul.mubr.bf16.vlgmr.msra.gmra.mrb[0].mxu0 %v178_v13  ;;  %3130 = vmatmul.mubr.bf16.vlgmr.msra.gmra.mrb[0].mxu1 %v540_v14 }
  0x6b   :  { %3054 = vmatpush3.bf16.msra.mxu0 %v3721_v15  ;;  %3134 = vmatpush3.bf16.msra.mxu1 %v3721_v15 }
  0x6c   :  { %3055 = vmatprep.subr.bf16.mxu0 %v3940_v0  ;;  %3135 = vmatprep.subr.bf16.mxu1 %v3940_v0 }
  0x6d   :  { %3069 = vmatprep.mubr.msk.bf16.mxu0 %vm3941_vm0, %v3940_v0  ;;  %3149 = vmatprep.mubr.msk.bf16.mxu1 %vm3941_vm0, %v3940_v0 }
  0x6f   :  { %3056 = vmatpush3.bf16.msra.mxu0 %v3722_v16  ;;  %3136 = vmatpush3.bf16.msra.mxu1 %v3722_v16 }
  0x70   :  { %3057 = vmatprep.subr.bf16.mxu0 %v3940_v0  ;;  %3137 = vmatprep.subr.bf16.mxu1 %v3940_v0 }
  0x73   :  { %3058 = vmatpush3.bf16.msra.mxu0 %v3723_v17  ;;  %3138 = vmatpush3.bf16.msra.mxu1 %v3723_v17 }
  0x74   :  { %3059 = vmatprep.subr.bf16.mxu0 %v3940_v0  ;;  %3139 = vmatprep.subr.bf16.mxu1 %v3940_v0 }
  0x77   :  { %3060 = vmatpush3.bf16.msra.mxu0 %v3724_v18  ;;  %3140 = vmatpush3.bf16.msra.mxu1 %v3724_v18 }
  0x78   :  { %3061 = vmatprep.subr.bf16.mxu0 %v3940_v0  ;;  %3141 = vmatprep.subr.bf16.mxu1 %v3940_v0 }
  0x7b   :  { %3062 = vmatpush3.bf16.msra.mxu0 %v3725_v19  ;;  %3142 = vmatpush3.bf16.msra.mxu1 %v3725_v19 }
  0x7c   :  { %3063 = vmatprep.subr.bf16.mxu0 %v3940_v0  ;;  %3143 = vmatprep.subr.bf16.mxu1 %v3940_v0 }
  0x7f   :  { %3064 = vmatpush3.bf16.msra.mxu0 %v3726_v20  ;;  %3144 = vmatpush3.bf16.msra.mxu1 %v3726_v20 }
  0x80   :  { %3065 = vmatprep.subr.bf16.mxu0 %v3940_v0  ;;  %3145 = vmatprep.subr.bf16.mxu1 %v3940_v0 }
  0x83   :  { %3066 = vmatpush3.bf16.msra.mxu0 %v3727_v21  ;;  %3146 = vmatpush3.bf16.msra.mxu1 %v3727_v21 }
  0x84   :  { %3067 = vmatprep.subr.bf16.mxu0 %v3940_v0  ;;  %3147 = vmatprep.subr.bf16.mxu1 %v3940_v0 }
  0x87   :  { %3068 = vmatpush3.bf16.msra.mxu0 %v3728_v22  ;;  %3148 = vmatpush3.bf16.msra.mxu1 %v3728_v22 }
  0x88   :  { %3073 = vmatprep.subr.bf16.mxu0 %v3940_v0  ;;  %3153 = vmatprep.subr.bf16.mxu1 %v3940_v0 }
  0x8a   :  { %3070 = vmatmul.mubr.bf16.vlgmr.msra.gmra.mrb[0].mxu0 %v176_v26  ;;  %3150 = vmatmul.mubr.bf16.vlgmr.msra.gmra.mrb[0].mxu1 %v538_v27 }
  0x8b   :  { %3074 = vmatpush3.bf16.msra.mxu0 %v3729_v25  ;;  %3154 = vmatpush3.bf16.msra.mxu1 %v3729_v25 }
  0x8c   :  { %3075 = vmatprep.subr.bf16.mxu0 %v3940_v0  ;;  %3155 = vmatprep.subr.bf16.mxu1 %v3940_v0 }
  0x8d   :  { %3089 = vmatprep.mubr.msk.bf16.mxu0 %vm3941_vm0, %v3940_v0  ;;  %3169 = vmatprep.mubr.msk.bf16.mxu1 %vm3941_vm0, %v3940_v0 }
  0x8f   :  { %3076 = vmatpush3.bf16.msra.mxu0 %v3730_v28  ;;  %3156 = vmatpush3.bf16.msra.mxu1 %v3730_v28 }
  0x90   :  { %3077 = vmatprep.subr.bf16.mxu0 %v3940_v0  ;;  %3157 = vmatprep.subr.bf16.mxu1 %v3940_v0 }
  0x93   :  { %3078 = vmatpush3.bf16.msra.mxu0 %v3731_v29  ;;  %3158 = vmatpush3.bf16.msra.mxu1 %v3731_v29 }
  0x94   :  { %3079 = vmatprep.subr.bf16.mxu0 %v3940_v0  ;;  %3159 = vmatprep.subr.bf16.mxu1 %v3940_v0 }
  0x97   :  { %3080 = vmatpush3.bf16.msra.mxu0 %v3732_v30  ;;  %3160 = vmatpush3.bf16.msra.mxu1 %v3732_v30 }
  0x98   :  { %3081 = vmatprep.subr.bf16.mxu0 %v3940_v0  ;;  %3161 = vmatprep.subr.bf16.mxu1 %v3940_v0 }
  0x9b   :  { %3082 = vmatpush3.bf16.msra.mxu0 %v3733_v31  ;;  %3162 = vmatpush3.bf16.msra.mxu1 %v3733_v31 }
  0x9c   :  { %3083 = vmatprep.subr.bf16.mxu0 %v3940_v0  ;;  %3163 = vmatprep.subr.bf16.mxu1 %v3940_v0 }
  0x9f   :  { %3084 = vmatpush3.bf16.msra.mxu0 %v3734_v32  ;;  %3164 = vmatpush3.bf16.msra.mxu1 %v3734_v32 }
  0xa0   :  { %3085 = vmatprep.subr.bf16.mxu0 %v3940_v0  ;;  %3165 = vmatprep.subr.bf16.mxu1 %v3940_v0 }
  0xa3   :  { %3086 = vmatpush3.bf16.msra.mxu0 %v3735_v33  ;;  %3166 = vmatpush3.bf16.msra.mxu1 %v3735_v33 }
  0xa4   :  { %3087 = vmatprep.subr.bf16.mxu0 %v3940_v0  ;;  %3167 = vmatprep.subr.bf16.mxu1 %v3940_v0 }
  0xa7   :  { %3088 = vmatpush3.bf16.msra.mxu0 %v3736_v34  ;;  %3168 = vmatpush3.bf16.msra.mxu1 %v3736_v34 }
  0xa8   :  { %3093 = vmatprep.subr.bf16.mxu0 %v3940_v0  ;;  %3173 = vmatprep.subr.bf16.mxu1 %v3940_v0 }
  0xaa   :  { %3090 = vmatmul.mubr.bf16.vlgmr.msra.gmra.mrb[0].mxu0 %v356_v37  ;;  %3170 = vmatmul.mubr.bf16.vlgmr.msra.gmra.mrb[0].mxu1 %v622_v38 }
  0xab   :  { %3094 = vmatpush3.bf16.msra.mxu0 %v3737_v39  ;;  %3174 = vmatpush3.bf16.msra.mxu1 %v3737_v39 }
  0xac   :  { %3095 = vmatprep.subr.bf16.mxu0 %v3940_v0  ;;  %3175 = vmatprep.subr.bf16.mxu1 %v3940_v0 }
  0xad   :  { %3109 = vmatprep.mubr.msk.bf16.mxu0 %vm3941_vm0, %v3940_v0  ;;  %3189 = vmatprep.mubr.msk.bf16.mxu1 %vm3941_vm0, %v3940_v0 }
  0xaf   :  { %3096 = vmatpush3.bf16.msra.mxu0 %v3738_v40  ;;  %3176 = vmatpush3.bf16.msra.mxu1 %v3738_v40  ;;  %v755_v40 = vlaneseq }
  0xb0   :  { %3097 = vmatprep.subr.bf16.mxu0 %v3940_v0  ;;  %3177 = vmatprep.subr.bf16.mxu1 %v3940_v0 }
  0xb3   :  { %3098 = vmatpush3.bf16.msra.mxu0 %v3739_v41  ;;  %3178 = vmatpush3.bf16.msra.mxu1 %v3739_v41  ;;  %v756_v41 = vshrl.u32 %v755_v40, 7 }
  0xb4   :  { %3099 = vmatprep.subr.bf16.mxu0 %v3940_v0  ;;  %3179 = vmatprep.subr.bf16.mxu1 %v3940_v0 }
  0xb7   :  { %3100 = vmatpush3.bf16.msra.mxu0 %v3740_v42  ;;  %3180 = vmatpush3.bf16.msra.mxu1 %v3740_v42  ;;  %v746_v42 = vld [vmem:[%s4526_s5] sm:$0x1] }
  0xb8   :  { %3101 = vmatprep.subr.bf16.mxu0 %v3940_v0  ;;  %3181 = vmatprep.subr.bf16.mxu1 %v3940_v0 }
  0xbb   :  { %3102 = vmatpush3.bf16.msra.mxu0 %v3741_v43  ;;  %3182 = vmatpush3.bf16.msra.mxu1 %v3741_v43  ;;  %v4219_v43 = vsub.s32 0, %v756_v41 }
  0xbc   :  { %3103 = vmatprep.subr.bf16.mxu0 %v3940_v0  ;;  %3183 = vmatprep.subr.bf16.mxu1 %v3940_v0 }
  0xbf   :  { %3104 = vmatpush3.bf16.msra.mxu0 %v3742_v44  ;;  %3184 = vmatpush3.bf16.msra.mxu1 %v3742_v44 }
  0xc0   :  { %3105 = vmatprep.subr.bf16.mxu0 %v3940_v0  ;;  %3185 = vmatprep.subr.bf16.mxu1 %v3940_v0 }
  0xc3   :  { %3106 = vmatpush3.bf16.msra.mxu0 %v3743_v45  ;;  %3186 = vmatpush3.bf16.msra.mxu1 %v3743_v45 }
  0xc4   :  { %3107 = vmatprep.subr.bf16.mxu0 %v3940_v0  ;;  %3187 = vmatprep.subr.bf16.mxu1 %v3940_v0 }
  0xc7   :  { %3108 = vmatpush3.bf16.msra.mxu0 %v3744_v46  ;;  %3188 = vmatpush3.bf16.msra.mxu1 %v3744_v46  ;;  %v748_v46 = vld [vmem:[%s4530_s9] sm:$0x1] }
  0xc8   :  { %3193 = vmatprep.subr.bf16.mxu0 %v3940_v0  ;;  %3273 = vmatprep.subr.bf16.mxu1 %v3940_v0 }
  0xca   :  { %3110 = vmatmul.mubr.bf16.vlgmr.msra.gmra.mrb[0].mxu0 %v447_v49  ;;  %3190 = vmatmul.mubr.bf16.vlgmr.msra.gmra.mrb[0].mxu1 %v665_v50 }
  0xcb   :  { %3209 = vmatprep.mubr.msk.bf16.mxu0 %vm3941_vm0, %v3940_v0  ;;  %3289 = vmatprep.mubr.msk.bf16.mxu1 %vm3941_vm0, %v3940_v0 }
  0xcc   :  { %3194 = vmatpush3.bf16.msra.mxu0 %v3745_v51  ;;  %3274 = vmatpush3.bf16.msra.mxu1 %v3745_v51 }
  0xcd   :  { %3195 = vmatprep.subr.bf16.mxu0 %v3940_v0  ;;  %3275 = vmatprep.subr.bf16.mxu1 %v3940_v0 }
  0xd0   :  { %3196 = vmatpush3.bf16.msra.mxu0 %v3746_v52  ;;  %3276 = vmatpush3.bf16.msra.mxu1 %v3746_v52 }
  0xd1   :  { %3197 = vmatprep.subr.bf16.mxu0 %v3940_v0  ;;  %3277 = vmatprep.subr.bf16.mxu1 %v3940_v0 }
  0xd4   :  { %3198 = vmatpush3.bf16.msra.mxu0 %v3747_v53  ;;  %3278 = vmatpush3.bf16.msra.mxu1 %v3747_v53 }
  0xd5   :  { %3199 = vmatprep.subr.bf16.mxu0 %v3940_v0  ;;  %3279 = vmatprep.subr.bf16.mxu1 %v3940_v0 }
  0xd8   :  { %3200 = vmatpush3.bf16.msra.mxu0 %v3748_v54  ;;  %3280 = vmatpush3.bf16.msra.mxu1 %v3748_v54 }
  0xd9   :  { %3201 = vmatprep.subr.bf16.mxu0 %v3940_v0  ;;  %3281 = vmatprep.subr.bf16.mxu1 %v3940_v0 }
  0xdc   :  { %3202 = vmatpush3.bf16.msra.mxu0 %v3749_v55  ;;  %3282 = vmatpush3.bf16.msra.mxu1 %v3749_v55 }
  0xdd   :  { %3203 = vmatprep.subr.bf16.mxu0 %v3940_v0  ;;  %3283 = vmatprep.subr.bf16.mxu1 %v3940_v0 }
  0xe0   :  { %3204 = vmatpush3.bf16.msra.mxu0 %v3750_v56  ;;  %3284 = vmatpush3.bf16.msra.mxu1 %v3750_v56  ;;  %v3753_v56 = vld [vmem:[#allocation8] sm:$0xff]  }
  0xe1   :  { %3205 = vmatprep.subr.bf16.mxu0 %v3940_v0  ;;  %3285 = vmatprep.subr.bf16.mxu1 %v3940_v0 }
  0xe4   :  { %3206 = vmatpush3.bf16.msra.mxu0 %v3751_v57  ;;  %3286 = vmatpush3.bf16.msra.mxu1 %v3751_v57 }
  0xe5   :  { %3207 = vmatprep.subr.bf16.mxu0 %v3940_v0  ;;  %3287 = vmatprep.subr.bf16.mxu1 %v3940_v0 }
  0xe8   :  { %3208 = vmatpush3.bf16.msra.mxu0 %v3752_v58  ;;  %3288 = vmatpush3.bf16.msra.mxu1 %v3752_v58 }
  0xe9   :  { %3213 = vmatprep.subr.bf16.mxu0 %v3940_v0  ;;  %3293 = vmatprep.subr.bf16.mxu1 %v3940_v0 }
 0x19d   :  { %v530_v59 = vpop.f32.mrb[0].mxu0  ;;  %v700_v60 = vpop.f32.mrb[0].mxu1 }
 0x19e   :  { %v708_v61 = vsel %vm707_vm1, %v530_v59, 0.0  ;;  %v715_v62 = vsel %vm707_vm1, %v700_v60, 0.0  ;;  %v3111_v63 = vpop.f32.mrb[1].mxu0  ;;  %v3191_v1 = vpop.f32.mrb[1].mxu1 }
 0x19f   :  { %v709_v2 = vrot.slane %v708_v61, 4  ;;  %v716_v3 = vrot.slane %v715_v62, 4  ;;  %v533_v4 = vpop.f32.mrb[2].mxu0  ;;  %v703_v5 = vpop.f32.mrb[2].mxu1  ;;  %v3756_v63 = vld [vmem:[#allocation8 + $0x18] sm:$0xff]   ;;  %v3757_v1 = vld [vmem:[#allocation8 + $0x20] sm:$0xff]  }
 0x1a0   :  { %v3112_v6 = vpop.f32.mrb[3].mxu0  ;;  %v3192_v7 = vpop.f32.mrb[3].mxu1  ;;  %v3760_v4 = vld [vmem:[#allocation8 + $0x38] sm:$0xff]  }
 0x1a1   :  { %v710_v8 = vadd.f32 %v709_v2, %v708_v61  ;;  %v717_v9 = vadd.f32 %v716_v3, %v715_v62  ;;  %v3755_v62 = vld [vmem:[#allocation8 + $0x10] sm:$0xff]   ;;  %v3758_v2 = vld [vmem:[#allocation8 + $0x28] sm:$0xff]   ;;  %v3761_v7 = vld [vmem:[#allocation8 + $0x80] sm:$0xff]  }
 0x1a2   :  { %v3759_v3 = vld [vmem:[#allocation8 + $0x30] sm:$0xff]  }
 0x1a3   :  { %v711_v10 = vrot.slane %v710_v8, 2  ;;  %v718_v11 = vrot.slane %v717_v9, 2 }
 0x1a5   :  { %v712_v0 = vadd.f32 %v711_v10, %v710_v8  ;;  %v719_v12 = vadd.f32 %v718_v11, %v717_v9  ;;  %v3762_v10 = vld [vmem:[#allocation8 + $0x88] sm:$0xff]   ;;  %v3763_v11 = vld [vmem:[#allocation8 + $0x90] sm:$0xff]  }
 0x1a7   :  { %v713_v13 = vrot.slane %v712_v0, 1  ;;  %v720_v14 = vrot.slane %v719_v12, 1 }
 0x1a9   :  { %v714_v15 = vadd.f32 %v713_v13, %v712_v0  ;;  %v721_v16 = vadd.f32 %v720_v14, %v719_v12  ;;  %v3764_v0 = vld [vmem:[#allocation8 + $0x98] sm:$0xff]   ;;  %v3765_v12 = vld [vmem:[#allocation8 + $0xa0] sm:$0xff]   ;;  %v3766_v13 = vld [vmem:[#allocation8 + $0xa8] sm:$0xff]  }
 0x1aa   :  { %v3767_v14 = vld [vmem:[#allocation8 + $0xb0] sm:$0xff]  }
 0x1ab   :  { %v722_v17 = vadd.f32 %v721_v16, %v714_v15  ;;  %v3768_v15 = vld [vmem:[#allocation8 + $0xb8] sm:$0xff]  }
 0x1ad   :  { %v723_v18 = vmul.f32 0.125, %v722_v17 }
 0x1af   :  { %v724_v19 = vsub.f32 %v530_v59, %v723_v18  ;;  %v733_v20 = vsub.f32 %v700_v60, %v723_v18 }
 0x1b1   :  { %v725_v21 = vmul.f32 %v724_v19, %v724_v19  ;;  %v734_v22 = vmul.f32 %v733_v20, %v733_v20 }
 0x1b3   :  { %v726_v23 = vsel %vm707_vm1, %v725_v21, 0.0  ;;  %v735_v24 = vsel %vm707_vm1, %v734_v22, 0.0  ;;  %v3770_v21 = vld [vmem:[#allocation8 + $0xc8] sm:$0xff]   ;;  %v3771_v22 = vld [vmem:[#allocation8 + $0xd0] sm:$0xff]  }
 0x1b4   :  { %v727_v25 = vrot.slane %v726_v23, 4  ;;  %v736_v26 = vrot.slane %v735_v24, 4 }
 0x1b6   :  { %v728_v27 = vadd.f32 %v727_v25, %v726_v23  ;;  %v737_v28 = vadd.f32 %v736_v26, %v735_v24  ;;  %v3772_v23 = vld [vmem:[#allocation8 + $0xd8] sm:$0xff]   ;;  %v3773_v24 = vld [vmem:[#allocation8 + $0xe0] sm:$0xff]   ;;  %v3774_v25 = vld [vmem:[#allocation8 + $0xe8] sm:$0xff]  }
 0x1b7   :  { %v3775_v26 = vld [vmem:[#allocation8 + $0xf0] sm:$0xff]  }
 0x1b8   :  { %v729_v29 = vrot.slane %v728_v27, 2  ;;  %v738_v30 = vrot.slane %v737_v28, 2 }
 0x1ba   :  { %v730_v31 = vadd.f32 %v729_v29, %v728_v27  ;;  %v739_v32 = vadd.f32 %v738_v30, %v737_v28  ;;  %v3776_v27 = vld [vmem:[#allocation8 + $0xf8] sm:$0xff]  }
 0x1bc   :  { %v731_v33 = vrot.slane %v730_v31, 1  ;;  %v740_v34 = vrot.slane %v739_v32, 1 }
 0x1be   :  { %v732_v35 = vadd.f32 %v731_v33, %v730_v31  ;;  %v741_v36 = vadd.f32 %v740_v34, %v739_v32  ;;  %v3777_v32 = vld [vmem:[#allocation10 + $0x40] sm:$0xff]   ;;  %v3778_v33 = vld [vmem:[#allocation10 + $0x48] sm:$0xff]   ;;  %v3779_v34 = vld [vmem:[#allocation10 + $0x50] sm:$0xff]  }
 0x1c0   :  { %v742_v37 = vadd.f32 %v741_v36, %v732_v35  ;;  %v3780_v35 = vld [vmem:[#allocation10 + $0x58] sm:$0xff]   ;;  %v3781_v36 = vld [vmem:[#allocation10 + $0x60] sm:$0xff]  }
 0x1c2   :  { %v743_v38 = vmul.f32 0.125, %v742_v37  ;;  %v3782_v37 = vld [vmem:[#allocation10 + $0x68] sm:$0xff]  }
 0x1c4   :  { %v744_v39 = vadd.f32 1e-05, %v743_v38  ;;  %v3783_v38 = vld [vmem:[#allocation10 + $0x70] sm:$0xff]  }
 0x1c6   :  { %3833 = vrsqrt.f32 %v744_v39  ;;  %v3784_v39 = vld [vmem:[#allocation10 + $0x78] sm:$0xff]  }
 0x1d0   :  { %v3834_v44 = vpop.eup %3833 }
 0x1d1   :  { %v747_v45 = vmul.f32 %v3834_v44, %v746_v42 }
 0x1d3   :  { %v749_v47 = vmul.f32 %v747_v45, %v723_v18  ;;  %v758_v48 = vrot.slane %v747_v45, %v4219_v43  ;;  %v3769_v18 = vld [vmem:[#allocation8 + $0xc0] sm:$0xff]  }
 0x1d5   :  { %v750_v49 = vsub.f32 %v748_v46, %v749_v47  ;;  %v759_v50 = vmul.f32 %v758_v48, %v530_v59  ;;  %v771_v51 = vmul.f32 %v758_v48, %v700_v60  ;;  %v3754_v59 = vld [vmem:[#allocation8 + $0x8] sm:$0xff]   ;;  %v4226_v60 = vld [vmem:[#allocation4] sm:$0xff] }
 0x1d7   :  { %v764_v52 = vrot.slane %v750_v49, %v4219_v43 }
 0x1d9   :  { %v766_v53 = vadd.f32 %v764_v52, %v759_v50  ;;  %v772_v54 = vadd.f32 %v771_v51, %v764_v52 }
 0x1db   :  { %767 = vst [vmem:[#allocation3 + $0x2] sm:$0x1] %v766_v53  ;;  %768 = vst [vmem:[#allocation3 + $0x3] sm:$0x2] %v766_v53 }
 0x1dc   :  { %769 = vst [vmem:[#allocation3 + $0x4] sm:$0x4] %v766_v53  ;;  %770 = vst [vmem:[#allocation3 + $0x5] sm:$0x8] %v766_v53 }
 0x1dd   :  { %774 = vst [vmem:[#allocation3 + $0x12] sm:$0x1] %v772_v54  ;;  %775 = vst [vmem:[#allocation3 + $0x13] sm:$0x2] %v772_v54 }
 0x1de   :  { %776 = vst [vmem:[#allocation3 + $0x14] sm:$0x4] %v772_v54  ;;  %777 = vst [vmem:[#allocation3 + $0x15] sm:$0x8] %v772_v54 }
 0x1e3   :  { %v847_v55 = vld [vmem:[#allocation3 + $0x1] sm:$0xff] }
 0x1e4   :  { %v848_v58 = vpack.c.bf16 %v847_v55, %v847_v55  ;;  %v845_v5 = vld [vmem:[#allocation3] sm:$0xff] }
 0x1e5   :  { %v1209_v57 = vld [vmem:[#allocation3 + $0x11] sm:$0xff]  ;;  %v846_v8 = vpack.c.bf16 %v845_v5, %v845_v5  ;;  %v1025_v16 = vld [vmem:[#allocation3 + $0x2] sm:$0xff] }
 0x1e6   :  { %v1210_v61 = vpack.c.bf16 %v1209_v57, %v1209_v57  ;;  %3210 = vmatmul.mubr.bf16.vlgmr.msra.gmra.mrb[4].mxu0 %v848_v58  ;;  %v1207_v6 = vld [vmem:[#allocation3 + $0x10] sm:$0xff]  ;;  %v1026_v19 = vpack.c.bf16 %v1025_v16, %v1025_v16  ;;  %v1116_v28 = vld [vmem:[#allocation3 + $0x3] sm:$0xff] }
 0x1e7   :  { %3214 = vmatpush3.bf16.msra.mxu0 %v3753_v56  ;;  %3229 = vmatprep.mubr.msk.bf16.mxu0 %vm3941_vm0, %v4226_v60  ;;  %v1208_v9 = vpack.c.bf16 %v1207_v6, %v1207_v6  ;;  %v1291_v17 = vld [vmem:[#allocation3 + $0x12] sm:$0xff]  ;;  %v1117_v30 = vpack.c.bf16 %v1116_v28, %v1116_v28 }
 0x1e8   :  { %3290 = vmatmul.mubr.bf16.vlgmr.msra.gmra.mrb[4].mxu1 %v1210_v61  ;;  %3215 = vmatprep.subr.bf16.mxu0 %v4226_v60  ;;  %v1292_v20 = vpack.c.bf16 %v1291_v17, %v1291_v17  ;;  %v1334_v29 = vld [vmem:[#allocation3 + $0x13] sm:$0xff] }
 0x1e9   :  { %3294 = vmatpush3.bf16.msra.mxu1 %v3753_v56  ;;  %3309 = vmatprep.mubr.msk.bf16.mxu1 %vm3941_vm0, %v4226_v60  ;;  %v1335_v31 = vpack.c.bf16 %v1334_v29, %v1334_v29 }
 0x1ea   :  { %3295 = vmatprep.subr.bf16.mxu1 %v4226_v60 }
 0x1eb   :  { %3216 = vmatpush3.bf16.msra.mxu0 %v3754_v59 }
 0x1ec   :  { %3217 = vmatprep.subr.bf16.mxu0 %v4226_v60 }
 0x1ed   :  { %3296 = vmatpush3.bf16.msra.mxu1 %v3754_v59 }
 0x1ee   :  { %3297 = vmatprep.subr.bf16.mxu1 %v4226_v60 }
 0x1ef   :  { %3218 = vmatpush3.bf16.msra.mxu0 %v3755_v62 }
 0x1f0   :  { %3219 = vmatprep.subr.bf16.mxu0 %v4226_v60 }
 0x1f1   :  { %3298 = vmatpush3.bf16.msra.mxu1 %v3755_v62 }
 0x1f2   :  { %3299 = vmatprep.subr.bf16.mxu1 %v4226_v60 }
 0x1f3   :  { %3220 = vmatpush3.bf16.msra.mxu0 %v3756_v63 }
 0x1f4   :  { %3221 = vmatprep.subr.bf16.mxu0 %v4226_v60 }
 0x1f5   :  { %3300 = vmatpush3.bf16.msra.mxu1 %v3756_v63 }
 0x1f6   :  { %3301 = vmatprep.subr.bf16.mxu1 %v4226_v60 }
 0x1f7   :  { %3222 = vmatpush3.bf16.msra.mxu0 %v3757_v1 }
 0x1f8   :  { %3223 = vmatprep.subr.bf16.mxu0 %v4226_v60 }
 0x1f9   :  { %3302 = vmatpush3.bf16.msra.mxu1 %v3757_v1 }
 0x1fa   :  { %3303 = vmatprep.subr.bf16.mxu1 %v4226_v60 }
 0x1fb   :  { %3224 = vmatpush3.bf16.msra.mxu0 %v3758_v2 }
 0x1fc   :  { %3225 = vmatprep.subr.bf16.mxu0 %v4226_v60 }
 0x1fd   :  { %3304 = vmatpush3.bf16.msra.mxu1 %v3758_v2 }
 0x1fe   :  { %3305 = vmatprep.subr.bf16.mxu1 %v4226_v60 }
 0x1ff   :  { %3226 = vmatpush3.bf16.msra.mxu0 %v3759_v3 }
 0x200   :  { %3227 = vmatprep.subr.bf16.mxu0 %v4226_v60 }
 0x201   :  { %3306 = vmatpush3.bf16.msra.mxu1 %v3759_v3 }
 0x202   :  { %3307 = vmatprep.subr.bf16.mxu1 %v4226_v60 }
 0x203   :  { %3228 = vmatpush3.bf16.msra.mxu0 %v3760_v4 }
 0x204   :  { %3233 = vmatprep.subr.bf16.mxu0 %v4226_v60 }
 0x205   :  { %3308 = vmatpush3.bf16.msra.mxu1 %v3760_v4 }
 0x206   :  { %3313 = vmatprep.subr.bf16.mxu1 %v4226_v60  ;;  %3230 = vmatmul.mubr.bf16.vlgmr.msra.gmra.mrb[4].mxu0 %v846_v8 }
 0x207   :  { %3234 = vmatpush3.bf16.msra.mxu0 %v3761_v7  ;;  %3249 = vmatprep.mubr.msk.bf16.mxu0 %vm3941_vm0, %v4226_v60 }
 0x208   :  { %3310 = vmatmul.mubr.bf16.vlgmr.msra.gmra.mrb[4].mxu1 %v1208_v9  ;;  %3235 = vmatprep.subr.bf16.mxu0 %v4226_v60 }
 0x209   :  { %3314 = vmatpush3.bf16.msra.mxu1 %v3761_v7  ;;  %3329 = vmatprep.mubr.msk.bf16.mxu1 %vm3941_vm0, %v4226_v60 }
 0x20a   :  { %3315 = vmatprep.subr.bf16.mxu1 %v4226_v60 }
 0x20b   :  { %3236 = vmatpush3.bf16.msra.mxu0 %v3762_v10 }
 0x20c   :  { %3237 = vmatprep.subr.bf16.mxu0 %v4226_v60 }
 0x20d   :  { %3316 = vmatpush3.bf16.msra.mxu1 %v3762_v10 }
 0x20e   :  { %3317 = vmatprep.subr.bf16.mxu1 %v4226_v60 }
 0x20f   :  { %3238 = vmatpush3.bf16.msra.mxu0 %v3763_v11 }
 0x210   :  { %3239 = vmatprep.subr.bf16.mxu0 %v4226_v60 }
 0x211   :  { %3318 = vmatpush3.bf16.msra.mxu1 %v3763_v11 }
 0x212   :  { %3319 = vmatprep.subr.bf16.mxu1 %v4226_v60 }
 0x213   :  { %3240 = vmatpush3.bf16.msra.mxu0 %v3764_v0 }
 0x214   :  { %3241 = vmatprep.subr.bf16.mxu0 %v4226_v60 }
 0x215   :  { %3320 = vmatpush3.bf16.msra.mxu1 %v3764_v0 }
 0x216   :  { %3321 = vmatprep.subr.bf16.mxu1 %v4226_v60 }
 0x217   :  { %3242 = vmatpush3.bf16.msra.mxu0 %v3765_v12 }
 0x218   :  { %3243 = vmatprep.subr.bf16.mxu0 %v4226_v60 }
 0x219   :  { %3322 = vmatpush3.bf16.msra.mxu1 %v3765_v12 }
 0x21a   :  { %3323 = vmatprep.subr.bf16.mxu1 %v4226_v60 }
 0x21b   :  { %3244 = vmatpush3.bf16.msra.mxu0 %v3766_v13 }
 0x21c   :  { %3245 = vmatprep.subr.bf16.mxu0 %v4226_v60 }
 0x21d   :  { %3324 = vmatpush3.bf16.msra.mxu1 %v3766_v13 }
 0x21e   :  { %3325 = vmatprep.subr.bf16.mxu1 %v4226_v60 }
 0x21f   :  { %3246 = vmatpush3.bf16.msra.mxu0 %v3767_v14 }
 0x220   :  { %3247 = vmatprep.subr.bf16.mxu0 %v4226_v60 }
 0x221   :  { %3326 = vmatpush3.bf16.msra.mxu1 %v3767_v14 }
 0x222   :  { %3327 = vmatprep.subr.bf16.mxu1 %v4226_v60 }
 0x223   :  { %3248 = vmatpush3.bf16.msra.mxu0 %v3768_v15 }
 0x224   :  { %3253 = vmatprep.subr.bf16.mxu0 %v4226_v60 }
 0x225   :  { %3328 = vmatpush3.bf16.msra.mxu1 %v3768_v15 }
 0x226   :  { %3333 = vmatprep.subr.bf16.mxu1 %v4226_v60  ;;  %3250 = vmatmul.mubr.bf16.vlgmr.msra.gmra.mrb[4].mxu0 %v1026_v19  ;;  %v1411_v19 = vld [vmem:[%s4527_s6] sm:$0x1] }
 0x227   :  { %3254 = vmatpush3.bf16.msra.mxu0 %v3769_v18  ;;  %3269 = vmatprep.mubr.msk.bf16.mxu0 %vm3941_vm0, %v4226_v60 }
 0x228   :  { %3330 = vmatmul.mubr.bf16.vlgmr.msra.gmra.mrb[4].mxu1 %v1292_v20  ;;  %3255 = vmatprep.subr.bf16.mxu0 %v4226_v60 }
 0x229   :  { %3334 = vmatpush3.bf16.msra.mxu1 %v3769_v18  ;;  %3349 = vmatprep.mubr.msk.bf16.mxu1 %vm3941_vm0, %v4226_v60 }
 0x22a   :  { %3335 = vmatprep.subr.bf16.mxu1 %v4226_v60 }
 0x22b   :  { %3256 = vmatpush3.bf16.msra.mxu0 %v3770_v21 }
 0x22c   :  { %3257 = vmatprep.subr.bf16.mxu0 %v4226_v60 }
 0x22d   :  { %3336 = vmatpush3.bf16.msra.mxu1 %v3770_v21 }
 0x22e   :  { %3337 = vmatprep.subr.bf16.mxu1 %v4226_v60 }
 0x22f   :  { %3258 = vmatpush3.bf16.msra.mxu0 %v3771_v22 }
 0x230   :  { %3259 = vmatprep.subr.bf16.mxu0 %v4226_v60 }
 0x231   :  { %3338 = vmatpush3.bf16.msra.mxu1 %v3771_v22  ;;  %v1413_v22 = vld [vmem:[%s4531_s10] sm:$0x1] }
 0x232   :  { %3339 = vmatprep.subr.bf16.mxu1 %v4226_v60 }
 0x233   :  { %3260 = vmatpush3.bf16.msra.mxu0 %v3772_v23 }
 0x234   :  { %3261 = vmatprep.subr.bf16.mxu0 %v4226_v60 }
 0x235   :  { %3340 = vmatpush3.bf16.msra.mxu1 %v3772_v23 }
 0x236   :  { %3341 = vmatprep.subr.bf16.mxu1 %v4226_v60 }
 0x237   :  { %3262 = vmatpush3.bf16.msra.mxu0 %v3773_v24 }
 0x238   :  { %3263 = vmatprep.subr.bf16.mxu0 %v4226_v60 }
 0x239   :  { %3342 = vmatpush3.bf16.msra.mxu1 %v3773_v24 }
 0x23a   :  { %3343 = vmatprep.subr.bf16.mxu1 %v4226_v60 }
 0x23b   :  { %3264 = vmatpush3.bf16.msra.mxu0 %v3774_v25 }
 0x23c   :  { %3265 = vmatprep.subr.bf16.mxu0 %v4226_v60 }
 0x23d   :  { %3344 = vmatpush3.bf16.msra.mxu1 %v3774_v25 }
 0x23e   :  { %3345 = vmatprep.subr.bf16.mxu1 %v4226_v60 }
 0x23f   :  { %3266 = vmatpush3.bf16.msra.mxu0 %v3775_v26 }
 0x240   :  { %3267 = vmatprep.subr.bf16.mxu0 %v4226_v60 }
 0x241   :  { %3346 = vmatpush3.bf16.msra.mxu1 %v3775_v26 }
 0x242   :  { %3347 = vmatprep.subr.bf16.mxu1 %v4226_v60 }
 0x243   :  { %3268 = vmatpush3.bf16.msra.mxu0 %v3776_v27 }
 0x244   :  { %3353 = vmatprep.subr.bf16.mxu0 %v4226_v60 }
 0x245   :  { %3348 = vmatpush3.bf16.msra.mxu1 %v3776_v27 }
 0x246   :  { %3433 = vmatprep.subr.bf16.mxu1 %v4226_v60  ;;  %3270 = vmatmul.mubr.bf16.vlgmr.msra.gmra.mrb[4].mxu0 %v1117_v30 }
 0x247   :  { %3369 = vmatprep.mubr.msk.bf16.mxu0 %vm3941_vm0, %v4226_v60  ;;  %3354 = vmatpush3.bf16.msra.mxu0 %v3777_v32 }
 0x248   :  { %3350 = vmatmul.mubr.bf16.vlgmr.msra.gmra.mrb[4].mxu1 %v1335_v31  ;;  %3355 = vmatprep.subr.bf16.mxu0 %v4226_v60 }
 0x249   :  { %3449 = vmatprep.mubr.msk.bf16.mxu1 %vm3941_vm0, %v4226_v60  ;;  %3434 = vmatpush3.bf16.msra.mxu1 %v3777_v32 }
 0x24a   :  { %3435 = vmatprep.subr.bf16.mxu1 %v4226_v60 }
 0x24b   :  { %3356 = vmatpush3.bf16.msra.mxu0 %v3778_v33 }
 0x24c   :  { %3357 = vmatprep.subr.bf16.mxu0 %v4226_v60 }
 0x24d   :  { %3436 = vmatpush3.bf16.msra.mxu1 %v3778_v33  ;;  %v3785_v33 = vld [vmem:[#allocation10] sm:$0xff]  }
 0x24e   :  { %3437 = vmatprep.subr.bf16.mxu1 %v4226_v60 }
 0x24f   :  { %3358 = vmatpush3.bf16.msra.mxu0 %v3779_v34 }
 0x250   :  { %3359 = vmatprep.subr.bf16.mxu0 %v4226_v60 }
 0x251   :  { %3438 = vmatpush3.bf16.msra.mxu1 %v3779_v34 }
 0x252   :  { %3439 = vmatprep.subr.bf16.mxu1 %v4226_v60 }
 0x253   :  { %3360 = vmatpush3.bf16.msra.mxu0 %v3780_v35 }
 0x254   :  { %3361 = vmatprep.subr.bf16.mxu0 %v4226_v60 }
 0x255   :  { %3440 = vmatpush3.bf16.msra.mxu1 %v3780_v35 }
 0x256   :  { %3441 = vmatprep.subr.bf16.mxu1 %v4226_v60 }
 0x257   :  { %3362 = vmatpush3.bf16.msra.mxu0 %v3781_v36 }
 0x258   :  { %3363 = vmatprep.subr.bf16.mxu0 %v4226_v60 }
 0x259   :  { %3442 = vmatpush3.bf16.msra.mxu1 %v3781_v36 }
 0x25a   :  { %3443 = vmatprep.subr.bf16.mxu1 %v4226_v60 }
 0x25b   :  { %3364 = vmatpush3.bf16.msra.mxu0 %v3782_v37 }
 0x25c   :  { %3365 = vmatprep.subr.bf16.mxu0 %v4226_v60 }
 0x25d   :  { %3444 = vmatpush3.bf16.msra.mxu1 %v3782_v37 }
 0x25e   :  { %3445 = vmatprep.subr.bf16.mxu1 %v4226_v60 }
 0x25f   :  { %3366 = vmatpush3.bf16.msra.mxu0 %v3783_v38 }
 0x260   :  { %3367 = vmatprep.subr.bf16.mxu0 %v4226_v60 }
 0x261   :  { %3446 = vmatpush3.bf16.msra.mxu1 %v3783_v38 }
 0x262   :  { %3447 = vmatprep.subr.bf16.mxu1 %v4226_v60 }
 0x263   :  { %3368 = vmatpush3.bf16.msra.mxu0 %v3784_v39 }
 0x264   :  { %3373 = vmatprep.subr.bf16.mxu0 %v4226_v60 }
 0x265   :  { %3448 = vmatpush3.bf16.msra.mxu1 %v3784_v39 }
 0x266   :  { %3453 = vmatprep.subr.bf16.mxu1 %v4226_v60 }
 0x319   :  { %v1200_v40 = vpop.f32.mrb[4].mxu0 }
 0x31a   :  { %v1377_v42 = vrot.slane %v1200_v40, 4  ;;  %v3271_v45 = vpop.f32.mrb[5].mxu0 }
 0x31b   :  { %v1370_v41 = vpop.f32.mrb[4].mxu1  ;;  %v1203_v47 = vpop.f32.mrb[6].mxu0  ;;  %v3790_v45 = vld [vmem:[#allocation10 + $0x28] sm:$0xff]  }
 0x31c   :  { %v1383_v44 = vrot.slane %v1370_v41, 4  ;;  %v3351_v46 = vpop.f32.mrb[5].mxu1  ;;  %v1378_v49 = vadd.f32 %v1377_v42, %v1200_v40  ;;  %v3272_v51 = vpop.f32.mrb[7].mxu0  ;;  %v3788_v42 = vld [vmem:[#allocation10 + $0x18] sm:$0xff]  }
 0x31d   :  { %v1373_v48 = vpop.f32.mrb[6].mxu1  ;;  %v3791_v46 = vld [vmem:[#allocation10 + $0x30] sm:$0xff]   ;;  %v3792_v47 = vld [vmem:[#allocation10 + $0x38] sm:$0xff]  }
 0x31e   :  { %v1384_v50 = vadd.f32 %v1383_v44, %v1370_v41  ;;  %v3352_v52 = vpop.f32.mrb[7].mxu1  ;;  %v1379_v53 = vrot.slane %v1378_v49, 2  ;;  %v3789_v44 = vld [vmem:[#allocation10 + $0x20] sm:$0xff]  }
 0x31f   :  { %v3793_v52 = vld [vmem:[#allocation10 + $0x80] sm:$0xff]  }
 0x320   :  { %v1385_v54 = vrot.slane %v1384_v50, 2  ;;  %v1380_v55 = vadd.f32 %v1379_v53, %v1378_v49 }
 0x322   :  { %v1386_v56 = vadd.f32 %v1385_v54, %v1384_v50  ;;  %v1381_v57 = vrot.slane %v1380_v55, 1 }
 0x324   :  { %v1387_v58 = vrot.slane %v1386_v56, 1  ;;  %v1382_v61 = vadd.f32 %v1381_v57, %v1380_v55  ;;  %v3794_v55 = vld [vmem:[#allocation10 + $0x88] sm:$0xff]   ;;  %v3796_v57 = vld [vmem:[#allocation10 + $0x98] sm:$0xff]  }
 0x326   :  { %v1388_v59 = vadd.f32 %v1387_v58, %v1386_v56  ;;  %v3795_v56 = vld [vmem:[#allocation10 + $0x90] sm:$0xff]   ;;  %v3797_v58 = vld [vmem:[#allocation10 + $0xa0] sm:$0xff]  }
 0x328   :  { %v1389_v62 = vadd.f32 %v1388_v59, %v1382_v61  ;;  %v3798_v61 = vld [vmem:[#allocation10 + $0xa8] sm:$0xff]   ;;  %v3799_v59 = vld [vmem:[#allocation10 + $0xb0] sm:$0xff]  }
 0x32a   :  { %v1390_v63 = vmul.f32 0.0625, %v1389_v62  ;;  %v3800_v62 = vld [vmem:[#allocation10 + $0xb8] sm:$0xff]  }
 0x32c   :  { %v1391_v1 = vsub.f32 %v1200_v40, %v1390_v63  ;;  %v1399_v2 = vsub.f32 %v1370_v41, %v1390_v63 }
 0x32e   :  { %v1392_v3 = vmul.f32 %v1391_v1, %v1391_v1  ;;  %v1400_v4 = vmul.f32 %v1399_v2, %v1399_v2 }
 0x330   :  { %v1393_v5 = vrot.slane %v1392_v3, 4  ;;  %v1401_v6 = vrot.slane %v1400_v4, 4 }
 0x332   :  { %v1394_v7 = vadd.f32 %v1393_v5, %v1392_v3  ;;  %v1402_v8 = vadd.f32 %v1401_v6, %v1400_v4  ;;  %v3801_v4 = vld [vmem:[#allocation10 + $0xc0] sm:$0xff]  }
 0x334   :  { %v1395_v9 = vrot.slane %v1394_v7, 2  ;;  %v1403_v10 = vrot.slane %v1402_v8, 2 }
 0x336   :  { %v1396_v11 = vadd.f32 %v1395_v9, %v1394_v7  ;;  %v1404_v0 = vadd.f32 %v1403_v10, %v1402_v8  ;;  %v3802_v7 = vld [vmem:[#allocation10 + $0xc8] sm:$0xff]   ;;  %v3803_v8 = vld [vmem:[#allocation10 + $0xd0] sm:$0xff]   ;;  %v3804_v9 = vld [vmem:[#allocation10 + $0xd8] sm:$0xff]  }
 0x337   :  { %v3805_v10 = vld [vmem:[#allocation10 + $0xe0] sm:$0xff]  }
 0x338   :  { %v1397_v12 = vrot.slane %v1396_v11, 1  ;;  %v1405_v13 = vrot.slane %v1404_v0, 1 }
 0x33a   :  { %v1398_v14 = vadd.f32 %v1397_v12, %v1396_v11  ;;  %v1406_v15 = vadd.f32 %v1405_v13, %v1404_v0  ;;  %v3806_v11 = vld [vmem:[#allocation10 + $0xe8] sm:$0xff]   ;;  %v3807_v0 = vld [vmem:[#allocation10 + $0xf0] sm:$0xff]   ;;  %v3808_v12 = vld [vmem:[#allocation10 + $0xf8] sm:$0xff]  }
 0x33c   :  { %v1407_v16 = vadd.f32 %v1406_v15, %v1398_v14 }
 0x33e   :  { %v1408_v17 = vmul.f32 0.0625, %v1407_v16 }
 0x340   :  { %v1409_v18 = vadd.f32 1e-05, %v1408_v17 }
 0x342   :  { %3835 = vrsqrt.f32 %v1409_v18 }
 0x34c   :  { %v3836_v20 = vpop.eup %3835 }
 0x34d   :  { %v1412_v21 = vmul.f32 %v3836_v20, %v1411_v19  ;;  %v4380_v19 = vld [vmem:[#allocation11 + $0x40] sm:$0xff]   ;;  %v4384_v20 = vld [vmem:[#allocation11 + $0x48] sm:$0xff]  }
 0x34f   :  { %v1414_v23 = vmul.f32 %v1412_v21, %v1390_v63  ;;  %v1425_v24 = vrot.slane %v1412_v21, %v4219_v43  ;;  %v4388_v21 = vld [vmem:[#allocation11] sm:$0xff]  }
 0x351   :  { %v1415_v25 = vsub.f32 %v1413_v22, %v1414_v23  ;;  %v1426_v26 = vmul.f32 %v1425_v24, %v1200_v40  ;;  %v1443_v27 = vmul.f32 %v1425_v24, %v1370_v41  ;;  %v3786_v40 = vld [vmem:[#allocation10 + $0x8] sm:$0xff]   ;;  %v3787_v41 = vld [vmem:[#allocation10 + $0x10] sm:$0xff]   ;;  %v4398_v24 = vld [vmem:[#allocation11 + $0x58] sm:$0xff]  }
 0x352   :  { %v4390_v22 = vld [vmem:[#allocation11 + $0x50] sm:$0xff]   ;;  %v4396_v23 = vld [vmem:[#allocation11 + $0x8] sm:$0xff]  }
 0x353   :  { %v1431_v28 = vrot.slane %v1415_v25, %v4219_v43  ;;  %v4404_v25 = vld [vmem:[#allocation11 + $0x10] sm:$0xff]  }
 0x355   :  { %v1433_v29 = vadd.f32 %v1431_v28, %v1426_v26  ;;  %v1444_v30 = vadd.f32 %v1443_v27, %v1431_v28  ;;  %v4406_v26 = vld [vmem:[#allocation11 + $0x60] sm:$0xff]   ;;  %v4412_v27 = vld [vmem:[#allocation11 + $0x18] sm:$0xff]   ;;  %v4414_v28 = vld [vmem:[#allocation11 + $0x68] sm:$0xff]  }
 0x357   :  { %v1434_v31 = vmax.f32 %v1433_v29, 0.0  ;;  %v1445_v32 = vmax.f32 %v1444_v30, 0.0  ;;  %v4420_v29 = vld [vmem:[#allocation11 + $0x20] sm:$0xff]   ;;  %v4422_v30 = vld [vmem:[#allocation11 + $0x70] sm:$0xff]  }
 0x359   :  { %1447 = vst [vmem:[#allocation4 + $0x1a] ss:$8 sps:$4 sm:$0x11] %v1445_v32   ;;  %1448 = vst [vmem:[#allocation4 + $0x1b] ss:$8 sps:$4 sm:$0x22] %v1445_v32  }
 0x35a   :  { %1449 = vst [vmem:[#allocation4 + $0x1c] ss:$8 sps:$4 sm:$0x44] %v1445_v32   ;;  %1450 = vst [vmem:[#allocation4 + $0x1d] ss:$8 sps:$4 sm:$0x88] %v1445_v32  }
 0x35b   :  { %1435 = vst [vmem:[#allocation4 + $0x2] ss:$8 sps:$4 sm:$0x11] %v1434_v31   ;;  %1436 = vst [vmem:[#allocation4 + $0x3] ss:$8 sps:$4 sm:$0x22] %v1434_v31  }
 0x35c   :  { %1437 = vst [vmem:[#allocation4 + $0x4] ss:$8 sps:$4 sm:$0x44] %v1434_v31   ;;  %1438 = vst [vmem:[#allocation4 + $0x5] ss:$8 sps:$4 sm:$0x88] %v1434_v31  }
 0x35d   :  { %v4428_v31 = vld [vmem:[#allocation11 + $0x28] sm:$0xff]   ;;  %v4430_v32 = vld [vmem:[#allocation11 + $0x78] sm:$0xff]  }
 0x361   :  { %v1897_v36 = vld [vmem:[#allocation4 + $0x19] sm:$0xff]  ;;  %v1898_v38 = vld [vmem:[#allocation4 + $0x21] sm:$0xff] }
 0x362   :  { %v1899_v39 = vpack.c.bf16 %v1898_v38, %v1897_v36  ;;  %v1894_v50 = vld [vmem:[#allocation4 + $0x18] sm:$0xff]  ;;  %v1895_v51 = vld [vmem:[#allocation4 + $0x20] sm:$0xff] }
 0x363   :  { %v1525_v34 = vld [vmem:[#allocation4 + $0x1] sm:$0xff]  ;;  %v1526_v35 = vld [vmem:[#allocation4 + $0x9] sm:$0xff]  ;;  %v1896_v54 = vpack.c.bf16 %v1895_v51, %v1894_v50 }
 0x364   :  { %v1527_v37 = vpack.c.bf16 %v1526_v35, %v1525_v34  ;;  %3450 = vmatmul.mubr.bf16.vlgmr.msra.gmra.mrb[8].mxu1 %v1899_v39  ;;  %v1522_v48 = vld [vmem:[#allocation4] sm:$0xff]  ;;  %v1523_v49 = vld [vmem:[#allocation4 + $0x8] sm:$0xff]  ;;  %v4439_v34 = vld [vmem:[#allocation11 + $0x38] sm:$0xff]  }
 0x365   :  { %3454 = vmatpush3.bf16.msra.mxu1 %v3785_v33  ;;  %3469 = vmatprep.mubr.msk.bf16.mxu1 %vm3941_vm0, %v4226_v60  ;;  %v1524_v53 = vpack.c.bf16 %v1523_v49, %v1522_v48  ;;  %v1706_v63 = vld [vmem:[#allocation4 + $0x2] sm:$0xff]  ;;  %v1707_v1 = vld [vmem:[#allocation4 + $0xa] sm:$0xff]  ;;  %v1982_v2 = vld [vmem:[#allocation4 + $0x1a] sm:$0xff] }
 0x366   :  { %3370 = vmatmul.mubr.bf16.vlgmr.msra.gmra.mrb[8].mxu0 %v1527_v37  ;;  %3455 = vmatprep.subr.bf16.mxu1 %v4226_v60  ;;  %v1983_v3 = vld [vmem:[#allocation4 + $0x22] sm:$0xff]  ;;  %v1708_v5 = vpack.c.bf16 %v1707_v1, %v1706_v63  ;;  %v1801_v14 = vld [vmem:[#allocation4 + $0xb] sm:$0xff] }
 0x367   :  { %3374 = vmatpush3.bf16.msra.mxu0 %v3785_v33  ;;  %3389 = vmatprep.mubr.msk.bf16.mxu0 %vm3941_vm0, %v4226_v60  ;;  %v1984_v6 = vpack.c.bf16 %v1983_v3, %v1982_v2  ;;  %v1800_v13 = vld [vmem:[#allocation4 + $0x3] sm:$0xff]  ;;  %v2028_v15 = vld [vmem:[#allocation4 + $0x1b] sm:$0xff]  ;;  %v4433_v33 = vld [vmem:[#allocation11 + $0x30] sm:$0xff]  }
 0x368   :  { %3375 = vmatprep.subr.bf16.mxu0 %v4226_v60  ;;  %v2029_v16 = vld [vmem:[#allocation4 + $0x23] sm:$0xff]  ;;  %v1802_v17 = vpack.c.bf16 %v1801_v14, %v1800_v13 }
 0x369   :  { %3456 = vmatpush3.bf16.msra.mxu1 %v3786_v40  ;;  %v2030_v18 = vpack.c.bf16 %v2029_v16, %v2028_v15 }
 0x36a   :  { %3457 = vmatprep.subr.bf16.mxu1 %v4226_v60 }
 0x36b   :  { %3376 = vmatpush3.bf16.msra.mxu0 %v3786_v40 }
 0x36c   :  { %3377 = vmatprep.subr.bf16.mxu0 %v4226_v60 }
 0x36d   :  { %3458 = vmatpush3.bf16.msra.mxu1 %v3787_v41 }
 0x36e   :  { %3459 = vmatprep.subr.bf16.mxu1 %v4226_v60 }
 0x36f   :  { %3378 = vmatpush3.bf16.msra.mxu0 %v3787_v41 }
 0x370   :  { %3379 = vmatprep.subr.bf16.mxu0 %v4226_v60 }
 0x371   :  { %3460 = vmatpush3.bf16.msra.mxu1 %v3788_v42 }
 0x372   :  { %3461 = vmatprep.subr.bf16.mxu1 %v4226_v60 }
 0x373   :  { %3380 = vmatpush3.bf16.msra.mxu0 %v3788_v42 }
 0x374   :  { %3381 = vmatprep.subr.bf16.mxu0 %v4226_v60 }
 0x375   :  { %3462 = vmatpush3.bf16.msra.mxu1 %v3789_v44 }
 0x376   :  { %3463 = vmatprep.subr.bf16.mxu1 %v4226_v60 }
 0x377   :  { %3382 = vmatpush3.bf16.msra.mxu0 %v3789_v44 }
 0x378   :  { %3383 = vmatprep.subr.bf16.mxu0 %v4226_v60 }
 0x379   :  { %3464 = vmatpush3.bf16.msra.mxu1 %v3790_v45 }
 0x37a   :  { %3465 = vmatprep.subr.bf16.mxu1 %v4226_v60 }
 0x37b   :  { %3384 = vmatpush3.bf16.msra.mxu0 %v3790_v45 }
 0x37c   :  { %3385 = vmatprep.subr.bf16.mxu0 %v4226_v60 }
 0x37d   :  { %3466 = vmatpush3.bf16.msra.mxu1 %v3791_v46 }
 0x37e   :  { %3467 = vmatprep.subr.bf16.mxu1 %v4226_v60 }
 0x37f   :  { %3386 = vmatpush3.bf16.msra.mxu0 %v3791_v46 }
 0x380   :  { %3387 = vmatprep.subr.bf16.mxu0 %v4226_v60 }
 0x381   :  { %3468 = vmatpush3.bf16.msra.mxu1 %v3792_v47 }
 0x382   :  { %3473 = vmatprep.subr.bf16.mxu1 %v4226_v60 }
 0x383   :  { %3388 = vmatpush3.bf16.msra.mxu0 %v3792_v47 }
 0x384   :  { %3393 = vmatprep.subr.bf16.mxu0 %v4226_v60  ;;  %3470 = vmatmul.mubr.bf16.vlgmr.msra.gmra.mrb[8].mxu1 %v1896_v54 }
 0x385   :  { %3474 = vmatpush3.bf16.msra.mxu1 %v3793_v52  ;;  %3489 = vmatprep.mubr.msk.bf16.mxu1 %vm3941_vm0, %v4226_v60 }
 0x386   :  { %3390 = vmatmul.mubr.bf16.vlgmr.msra.gmra.mrb[8].mxu0 %v1524_v53  ;;  %3475 = vmatprep.subr.bf16.mxu1 %v4226_v60 }
 0x387   :  { %3394 = vmatpush3.bf16.msra.mxu0 %v3793_v52  ;;  %3409 = vmatprep.mubr.msk.bf16.mxu0 %vm3941_vm0, %v4226_v60 }
 0x388   :  { %3395 = vmatprep.subr.bf16.mxu0 %v4226_v60 }
 0x389   :  { %3476 = vmatpush3.bf16.msra.mxu1 %v3794_v55 }
 0x38a   :  { %3477 = vmatprep.subr.bf16.mxu1 %v4226_v60 }
 0x38b   :  { %3396 = vmatpush3.bf16.msra.mxu0 %v3794_v55 }
 0x38c   :  { %3397 = vmatprep.subr.bf16.mxu0 %v4226_v60 }
 0x38d   :  { %3478 = vmatpush3.bf16.msra.mxu1 %v3795_v56 }
 0x38e   :  { %3479 = vmatprep.subr.bf16.mxu1 %v4226_v60 }
 0x38f   :  { %3398 = vmatpush3.bf16.msra.mxu0 %v3795_v56 }
 0x390   :  { %3399 = vmatprep.subr.bf16.mxu0 %v4226_v60 }
 0x391   :  { %3480 = vmatpush3.bf16.msra.mxu1 %v3796_v57 }
 0x392   :  { %3481 = vmatprep.subr.bf16.mxu1 %v4226_v60 }
 0x393   :  { %3400 = vmatpush3.bf16.msra.mxu0 %v3796_v57 }
 0x394   :  { %3401 = vmatprep.subr.bf16.mxu0 %v4226_v60 }
 0x395   :  { %3482 = vmatpush3.bf16.msra.mxu1 %v3797_v58 }
 0x396   :  { %3483 = vmatprep.subr.bf16.mxu1 %v4226_v60 }
 0x397   :  { %3402 = vmatpush3.bf16.msra.mxu0 %v3797_v58 }
 0x398   :  { %3403 = vmatprep.subr.bf16.mxu0 %v4226_v60 }
 0x399   :  { %3484 = vmatpush3.bf16.msra.mxu1 %v3798_v61 }
 0x39a   :  { %3485 = vmatprep.subr.bf16.mxu1 %v4226_v60 }
 0x39b   :  { %3404 = vmatpush3.bf16.msra.mxu0 %v3798_v61 }
 0x39c   :  { %3405 = vmatprep.subr.bf16.mxu0 %v4226_v60 }
 0x39d   :  { %3486 = vmatpush3.bf16.msra.mxu1 %v3799_v59 }
 0x39e   :  { %3487 = vmatprep.subr.bf16.mxu1 %v4226_v60 }
 0x39f   :  { %3406 = vmatpush3.bf16.msra.mxu0 %v3799_v59 }
 0x3a0   :  { %3407 = vmatprep.subr.bf16.mxu0 %v4226_v60 }
 0x3a1   :  { %3488 = vmatpush3.bf16.msra.mxu1 %v3800_v62 }
 0x3a2   :  { %3493 = vmatprep.subr.bf16.mxu1 %v4226_v60 }
 0x3a3   :  { %3408 = vmatpush3.bf16.msra.mxu0 %v3800_v62 }
 0x3a4   :  { %3413 = vmatprep.subr.bf16.mxu0 %v4226_v60  ;;  %3490 = vmatmul.mubr.bf16.vlgmr.msra.gmra.mrb[8].mxu1 %v1984_v6 }
 0x3a5   :  { %3494 = vmatpush3.bf16.msra.mxu1 %v3801_v4  ;;  %3509 = vmatprep.mubr.msk.bf16.mxu1 %vm3941_vm0, %v4226_v60 }
 0x3a6   :  { %3410 = vmatmul.mubr.bf16.vlgmr.msra.gmra.mrb[8].mxu0 %v1708_v5  ;;  %3495 = vmatprep.subr.bf16.mxu1 %v4226_v60 }
 0x3a7   :  { %3414 = vmatpush3.bf16.msra.mxu0 %v3801_v4  ;;  %3429 = vmatprep.mubr.msk.bf16.mxu0 %vm3941_vm0, %v4226_v60 }
 0x3a8   :  { %3415 = vmatprep.subr.bf16.mxu0 %v4226_v60 }
 0x3a9   :  { %3496 = vmatpush3.bf16.msra.mxu1 %v3802_v7 }
 0x3aa   :  { %3497 = vmatprep.subr.bf16.mxu1 %v4226_v60 }
 0x3ab   :  { %3416 = vmatpush3.bf16.msra.mxu0 %v3802_v7 }
 0x3ac   :  { %3417 = vmatprep.subr.bf16.mxu0 %v4226_v60 }
 0x3ad   :  { %3498 = vmatpush3.bf16.msra.mxu1 %v3803_v8 }
 0x3ae   :  { %3499 = vmatprep.subr.bf16.mxu1 %v4226_v60 }
 0x3af   :  { %3418 = vmatpush3.bf16.msra.mxu0 %v3803_v8 }
 0x3b0   :  { %3419 = vmatprep.subr.bf16.mxu0 %v4226_v60 }
 0x3b1   :  { %3500 = vmatpush3.bf16.msra.mxu1 %v3804_v9 }
 0x3b2   :  { %3501 = vmatprep.subr.bf16.mxu1 %v4226_v60 }
 0x3b3   :  { %3420 = vmatpush3.bf16.msra.mxu0 %v3804_v9 }
 0x3b4   :  { %3421 = vmatprep.subr.bf16.mxu0 %v4226_v60 }
 0x3b5   :  { %3502 = vmatpush3.bf16.msra.mxu1 %v3805_v10 }
 0x3b6   :  { %3503 = vmatprep.subr.bf16.mxu1 %v4226_v60 }
 0x3b7   :  { %3422 = vmatpush3.bf16.msra.mxu0 %v3805_v10 }
 0x3b8   :  { %3423 = vmatprep.subr.bf16.mxu0 %v4226_v60 }
 0x3b9   :  { %3504 = vmatpush3.bf16.msra.mxu1 %v3806_v11 }
 0x3ba   :  { %3505 = vmatprep.subr.bf16.mxu1 %v4226_v60 }
 0x3bb   :  { %3424 = vmatpush3.bf16.msra.mxu0 %v3806_v11 }
 0x3bc   :  { %3425 = vmatprep.subr.bf16.mxu0 %v4226_v60 }
 0x3bd   :  { %3506 = vmatpush3.bf16.msra.mxu1 %v3807_v0 }
 0x3be   :  { %3507 = vmatprep.subr.bf16.mxu1 %v4226_v60 }
 0x3bf   :  { %3426 = vmatpush3.bf16.msra.mxu0 %v3807_v0 }
 0x3c0   :  { %3427 = vmatprep.subr.bf16.mxu0 %v4226_v60 }
 0x3c1   :  { %3508 = vmatpush3.bf16.msra.mxu1 %v3808_v12 }
 0x3c2   :  { %3533 = vmatprep.subr.bf16.mxu1 %v4226_v60 }
 0x3c3   :  { %3428 = vmatpush3.bf16.msra.mxu0 %v3808_v12 }
 0x3c4   :  { %3513 = vmatprep.subr.bf16.mxu0 %v4226_v60  ;;  %3510 = vmatmul.mubr.bf16.vlgmr.msra.gmra.mrb[8].mxu1 %v2030_v18 }
 0x3c5   :  { %3549 = vmatprep.mubr.msk.bf16.mxu1 %vm3941_vm0, %v4226_v60  ;;  %3534 = vmatpush3.bf16.msra.mxu1 %v4388_v21 }
 0x3c6   :  { %3430 = vmatmul.mubr.bf16.vlgmr.msra.gmra.mrb[8].mxu0 %v1802_v17  ;;  %3535 = vmatprep.subr.bf16.mxu1 %v4226_v60 }
 0x3c7   :  { %3529 = vmatprep.mubr.msk.bf16.mxu0 %vm3941_vm0, %v4226_v60  ;;  %3514 = vmatpush3.bf16.msra.mxu0 %v4380_v19 }
 0x3c8   :  { %3515 = vmatprep.subr.bf16.mxu0 %v4226_v60 }
 0x3c9   :  { %3536 = vmatpush3.bf16.msra.mxu1 %v4396_v23 }
 0x3ca   :  { %3537 = vmatprep.subr.bf16.mxu1 %v4226_v60 }
 0x3cb   :  { %3516 = vmatpush3.bf16.msra.mxu0 %v4384_v20 }
 0x3cc   :  { %3517 = vmatprep.subr.bf16.mxu0 %v4226_v60 }
 0x3cd   :  { %3538 = vmatpush3.bf16.msra.mxu1 %v4404_v25 }
 0x3ce   :  { %3539 = vmatprep.subr.bf16.mxu1 %v4226_v60 }
 0x3cf   :  { %3518 = vmatpush3.bf16.msra.mxu0 %v4390_v22 }
 0x3d0   :  { %3519 = vmatprep.subr.bf16.mxu0 %v4226_v60 }
 0x3d1   :  { %3540 = vmatpush3.bf16.msra.mxu1 %v4412_v27 }
 0x3d2   :  { %3541 = vmatprep.subr.bf16.mxu1 %v4226_v60 }
 0x3d3   :  { %3520 = vmatpush3.bf16.msra.mxu0 %v4398_v24 }
 0x3d4   :  { %3521 = vmatprep.subr.bf16.mxu0 %v4226_v60 }
 0x3d5   :  { %3542 = vmatpush3.bf16.msra.mxu1 %v4420_v29 }
 0x3d6   :  { %3543 = vmatprep.subr.bf16.mxu1 %v4226_v60 }
 0x3d7   :  { %3522 = vmatpush3.bf16.msra.mxu0 %v4406_v26 }
 0x3d8   :  { %3523 = vmatprep.subr.bf16.mxu0 %v4226_v60 }
 0x3d9   :  { %3544 = vmatpush3.bf16.msra.mxu1 %v4428_v31 }
 0x3da   :  { %3545 = vmatprep.subr.bf16.mxu1 %v4226_v60 }
 0x3db   :  { %3524 = vmatpush3.bf16.msra.mxu0 %v4414_v28 }
 0x3dc   :  { %3525 = vmatprep.subr.bf16.mxu0 %v4226_v60 }
 0x3dd   :  { %3546 = vmatpush3.bf16.msra.mxu1 %v4433_v33 }
 0x3de   :  { %3547 = vmatprep.subr.bf16.mxu1 %v4226_v60 }
 0x3df   :  { %3526 = vmatpush3.bf16.msra.mxu0 %v4422_v30 }
 0x3e0   :  { %3527 = vmatprep.subr.bf16.mxu0 %v4226_v60 }
 0x3e1   :  { %3548 = vmatpush3.bf16.msra.mxu1 %v4439_v34 }
 0x3e2   :  { %3573 = vmatprep.subr.bf16.mxu1 %v4226_v60 }
 0x3e3   :  { %3528 = vmatpush3.bf16.msra.mxu0 %v4430_v32 }
 0x3e4   :  { %3553 = vmatprep.subr.bf16.mxu0 %v4226_v60 }
 0x497   :  { %v2065_v36 = vpop.f32.mrb[8].mxu1 }
 0x498   :  { %v3511_v38 = vpop.f32.mrb[9].mxu1 }
 0x499   :  { %v1885_v35 = vpop.f32.mrb[8].mxu0  ;;  %v2068_v41 = vpop.f32.mrb[10].mxu1 }
 0x49a   :  { %v3431_v37 = vpop.f32.mrb[9].mxu0  ;;  %v2081_v44 = vadd.f32 %v2068_v41, %v2065_v36  ;;  %v3512_v45 = vpop.f32.mrb[11].mxu1 }
 0x49b   :  { %v1888_v39 = vpop.f32.mrb[10].mxu0 }
 0x49c   :  { %v2074_v40 = vadd.f32 %v1888_v39, %v1885_v35  ;;  %v3432_v42 = vpop.f32.mrb[11].mxu0  ;;  %v2082_v47 = vrot.slane %v2081_v44, 4 }
 0x49d   :  { %v2116_v42 = vld [vmem:[%s4528_s7] sm:$0x1] }
 0x49e   :  { %v2075_v46 = vrot.slane %v2074_v40, 4  ;;  %v2083_v49 = vadd.f32 %v2082_v47, %v2081_v44 }
 0x4a0   :  { %v2076_v48 = vadd.f32 %v2075_v46, %v2074_v40  ;;  %v2084_v51 = vrot.slane %v2083_v49, 2  ;;  %v2118_v46 = vld [vmem:[%s4532_s11] sm:$0x1] }
 0x4a2   :  { %v2077_v50 = vrot.slane %v2076_v48, 2  ;;  %v2085_v53 = vadd.f32 %v2084_v51, %v2083_v49 }
 0x4a4   :  { %v2078_v52 = vadd.f32 %v2077_v50, %v2076_v48  ;;  %v2086_v55 = vrot.slane %v2085_v53, 1 }
 0x4a6   :  { %v2079_v54 = vrot.slane %v2078_v52, 1  ;;  %v2087_v57 = vadd.f32 %v2086_v55, %v2085_v53 }
 0x4a8   :  { %v2080_v56 = vadd.f32 %v2079_v54, %v2078_v52 }
 0x4aa   :  { %v2088_v58 = vadd.f32 %v2087_v57, %v2080_v56 }
 0x4ac   :  { %v2089_v61 = vmul.f32 0.03125, %v2088_v58 }
 0x4ae   :  { %v2090_v59 = vsub.f32 %v1885_v35, %v2089_v61  ;;  %v2091_v62 = vsub.f32 %v1888_v39, %v2089_v61  ;;  %v2101_v63 = vsub.f32 %v2065_v36, %v2089_v61  ;;  %v2102_v1 = vsub.f32 %v2068_v41, %v2089_v61 }
 0x4b0   :  { %v2092_v2 = vmul.f32 %v2090_v59, %v2090_v59  ;;  %v2093_v3 = vmul.f32 %v2091_v62, %v2091_v62  ;;  %v2103_v4 = vmul.f32 %v2101_v63, %v2101_v63  ;;  %v2104_v5 = vmul.f32 %v2102_v1, %v2102_v1 }
 0x4b2   :  { %v2094_v6 = vadd.f32 %v2093_v3, %v2092_v2  ;;  %v2105_v7 = vadd.f32 %v2104_v5, %v2103_v4  ;;  %v3825_v2 = vld [vmem:[#allocation11 + $0x80] sm:$0xff]   ;;  %v3828_v4 = vld [vmem:[#allocation11 + $0x98] sm:$0xff]  }
 0x4b3   :  { %v3829_v5 = vld [vmem:[#allocation11 + $0xa0] sm:$0xff]  }
 0x4b4   :  { %v2095_v8 = vrot.slane %v2094_v6, 4  ;;  %v2106_v9 = vrot.slane %v2105_v7, 4 }
 0x4b6   :  { %v2096_v10 = vadd.f32 %v2095_v8, %v2094_v6  ;;  %v2107_v11 = vadd.f32 %v2106_v9, %v2105_v7  ;;  %v3831_v6 = vld [vmem:[#allocation11 + $0xb0] sm:$0xff]  }
 0x4b8   :  { %v2097_v0 = vrot.slane %v2096_v10, 2  ;;  %v2108_v12 = vrot.slane %v2107_v11, 2 }
 0x4ba   :  { %v2098_v13 = vadd.f32 %v2097_v0, %v2096_v10  ;;  %v2109_v14 = vadd.f32 %v2108_v12, %v2107_v11 }
 0x4bc   :  { %v2099_v15 = vrot.slane %v2098_v13, 1  ;;  %v2110_v16 = vrot.slane %v2109_v14, 1 }
 0x4be   :  { %v2100_v17 = vadd.f32 %v2099_v15, %v2098_v13  ;;  %v2111_v18 = vadd.f32 %v2110_v16, %v2109_v14 }
 0x4c0   :  { %v2112_v37 = vadd.f32 %v2111_v18, %v2100_v17 }
 0x4c2   :  { %v2113_v38 = vmul.f32 0.03125, %v2112_v37 }
 0x4c4   :  { %v2114_v40 = vadd.f32 1e-05, %v2113_v38 }
 0x4c6   :  { %3837 = vrsqrt.f32 %v2114_v40 }
 0x4d0   :  { %v3838_v44 = vpop.eup %3837 }
 0x4d1   :  { %v2117_v45 = vmul.f32 %v3838_v44, %v2116_v42 }
 0x4d3   :  { %v2119_v47 = vmul.f32 %v2117_v45, %v2089_v61  ;;  %v2130_v48 = vrot.slane %v2117_v45, %v4219_v43 }
 0x4d5   :  { %v2120_v49 = vsub.f32 %v2118_v46, %v2119_v47  ;;  %v2131_v50 = vmul.f32 %v2130_v48, %v1885_v35  ;;  %v2132_v51 = vmul.f32 %v2130_v48, %v1888_v39  ;;  %v2145_v52 = vmul.f32 %v2130_v48, %v2065_v36  ;;  %v3826_v36 = vld [vmem:[#allocation11 + $0x88] sm:$0xff]  }
 0x4d6   :  { %v2146_v53 = vmul.f32 %v2130_v48, %v2068_v41  ;;  %v3827_v41 = vld [vmem:[#allocation11 + $0x90] sm:$0xff]  }
 0x4d7   :  { %v2137_v54 = vrot.slane %v2120_v49, %v4219_v43 }
 0x4d9   :  { %v2139_v55 = vadd.f32 %v2137_v54, %v2131_v50  ;;  %v2140_v56 = vadd.f32 %v2137_v54, %v2132_v51  ;;  %v2147_v57 = vadd.f32 %v2145_v52, %v2137_v54  ;;  %v2148_v58 = vadd.f32 %v2146_v53, %v2137_v54 }
 0x4db   :  { %v2141_v59 = vmax.f32 %v2139_v55, 0.0  ;;  %v2142_v62 = vmax.f32 %v2140_v56, 0.0  ;;  %v2149_v63 = vmax.f32 %v2147_v57, 0.0  ;;  %v2150_v1 = vmax.f32 %v2148_v58, 0.0 }
 0x4dd   :  { %2143 = vst [vmem:[#allocation5 + $0x1] sm:$0xff] %v2141_v59  ;;  %2144 = vst [vmem:[#allocation5 + $0x9] sm:$0xff] %v2142_v62  ;;  %v2209_v61 = vpack.c.bf16 %v2142_v62, %v2141_v59  ;;  %v2487_v35 = vpack.c.bf16 %v2150_v1, %v2149_v63 }
 0x4de   :  { %2152 = vst [vmem:[#allocation5 + $0x19] sm:$0xff] %v2149_v63  ;;  %2153 = vst [vmem:[#allocation5 + $0x21] sm:$0xff] %v2150_v1 }
 0x4df   :  { %3530 = vmatmul.mubr.bf16.vlgmr.msra.gmra.mrb[12].mxu0 %v2209_v61 }
 0x4e0   :  { %3554 = vmatpush3.bf16.msra.mxu0 %v3825_v2  ;;  %3569 = vmatprep.mubr.msk.bf16.mxu0 %vm3941_vm0, %v4226_v60 }
 0x4e1   :  { %3555 = vmatprep.subr.bf16.mxu0 %v4226_v60 }
 0x4e4   :  { %v2204_v43 = vld [vmem:[#allocation5] sm:$0xff]  ;;  %v2205_v39 = vld [vmem:[#allocation5 + $0x8] sm:$0xff]  ;;  %3556 = vmatpush3.bf16.msra.mxu0 %v3826_v36 }
 0x4e5   :  { %v2206_v3 = vpack.c.bf16 %v2205_v39, %v2204_v43  ;;  %3557 = vmatprep.subr.bf16.mxu0 %v4226_v60  ;;  %v2389_v7 = vld [vmem:[#allocation5 + $0xa] sm:$0xff] }
 0x4e7   :  { %3550 = vmatmul.mubr.bf16.vlgmr.msra.gmra.mrb[12].mxu1 %v2206_v3 }
 0x4e8   :  { %3574 = vmatpush3.bf16.msra.mxu1 %v4380_v19  ;;  %3558 = vmatpush3.bf16.msra.mxu0 %v3827_v41  ;;  %v3830_v19 = vld [vmem:[#allocation11 + $0xa8] sm:$0xff]  }
 0x4e9   :  { %3575 = vmatprep.subr.bf16.mxu1 %v4226_v60  ;;  %3559 = vmatprep.subr.bf16.mxu0 %v4226_v60 }
 0x4ea   :  { %3589 = vmatprep.mubr.msk.bf16.mxu1 %vm3941_vm0, %v4226_v60 }
 0x4ec   :  { %3576 = vmatpush3.bf16.msra.mxu1 %v4384_v20  ;;  %3560 = vmatpush3.bf16.msra.mxu0 %v3828_v4  ;;  %v3832_v20 = vld [vmem:[#allocation11 + $0xb8] sm:$0xff]  }
 0x4ed   :  { %3577 = vmatprep.subr.bf16.mxu1 %v4226_v60  ;;  %3561 = vmatprep.subr.bf16.mxu0 %v4226_v60 }
 0x4f0   :  { %3578 = vmatpush3.bf16.msra.mxu1 %v4390_v22  ;;  %3562 = vmatpush3.bf16.msra.mxu0 %v3829_v5  ;;  %v2388_v22 = vld [vmem:[#allocation5 + $0x2] sm:$0xff] }
 0x4f1   :  { %3579 = vmatprep.subr.bf16.mxu1 %v4226_v60  ;;  %3563 = vmatprep.subr.bf16.mxu0 %v4226_v60 }
 0x4f4   :  { %3580 = vmatpush3.bf16.msra.mxu1 %v4398_v24  ;;  %3564 = vmatpush3.bf16.msra.mxu0 %v3830_v19  ;;  %v2390_v24 = vpack.c.bf16 %v2389_v7, %v2388_v22 }
 0x4f5   :  { %3581 = vmatprep.subr.bf16.mxu1 %v4226_v60  ;;  %3565 = vmatprep.subr.bf16.mxu0 %v4226_v60 }
 0x4f8   :  { %3582 = vmatpush3.bf16.msra.mxu1 %v4406_v26  ;;  %3566 = vmatpush3.bf16.msra.mxu0 %v3831_v6  ;;  %v2570_v26 = vld [vmem:[#allocation5 + $0x1a] sm:$0xff] }
 0x4f9   :  { %3583 = vmatprep.subr.bf16.mxu1 %v4226_v60  ;;  %3567 = vmatprep.subr.bf16.mxu0 %v4226_v60 }
 0x4fc   :  { %3584 = vmatpush3.bf16.msra.mxu1 %v4414_v28  ;;  %3568 = vmatpush3.bf16.msra.mxu0 %v3832_v20 }
 0x4fd   :  { %3585 = vmatprep.subr.bf16.mxu1 %v4226_v60  ;;  %3593 = vmatprep.subr.bf16.mxu0 %v4226_v60 }
 0x4ff   :  { %3570 = vmatmul.mubr.bf16.vlgmr.msra.gmra.mrb[16].mxu0 %v2390_v24 }
 0x500   :  { %3586 = vmatpush3.bf16.msra.mxu1 %v4422_v30  ;;  %3594 = vmatpush3.bf16.msra.mxu0 %v4388_v21  ;;  %v2482_v21 = vld [vmem:[#allocation5 + $0x18] sm:$0xff] }
 0x501   :  { %3587 = vmatprep.subr.bf16.mxu1 %v4226_v60  ;;  %3595 = vmatprep.subr.bf16.mxu0 %v4226_v60 }
 0x502   :  { %3609 = vmatprep.mubr.msk.bf16.mxu0 %vm3941_vm0, %v4226_v60 }
 0x504   :  { %3588 = vmatpush3.bf16.msra.mxu1 %v4430_v32  ;;  %3596 = vmatpush3.bf16.msra.mxu0 %v4396_v23  ;;  %v2483_v23 = vld [vmem:[#allocation5 + $0x20] sm:$0xff] }
 0x505   :  { %3613 = vmatprep.subr.bf16.mxu1 %v4226_v60  ;;  %3597 = vmatprep.subr.bf16.mxu0 %v4226_v60 }
 0x507   :  { %3590 = vmatmul.mubr.bf16.vlgmr.msra.gmra.mrb[16].mxu1 %v2487_v35 }
 0x508   :  { %3614 = vmatpush3.bf16.msra.mxu1 %v3825_v2  ;;  %3598 = vmatpush3.bf16.msra.mxu0 %v4404_v25  ;;  %v2484_v25 = vpack.c.bf16 %v2483_v23, %v2482_v21 }
 0x509   :  { %3615 = vmatprep.subr.bf16.mxu1 %v4226_v60  ;;  %3599 = vmatprep.subr.bf16.mxu0 %v4226_v60 }
 0x50a   :  { %3629 = vmatprep.mubr.msk.bf16.mxu1 %vm3941_vm0, %v4226_v60 }
 0x50c   :  { %3616 = vmatpush3.bf16.msra.mxu1 %v3826_v36  ;;  %3600 = vmatpush3.bf16.msra.mxu0 %v4412_v27  ;;  %v2571_v27 = vld [vmem:[#allocation5 + $0x22] sm:$0xff] }
 0x50d   :  { %3617 = vmatprep.subr.bf16.mxu1 %v4226_v60  ;;  %3601 = vmatprep.subr.bf16.mxu0 %v4226_v60  ;;  %v2572_v28 = vpack.c.bf16 %v2571_v27, %v2570_v26 }
 0x510   :  { %3618 = vmatpush3.bf16.msra.mxu1 %v3827_v41  ;;  %3602 = vmatpush3.bf16.msra.mxu0 %v4420_v29 }
 0x511   :  { %3619 = vmatprep.subr.bf16.mxu1 %v4226_v60  ;;  %3603 = vmatprep.subr.bf16.mxu0 %v4226_v60 }
 0x514   :  { %3620 = vmatpush3.bf16.msra.mxu1 %v3828_v4  ;;  %3604 = vmatpush3.bf16.msra.mxu0 %v4428_v31 }
 0x515   :  { %3621 = vmatprep.subr.bf16.mxu1 %v4226_v60  ;;  %3605 = vmatprep.subr.bf16.mxu0 %v4226_v60 }
 0x518   :  { %3622 = vmatpush3.bf16.msra.mxu1 %v3829_v5  ;;  %3606 = vmatpush3.bf16.msra.mxu0 %v4433_v33 }
 0x519   :  { %3623 = vmatprep.subr.bf16.mxu1 %v4226_v60  ;;  %3607 = vmatprep.subr.bf16.mxu0 %v4226_v60 }
 0x51c   :  { %3624 = vmatpush3.bf16.msra.mxu1 %v3830_v19  ;;  %3608 = vmatpush3.bf16.msra.mxu0 %v4439_v34 }
 0x51d   :  { %3625 = vmatprep.subr.bf16.mxu1 %v4226_v60 }
 0x51f   :  { %3610 = vmatmul.mubr.bf16.vlgmr.msra.gmra.mrb[20].mxu0 %v2484_v25 }
 0x520   :  { %3626 = vmatpush3.bf16.msra.mxu1 %v3831_v6 }
 0x521   :  { %3627 = vmatprep.subr.bf16.mxu1 %v4226_v60  ;;  %v2760_v60 = vld [vmem:[%s4533_s12] ss:$0 sm:$0xff] }
 0x524   :  { %3628 = vmatpush3.bf16.msra.mxu1 %v3832_v20 }
 0x527   :  { %3630 = vmatmul.mubr.bf16.vlgmr.msra.gmra.mrb[20].mxu1 %v2572_v28 }
 0x5b2   :  { %v2292_v29 = vpop.f32.mrb[12].mxu0 }
 0x5b3   :  { %v3531_v30 = vpop.f32.mrb[13].mxu0 }
 0x5b4   :  { %v2295_v31 = vpop.f32.mrb[14].mxu0 }
 0x5b5   :  { %v3532_v32 = vpop.f32.mrb[15].mxu0 }
 0x5ba   :  { %v2381_v33 = vpop.f32.mrb[12].mxu1 }
 0x5bb   :  { %v2382_v8 = vadd.f32 %v2381_v33, %v2292_v29  ;;  %v3551_v9 = vpop.f32.mrb[13].mxu1 }
 0x5bc   :  { %v2384_v34 = vpop.f32.mrb[14].mxu1 }
 0x5bd   :  { %v2385_v10 = vadd.f32 %v2384_v34, %v2295_v31  ;;  %v3552_v11 = vpop.f32.mrb[15].mxu1 }
 0x5d2   :  { %v2473_v0 = vpop.f32.mrb[16].mxu0 }
 0x5d3   :  { %v2480_v12 = vadd.f32 %v2473_v0, %v2382_v8  ;;  %v3571_v13 = vpop.f32.mrb[17].mxu0 }
 0x5d4   :  { %v2476_v14 = vpop.f32.mrb[18].mxu0 }
 0x5d5   :  { %v2623_v15 = vadd.f32 %v2760_v60, %v2480_v12  ;;  %v2481_v16 = vadd.f32 %v2476_v14, %v2385_v10  ;;  %v3572_v17 = vpop.f32.mrb[19].mxu0 }
 0x5d7   :  { %2625 = vst [vmem:[%s4534_s13] sm:$0xff] %v2623_v15  ;;  %v2624_v18 = vadd.f32 %v2760_v60, %v2481_v16 }
 0x5d9   :  { %2626 = vst [vmem:[%s4534_s13 + $0x8] sm:$0xff] %v2624_v18 }
 0x5da   :  { %v2522_v37 = vpop.f32.mrb[16].mxu1 }
 0x5db   :  { %v3591_v38 = vpop.f32.mrb[17].mxu1 }
 0x5dc   :  { %v2525_v40 = vpop.f32.mrb[18].mxu1 }
 0x5dd   :  { %v3592_v42 = vpop.f32.mrb[19].mxu1 }
 0x5f2   :  { %v2563_v44 = vpop.f32.mrb[20].mxu0 }
 0x5f3   :  { %v2564_v45 = vadd.f32 %v2563_v44, %v2522_v37  ;;  %v3611_v46 = vpop.f32.mrb[21].mxu0 }
 0x5f4   :  { %v2566_v47 = vpop.f32.mrb[22].mxu0 }
 0x5f5   :  { %v2567_v48 = vadd.f32 %v2566_v47, %v2525_v40  ;;  %v3612_v49 = vpop.f32.mrb[23].mxu0 }
 0x5fa   :  { %v2607_v50 = vpop.f32.mrb[20].mxu1 }
 0x5fb   :  { %v2614_v51 = vadd.f32 %v2607_v50, %v2564_v45  ;;  %v3631_v52 = vpop.f32.mrb[21].mxu1 }
 0x5fc   :  { %v2610_v53 = vpop.f32.mrb[22].mxu1 }
 0x5fd   :  { %v2627_v54 = vadd.f32 %v2760_v60, %v2614_v51  ;;  %v2615_v55 = vadd.f32 %v2610_v53, %v2567_v48  ;;  %v3632_v56 = vpop.f32.mrb[23].mxu1 }
 0x5ff   :  { %2761 = vst [vmem:[%s4534_s13 + $0x10] sm:$0xff] %v2627_v54  ;;  %v2628_v57 = vadd.f32 %v2760_v60, %v2615_v55 }
 0x601   :  { %2762 = vst [vmem:[%s4534_s13 + $0x18] sm:$0xff] %v2628_v57 }
 0x602   :  { %2636 = vsyncpa [#allocation7], 1 }
 0x603   :  { %2637 = vsyncpa [#allocation9], 1 }
 0x604   :  { %2638 = vsyncpa [#allocation12], 1 }

</bundles_post_ra>
